<compile_context>
chip_gen: v5e
topology: v5e:2x2
jax: 0.10.0
libtpu: 0.0.40
codegen_flags: <defaults>
</compile_context>

<pallas_src>
import functools

import numpy as np

import jax
import jax.numpy as jnp
from jax.experimental import pallas as pl
from jax.experimental.pallas import tpu as pltpu


# --------------------------- in-kernel conv helper -------------------------- #

def _conv3x3_packed(x, wp_ref, *, W, cout):
    """3x3 'same' (zero-pad 1) conv on a flattened (M=H*W, Cin) activation.

    x:      (M, Cin) bf16 activation, rows = flattened (h, w) grid.
    wp_ref: (3, Cin, 3*CG) bf16 packed weights where
            wp[kx, ci, ky*CG + co] = w[ky, kx, ci, co] and each ky group is
            lane-padded from `cout` to CG=128 (3 wide matmuls, clean slices).
    Returns (M, cout) float32.
    """
    M, _ = x.shape
    CG = wp_ref.shape[-1] // 3

    # kx (column) taps: +-1 row shift of the flattened activation plus a
    # (M, 1) 0/1 edge mask (lane-broadcast multiply, no full-width selects).
    col = jax.lax.broadcasted_iota(jnp.int32, (M, 1), 0) % W
    not_first = (col != 0).astype(x.dtype)
    not_last = (col != (W - 1)).astype(x.dtype)
    x_l = jnp.roll(x, 1, axis=0) * not_first      # x[h, w-1], zero at w == 0
    x_r = jnp.roll(x, -1, axis=0) * not_last      # x[h, w+1], zero at w == W-1

    # 3 wide MXU matmuls (one per kx tap) against ky-packed weights.
    zsum = jnp.dot(x_l, wp_ref[0], preferred_element_type=jnp.float32)
    zsum = zsum + jnp.dot(x, wp_ref[1], preferred_element_type=jnp.float32)
    zsum = zsum + jnp.dot(x_r, wp_ref[2], preferred_element_type=jnp.float32)

    # ky (row) taps: sublane-aligned (W is a multiple of 8) row shifts of the
    # per-ky 128-lane output groups; the zero rows implement the zero padding.
    zero_rows = jnp.zeros((W, CG), jnp.float32)
    acc = zsum[:, CG:2 * CG]                                                  # ky = 1
    acc = acc + jnp.concatenate([zero_rows, zsum[:M - W, 0:CG]], axis=0)      # ky = 0
    acc = acc + jnp.concatenate([zsum[W:, 2 * CG:3 * CG], zero_rows], axis=0)  # ky = 2
    return acc[:, :cout]


# ------------------------------ Pallas kernels ------------------------------ #

def _conv8_kernel(x16_ref, x8_ref, u16_ref,
                  wh16_ref, sh16_ref, bh16_ref,
                  wh8_ref, sh8_ref, bh8_ref,
                  w8p_ref, s8_ref, b8_ref,
                  o_ref, *, W):
    """Fused: head16 (1x1+BN+ReLU) + bilinear 2x upsample (matmul) +
    head8 (1x1+BN+ReLU) + residual add + conv8 (3x3+BN+ReLU).
    One batch image per grid step."""
    cout = s8_ref.shape[-1]

    # head16 on the coarse grid.
    h16 = jnp.dot(x16_ref[0], wh16_ref[...], preferred_element_type=jnp.float32)
    h16 = jnp.maximum(h16 * sh16_ref[...] + bh16_ref[...], 0.0)

    # fused F.interpolate(bilinear, align_corners=False) as a tiny matmul.
    h16u = jnp.dot(u16_ref[...], h16.astype(jnp.bfloat16),
                   preferred_element_type=jnp.float32)            # (M8, 128)

    # head8.
    h8 = jnp.dot(x8_ref[0], wh8_ref[...], preferred_element_type=jnp.float32)
    h8 = jnp.maximum(h8 * sh8_ref[...] + bh8_ref[...], 0.0)

    # residual add + 3x3 conv + BN + ReLU.
    x = (h8 + h16u).astype(jnp.bfloat16)                          # (M8, 128)
    acc = _conv3x3_packed(x, w8p_ref, W=W, cout=cout)
    y = jnp.maximum(acc * s8_ref[...] + b8_ref[...], 0.0)
    o_ref[0] = y.astype(o_ref.dtype)


def _conv4_kernel(y8_ref, x4_ref, u8_ref,
                  wh4_ref, sh4_ref, bh4_ref,
                  w4p_ref, s4_ref, b4_ref,
                  wcls_ref, bcls_ref,
                  o_ref, *, W):
    """Fused: bilinear 2x upsample of conv8 output (matmul) + head4
    (1x1+BN+ReLU) + channel concat + conv4 (3x3+BN+ReLU) + classifier."""
    cout = s4_ref.shape[-1]

    # fused bilinear 2x upsample of the (coarse) conv8 output.
    y8u = jnp.dot(u8_ref[...], y8_ref[0], preferred_element_type=jnp.float32)  # (M4, 64)

    # head4.
    h4 = jnp.dot(x4_ref[0], wh4_ref[...], preferred_element_type=jnp.float32)
    h4 = jnp.maximum(h4 * sh4_ref[...] + bh4_ref[...], 0.0)                    # (M4, 8)

    # torch.cat((x8_up, x4_head), dim=1) -> single 72-channel activation.
    x = jnp.concatenate([y8u, h4], axis=1).astype(jnp.bfloat16)                # (M4, 72)
    acc = _conv3x3_packed(x, w4p_ref, W=W, cout=cout)
    y4 = jnp.maximum(acc * s4_ref[...] + b4_ref[...], 0.0)

    # classifier (1x1 conv, kept f32 for final-output accuracy; 8-lane pad).
    out = jnp.dot(y4, wcls_ref[...], preferred_element_type=jnp.float32)
    out = out + bcls_ref[...]
    o_ref[0] = out.astype(o_ref.dtype)


# ------------------------- host-side constant helpers ----------------------- #

def _bilinear_matrix(out_size, in_size):
    """Row r holds the two F.interpolate(align_corners=False) weights for r."""
    scale = in_size / out_size
    src = np.maximum((np.arange(out_size) + 0.5) * scale - 0.5, 0.0)
    i0 = np.clip(np.floor(src).astype(np.int64), 0, in_size - 1)
    i1 = np.minimum(i0 + 1, in_size - 1)
    l1 = src - i0
    m = np.zeros((out_size, in_size), np.float32)
    m[np.arange(out_size), i0] += 1.0 - l1
    m[np.arange(out_size), i1] += l1
    return m


def _bilinear_kron(h_out, w_out, h_in, w_in):
    """(h_out*w_out, h_in*w_in) flattened separable bilinear interpolation."""
    u = np.kron(_bilinear_matrix(h_out, h_in), _bilinear_matrix(w_out, w_in))
    return jnp.asarray(u, dtype=jnp.bfloat16)


def _pack_conv3x3(w, cg=128):
    """(3, 3, cin, cout) [ky, kx, ci, co] -> (3, cin, 3*cg) [kx, ci, ky*cg+co],
    each ky group lane-padded from cout to cg."""
    _, _, cin, cout = w.shape
    wp = jnp.zeros((3, cin, 3 * cg), w.dtype)
    for ky in range(3):
        for kx in range(3):
            wp = wp.at[kx, :, ky * cg:ky * cg + cout].set(w[ky, kx])
    return wp


# ------------------------------ pallas_call wrappers ------------------------ #

def conv8_fused(x16, x8, p):
    """x16: (B, H16, W16, C16) bf16, x8: (B, H8, W8, C8) bf16 -> (B, H8*W8, 64) bf16."""
    B, H16, W16, C16 = x16.shape
    _, H8, W8, C8 = x8.shape
    M16, M8 = H16 * W16, H8 * W8
    Cmid = p['head16_w'].shape[1]           # 128
    Cout = p['conv8_s'].shape[-1]           # 64
    u16 = _bilinear_kron(H8, W8, H16, W16)  # (M8, M16)

    return pl.pallas_call(
        functools.partial(_conv8_kernel, W=W8),
        out_shape=jax.ShapeDtypeStruct((B, M8, Cout), jnp.bfloat16),
        grid=(B,),
        in_specs=[
            pl.BlockSpec((1, M16, C16), lambda b: (b, 0, 0)),
            pl.BlockSpec((1, M8, C8), lambda b: (b, 0, 0)),
            pl.BlockSpec((M8, M16), lambda b: (0, 0)),
            pl.BlockSpec((C16, Cmid), lambda b: (0, 0)),
            pl.BlockSpec((1, Cmid), lambda b: (0, 0)),
            pl.BlockSpec((1, Cmid), lambda b: (0, 0)),
            pl.BlockSpec((C8, Cmid), lambda b: (0, 0)),
            pl.BlockSpec((1, Cmid), lambda b: (0, 0)),
            pl.BlockSpec((1, Cmid), lambda b: (0, 0)),
            pl.BlockSpec((3, Cmid, 3 * 128), lambda b: (0, 0, 0)),
            pl.BlockSpec((1, Cout), lambda b: (0, 0)),
            pl.BlockSpec((1, Cout), lambda b: (0, 0)),
        ],
        out_specs=pl.BlockSpec((1, M8, Cout), lambda b: (b, 0, 0)),
        compiler_params=pltpu.CompilerParams(
            dimension_semantics=("parallel",),
            vmem_limit_bytes=32 * 1024 * 1024),
    )(x16.reshape(B, M16, C16), x8.reshape(B, M8, C8), u16,
      p['head16_w'], p['head16_s'], p['head16_b'],
      p['head8_w'], p['head8_s'], p['head8_b'],
      p['conv8_wp'], p['conv8_s'], p['conv8_b'])


def conv4_cls_fused(y8, x4, hw8, p):
    """y8: (B, H8*W8, 64) bf16, x4: (B, H4, W4, C4) bf16 -> (B, H4*W4, CP) f32."""
    B, H4, W4, C4 = x4.shape
    H8, W8 = hw8
    M4, M8 = H4 * W4, H8 * W8
    Cy = y8.shape[-1]                       # 64
    Ch4 = p['head4_w'].shape[1]             # 8
    Cout = p['conv4_s'].shape[-1]           # 64
    CP = p['cls_w'].shape[-1]               # 8 (lane-padded num_classes)
    u8 = _bilinear_kron(H4, W4, H8, W8)     # (M4, M8)

    return pl.pallas_call(
        functools.partial(_conv4_kernel, W=W4),
        out_shape=jax.ShapeDtypeStruct((B, M4, CP), jnp.float32),
        grid=(B,),
        in_specs=[
            pl.BlockSpec((1, M8, Cy), lambda b: (b, 0, 0)),
            pl.BlockSpec((1, M4, C4), lambda b: (b, 0, 0)),
            pl.BlockSpec((M4, M8), lambda b: (0, 0)),
            pl.BlockSpec((C4, Ch4), lambda b: (0, 0)),
            pl.BlockSpec((1, Ch4), lambda b: (0, 0)),
            pl.BlockSpec((1, Ch4), lambda b: (0, 0)),
            pl.BlockSpec((3, Cy + Ch4, 3 * 128), lambda b: (0, 0, 0)),
            pl.BlockSpec((1, Cout), lambda b: (0, 0)),
            pl.BlockSpec((1, Cout), lambda b: (0, 0)),
            pl.BlockSpec((Cout, CP), lambda b: (0, 0)),
            pl.BlockSpec((1, CP), lambda b: (0, 0)),
        ],
        out_specs=pl.BlockSpec((1, M4, CP), lambda b: (b, 0, 0)),
        compiler_params=pltpu.CompilerParams(
            dimension_semantics=("parallel",),
            vmem_limit_bytes=32 * 1024 * 1024),
    )(y8, x4.reshape(B, M4, C4), u8,
      p['head4_w'], p['head4_s'], p['head4_b'],
      p['conv4_wp'], p['conv4_s'], p['conv4_b'],
      p['cls_w'], p['cls_b'])


# ------------------------------- Parameters --------------------------------- #

def _bn_fold(key, c, eps=1e-5):
    k1, k2, k3, k4 = jax.random.split(key, 4)
    gamma = 1.0 + 0.1 * jax.random.normal(k1, (c,), jnp.float32)
    beta = 0.1 * jax.random.normal(k2, (c,), jnp.float32)
    mean = 0.1 * jax.random.normal(k3, (c,), jnp.float32)
    var = 0.5 + jnp.abs(jax.random.normal(k4, (c,), jnp.float32))
    scale = gamma / jnp.sqrt(var + eps)
    bias = beta - mean * scale
    return scale.reshape(1, c), bias.reshape(1, c)


def init_params(key, channels, header_out, num_classes):
    c4, c8, c16 = channels
    h16o, h8o, h4o = header_out        # forced to (128, 128, 8) by conv8/conv4
    keys = jax.random.split(key, 12)

    def w1x1(k, cin, cout):
        return (jax.random.normal(k, (cin, cout), jnp.float32)
                / jnp.sqrt(cin)).astype(jnp.bfloat16)

    p = {}
    p['head16_w'] = w1x1(keys[0], c16, h16o)
    p['head16_s'], p['head16_b'] = _bn_fold(keys[1], h16o)
    p['head8_w'] = w1x1(keys[2], c8, h8o)
    p['head8_s'], p['head8_b'] = _bn_fold(keys[3], h8o)
    p['head4_w'] = w1x1(keys[4], c4, h4o)
    p['head4_s'], p['head4_b'] = _bn_fold(keys[5], h4o)

    conv8_w = (jax.random.normal(keys[6], (3, 3, 128, 64), jnp.float32)
               / jnp.sqrt(9 * 128))
    p['conv8_wp'] = _pack_conv3x3(conv8_w.astype(jnp.bfloat16))
    p['conv8_s'], p['conv8_b'] = _bn_fold(keys[7], 64)

    # conv4 input channel order matches torch.cat((x8_up, x4_head), dim=1).
    conv4_w = (jax.random.normal(keys[8], (3, 3, 64 + h4o, 64), jnp.float32)
               / jnp.sqrt(9 * (64 + h4o)))
    p['conv4_wp'] = _pack_conv3x3(conv4_w.astype(jnp.bfloat16))
    p['conv4_s'], p['conv4_b'] = _bn_fold(keys[9], 64)

    # classifier: pad num_classes only to 8 lanes (masked stores beat 16-25x
    # f32 write amplification of a 128-lane pad).
    cls_pad = max(8, ((num_classes + 7) // 8) * 8)
    cls_w = jax.random.normal(keys[10], (64, num_classes), jnp.float32) / jnp.sqrt(64)
    cls_b = 0.1 * jax.random.normal(keys[11], (num_classes,), jnp.float32)
    p['cls_w'] = jnp.zeros((64, cls_pad), jnp.float32).at[:, :num_classes].set(cls_w)
    p['cls_b'] = jnp.zeros((1, cls_pad), jnp.float32).at[:, :num_classes].set(cls_b)
    return p


# -------------------------------- Forward ----------------------------------- #

@functools.partial(jax.jit, static_argnames=("num_classes",))
def decoder26_forward(params, x4_nchw, x8_nchw, x16_nchw, *, num_classes):
    # bf16 cast before the NCHW -> NHWC transpose (halves transpose bytes).
    x4 = jnp.transpose(x4_nchw.astype(jnp.bfloat16), (0, 2, 3, 1))
    x8 = jnp.transpose(x8_nchw.astype(jnp.bfloat16), (0, 2, 3, 1))
    x16 = jnp.transpose(x16_nchw.astype(jnp.bfloat16), (0, 2, 3, 1))
    B, H4, W4, _ = x4.shape
    _, H8, W8, _ = x8.shape

    # kernel 1: head16 + bilinear up + head8 + add + conv8 (coarse grid output)
    y8 = conv8_fused(x16, x8, params)                     # (B, H8*W8, 64) bf16
    # kernel 2: bilinear up + head4 + concat + conv4 + classifier
    out = conv4_cls_fused(y8, x4, (H8, W8), params)       # (B, H4*W4, CP) f32

    out = out.reshape(B, H4, W4, -1)[..., :num_classes]
    return jnp.transpose(out, (0, 3, 1, 2))               # back to NCHW


# ---------------------------------- Main ------------------------------------ #

if __name__ == "__main__":
    key = jax.random.PRNGKey(0)
    B = 2
    channels = (16, 24, 32)          # (channels4, channels8, channels16)
    header_out = (128, 128, 8)       # forced by conv8(128->64) / conv4(64+8->64)
    num_classes = 5
    H4 = W4 = 16

    k_in, k_p = jax.random.split(key)
    k4, k8, k16 = jax.random.split(k_in, 3)
    x4 = jax.random.normal(k4, (B, channels[0], H4, W4), jnp.float32)
    x8 = jax.random.normal(k8, (B, channels[1], H4 // 2, W4 // 2), jnp.float32)
    x16 = jax.random.normal(k16, (B, channels[2], H4 // 4, W4 // 4), jnp.float32)

    params = init_params(k_p, channels, header_out, num_classes)

    out = decoder26_forward(params, x4, x8, x16, num_classes=num_classes)
    out = jax.block_until_ready(out)
    assert out.shape == (B, num_classes, H4, W4), out.shape
    assert bool(jnp.all(jnp.isfinite(out)))
    print("KERNEL_OK")
</pallas_src>

<mosaic_0001>
module attributes {stable_mosaic.version = 11 : i64} {
  func.func @_conv8_kernel(%arg0: i32, %arg1: memref<1x16x32xbf16, #tpu.memory_space<vmem>>, %arg2: memref<1x64x24xbf16, #tpu.memory_space<vmem>>, %arg3: memref<64x16xbf16, #tpu.memory_space<vmem>>, %arg4: memref<32x128xbf16, #tpu.memory_space<vmem>>, %arg5: memref<1x128xf32, #tpu.memory_space<vmem>>, %arg6: memref<1x128xf32, #tpu.memory_space<vmem>>, %arg7: memref<24x128xbf16, #tpu.memory_space<vmem>>, %arg8: memref<1x128xf32, #tpu.memory_space<vmem>>, %arg9: memref<1x128xf32, #tpu.memory_space<vmem>>, %arg10: memref<3x128x384xbf16, #tpu.memory_space<vmem>>, %arg11: memref<1x64xf32, #tpu.memory_space<vmem>>, %arg12: memref<1x64xf32, #tpu.memory_space<vmem>>, %arg13: memref<1x64x64xbf16, #tpu.memory_space<vmem>>) attributes {dimension_semantics = [#tpu.dimension_semantics<parallel>], iteration_bounds = array<i64: 2>, scalar_prefetch = 0 : i64, scratch_operands = 0 : i64, tpu.core_type = #tpu.core_type<tc>, window_params = [{transform_indices = @transform_0, window_bounds = array<i64: 1, 16, 32>}, {transform_indices = @transform_1, window_bounds = array<i64: 1, 64, 24>}, {pipeline_mode = #tpu.pipeline_mode<synchronous>, transform_indices = @transform_2, window_bounds = array<i64: 64, 16>}, {pipeline_mode = #tpu.pipeline_mode<synchronous>, transform_indices = @transform_3, window_bounds = array<i64: 32, 128>}, {pipeline_mode = #tpu.pipeline_mode<synchronous>, transform_indices = @transform_4, window_bounds = array<i64: 1, 128>}, {pipeline_mode = #tpu.pipeline_mode<synchronous>, transform_indices = @transform_5, window_bounds = array<i64: 1, 128>}, {pipeline_mode = #tpu.pipeline_mode<synchronous>, transform_indices = @transform_6, window_bounds = array<i64: 24, 128>}, {pipeline_mode = #tpu.pipeline_mode<synchronous>, transform_indices = @transform_7, window_bounds = array<i64: 1, 128>}, {pipeline_mode = #tpu.pipeline_mode<synchronous>, transform_indices = @transform_8, window_bounds = array<i64: 1, 128>}, {pipeline_mode = #tpu.pipeline_mode<synchronous>, transform_indices = @transform_9, window_bounds = array<i64: 3, 128, 384>}, {pipeline_mode = #tpu.pipeline_mode<synchronous>, transform_indices = @transform_10, window_bounds = array<i64: 1, 64>}, {pipeline_mode = #tpu.pipeline_mode<synchronous>, transform_indices = @transform_11, window_bounds = array<i64: 1, 64>}, {transform_indices = @transform_12, window_bounds = array<i64: 1, 64, 64>}]} {
    %c0 = arith.constant 0 : index
    %c0_0 = arith.constant 0 : index
    %c0_1 = arith.constant 0 : index
    %0 = vector.load %arg1[%c0, %c0_0, %c0_1] : memref<1x16x32xbf16, #tpu.memory_space<vmem>>, vector<1x16x32xbf16>
    %1 = vector.shape_cast %0 : vector<1x16x32xbf16> to vector<16x32xbf16>
    %c0_2 = arith.constant 0 : index
    %c0_3 = arith.constant 0 : index
    %2 = vector.load %arg4[%c0_2, %c0_3] : memref<32x128xbf16, #tpu.memory_space<vmem>>, vector<32x128xbf16>
    %cst = arith.constant dense<0.000000e+00> : vector<16x128xf32>
    %3 = tpu.matmul %1, %2, %cst {dimension_numbers = #tpu.dot_dimension_numbers<[1], [0], [0], [1], [0, 0, 1, 1], [], []>} : vector<16x32xbf16>, vector<32x128xbf16>, vector<16x128xf32> -> vector<16x128xf32>
    %c0_4 = arith.constant 0 : index
    %c0_5 = arith.constant 0 : index
    %4 = vector.load %arg5[%c0_4, %c0_5] : memref<1x128xf32, #tpu.memory_space<vmem>>, vector<1x128xf32>
    %5 = vector.broadcast %4 : vector<1x128xf32> to vector<16x128xf32>
    %6 = arith.mulf %3, %5 : vector<16x128xf32>
    %c0_6 = arith.constant 0 : index
    %c0_7 = arith.constant 0 : index
    %7 = vector.load %arg6[%c0_6, %c0_7] : memref<1x128xf32, #tpu.memory_space<vmem>>, vector<1x128xf32>
    %8 = vector.broadcast %7 : vector<1x128xf32> to vector<16x128xf32>
    %9 = arith.addf %6, %8 : vector<16x128xf32>
    %cst_8 = arith.constant 0.000000e+00 : f32
    %10 = vector.broadcast %cst_8 : f32 to vector<16x128xf32>
    %11 = arith.maximumf %9, %10 : vector<16x128xf32>
    %c0_9 = arith.constant 0 : index
    %c0_10 = arith.constant 0 : index
    %12 = vector.load %arg3[%c0_9, %c0_10] : memref<64x16xbf16, #tpu.memory_space<vmem>>, vector<64x16xbf16>
    %13 = arith.truncf %11 : vector<16x128xf32> to vector<16x128xbf16>
    %cst_11 = arith.constant dense<0.000000e+00> : vector<64x128xf32>
    %14 = tpu.matmul %12, %13, %cst_11 {dimension_numbers = #tpu.dot_dimension_numbers<[1], [0], [0], [1], [0, 0, 1, 1], [], []>} : vector<64x16xbf16>, vector<16x128xbf16>, vector<64x128xf32> -> vector<64x128xf32>
    %c0_12 = arith.constant 0 : index
    %c0_13 = arith.constant 0 : index
    %c0_14 = arith.constant 0 : index
    %15 = vector.load %arg2[%c0_12, %c0_13, %c0_14] : memref<1x64x24xbf16, #tpu.memory_space<vmem>>, vector<1x64x24xbf16>
    %16 = vector.shape_cast %15 : vector<1x64x24xbf16> to vector<64x24xbf16>
    %c0_15 = arith.constant 0 : index
    %c0_16 = arith.constant 0 : index
    %17 = vector.load %arg7[%c0_15, %c0_16] : memref<24x128xbf16, #tpu.memory_space<vmem>>, vector<24x128xbf16>
    %cst_17 = arith.constant dense<0.000000e+00> : vector<64x128xf32>
    %18 = tpu.matmul %16, %17, %cst_17 {dimension_numbers = #tpu.dot_dimension_numbers<[1], [0], [0], [1], [0, 0, 1, 1], [], []>} : vector<64x24xbf16>, vector<24x128xbf16>, vector<64x128xf32> -> vector<64x128xf32>
    %c0_18 = arith.constant 0 : index
    %c0_19 = arith.constant 0 : index
    %19 = vector.load %arg8[%c0_18, %c0_19] : memref<1x128xf32, #tpu.memory_space<vmem>>, vector<1x128xf32>
    %20 = vector.broadcast %19 : vector<1x128xf32> to vector<64x128xf32>
    %21 = arith.mulf %18, %20 : vector<64x128xf32>
    %c0_20 = arith.constant 0 : index
    %c0_21 = arith.constant 0 : index
    %22 = vector.load %arg9[%c0_20, %c0_21] : memref<1x128xf32, #tpu.memory_space<vmem>>, vector<1x128xf32>
    %23 = vector.broadcast %22 : vector<1x128xf32> to vector<64x128xf32>
    %24 = arith.addf %21, %23 : vector<64x128xf32>
    %cst_22 = arith.constant 0.000000e+00 : f32
    %25 = vector.broadcast %cst_22 : f32 to vector<64x128xf32>
    %26 = arith.maximumf %24, %25 : vector<64x128xf32>
    %27 = arith.addf %26, %14 : vector<64x128xf32>
    %28 = arith.truncf %27 : vector<64x128xf32> to vector<64x128xbf16>
    %29 = tpu.iota {dimensions = array<i32: 0>} : vector<64x1xi32>
    %c8_i32 = arith.constant 8 : i32
    %c0_i32 = arith.constant 0 : i32
    %30 = arith.cmpi eq, %c8_i32, %c0_i32 : i32
    %c1_i32 = arith.constant 1 : i32
    %31 = arith.select %30, %c1_i32, %c8_i32 : i32
    %32 = vector.broadcast %31 : i32 to vector<64x1xi32>
    %33 = arith.remsi %29, %32 : vector<64x1xi32>
    %c0_i32_23 = arith.constant 0 : i32
    %34 = vector.broadcast %c0_i32_23 : i32 to vector<64x1xi32>
    %35 = arith.cmpi ne, %33, %34 : vector<64x1xi32>
    %c0_i32_24 = arith.constant 0 : i32
    %36 = vector.broadcast %c0_i32_24 : i32 to vector<64x1xi32>
    %37 = arith.cmpi slt, %33, %36 : vector<64x1xi32>
    %c0_i32_25 = arith.constant 0 : i32
    %38 = arith.cmpi slt, %31, %c0_i32_25 : i32
    %39 = vector.broadcast %38 : i1 to vector<64x1xi1>
    %40 = vector.broadcast %39 : vector<64x1xi1> to vector<64x1xi1>
    %41 = arith.xori %37, %40 : vector<64x1xi1>
    %42 = arith.andi %41, %35 : vector<64x1xi1>
    %43 = vector.broadcast %31 : i32 to vector<64x1xi32>
    %44 = arith.addi %33, %43 : vector<64x1xi32>
    %45 = arith.select %42, %44, %33 : vector<64x1xi1>, vector<64x1xi32>
    %c0_i32_26 = arith.constant 0 : i32
    %46 = vector.broadcast %c0_i32_26 : i32 to vector<64x1xi32>
    %47 = arith.cmpi ne, %45, %46 : vector<64x1xi32>
    %48 = arith.extui %47 : vector<64x1xi1> to vector<64x1xi32>
    %49 = arith.sitofp %48 : vector<64x1xi32> to vector<64x1xf32>
    %50 = arith.truncf %49 : vector<64x1xf32> to vector<64x1xbf16>
    %c7_i32 = arith.constant 7 : i32
    %51 = vector.broadcast %c7_i32 : i32 to vector<64x1xi32>
    %52 = arith.cmpi ne, %45, %51 : vector<64x1xi32>
    %53 = arith.extui %52 : vector<64x1xi1> to vector<64x1xi32>
    %54 = arith.sitofp %53 : vector<64x1xi32> to vector<64x1xf32>
    %55 = arith.truncf %54 : vector<64x1xf32> to vector<64x1xbf16>
    %56 = vector.extract_strided_slice %28 {offsets = [63, 0], sizes = [1, 128], strides = [1, 1]} : vector<64x128xbf16> to vector<1x128xbf16>
    %57 = vector.extract_strided_slice %28 {offsets = [0, 0], sizes = [63, 128], strides = [1, 1]} : vector<64x128xbf16> to vector<63x128xbf16>
    %58 = tpu.concatenate %56, %57 in 0 : vector<1x128xbf16>, vector<63x128xbf16> -> vector<64x128xbf16>
    %59 = vector.broadcast %50 : vector<64x1xbf16> to vector<64x128xbf16>
    %60 = arith.mulf %58, %59 : vector<64x128xbf16>
    %61 = vector.extract_strided_slice %28 {offsets = [1, 0], sizes = [63, 128], strides = [1, 1]} : vector<64x128xbf16> to vector<63x128xbf16>
    %62 = vector.extract_strided_slice %28 {offsets = [0, 0], sizes = [1, 128], strides = [1, 1]} : vector<64x128xbf16> to vector<1x128xbf16>
    %63 = tpu.concatenate %61, %62 in 0 : vector<63x128xbf16>, vector<1x128xbf16> -> vector<64x128xbf16>
    %64 = vector.broadcast %55 : vector<64x1xbf16> to vector<64x128xbf16>
    %65 = arith.mulf %63, %64 : vector<64x128xbf16>
    %c0_27 = arith.constant 0 : index
    %c0_28 = arith.constant 0 : index
    %c0_29 = arith.constant 0 : index
    %66 = vector.load %arg10[%c0_27, %c0_28, %c0_29] : memref<3x128x384xbf16, #tpu.memory_space<vmem>>, vector<1x128x384xbf16>
    %67 = vector.shape_cast %66 : vector<1x128x384xbf16> to vector<128x384xbf16>
    %cst_30 = arith.constant dense<0.000000e+00> : vector<64x384xf32>
    %68 = tpu.matmul %60, %67, %cst_30 {dimension_numbers = #tpu.dot_dimension_numbers<[1], [0], [0], [1], [0, 0, 1, 1], [], []>} : vector<64x128xbf16>, vector<128x384xbf16>, vector<64x384xf32> -> vector<64x384xf32>
    %c1 = arith.constant 1 : index
    %c0_31 = arith.constant 0 : index
    %c0_32 = arith.constant 0 : index
    %69 = vector.load %arg10[%c1, %c0_31, %c0_32] : memref<3x128x384xbf16, #tpu.memory_space<vmem>>, vector<1x128x384xbf16>
    %70 = vector.shape_cast %69 : vector<1x128x384xbf16> to vector<128x384xbf16>
    %cst_33 = arith.constant dense<0.000000e+00> : vector<64x384xf32>
    %71 = tpu.matmul %28, %70, %cst_33 {dimension_numbers = #tpu.dot_dimension_numbers<[1], [0], [0], [1], [0, 0, 1, 1], [], []>} : vector<64x128xbf16>, vector<128x384xbf16>, vector<64x384xf32> -> vector<64x384xf32>
    %72 = arith.addf %68, %71 : vector<64x384xf32>
    %c2 = arith.constant 2 : index
    %c0_34 = arith.constant 0 : index
    %c0_35 = arith.constant 0 : index
    %73 = vector.load %arg10[%c2, %c0_34, %c0_35] : memref<3x128x384xbf16, #tpu.memory_space<vmem>>, vector<1x128x384xbf16>
    %74 = vector.shape_cast %73 : vector<1x128x384xbf16> to vector<128x384xbf16>
    %cst_36 = arith.constant dense<0.000000e+00> : vector<64x384xf32>
    %75 = tpu.matmul %65, %74, %cst_36 {dimension_numbers = #tpu.dot_dimension_numbers<[1], [0], [0], [1], [0, 0, 1, 1], [], []>} : vector<64x128xbf16>, vector<128x384xbf16>, vector<64x384xf32> -> vector<64x384xf32>
    %76 = arith.addf %72, %75 : vector<64x384xf32>
    %cst_37 = arith.constant 0.000000e+00 : f32
    %77 = vector.broadcast %cst_37 : f32 to vector<8x128xf32>
    %78 = vector.extract_strided_slice %76 {offsets = [0, 128], sizes = [64, 128], strides = [1, 1]} : vector<64x384xf32> to vector<64x128xf32>
    %79 = vector.extract_strided_slice %76 {offsets = [0, 0], sizes = [56, 128], strides = [1, 1]} : vector<64x384xf32> to vector<56x128xf32>
    %80 = tpu.concatenate %77, %79 in 0 : vector<8x128xf32>, vector<56x128xf32> -> vector<64x128xf32>
    %81 = arith.addf %78, %80 : vector<64x128xf32>
    %82 = vector.extract_strided_slice %76 {offsets = [8, 256], sizes = [56, 128], strides = [1, 1]} : vector<64x384xf32> to vector<56x128xf32>
    %83 = tpu.concatenate %82, %77 in 0 : vector<56x128xf32>, vector<8x128xf32> -> vector<64x128xf32>
    %84 = arith.addf %81, %83 : vector<64x128xf32>
    %85 = vector.extract_strided_slice %84 {offsets = [0, 0], sizes = [64, 64], strides = [1, 1]} : vector<64x128xf32> to vector<64x64xf32>
    %c0_38 = arith.constant 0 : index
    %c0_39 = arith.constant 0 : index
    %86 = vector.load %arg11[%c0_38, %c0_39] : memref<1x64xf32, #tpu.memory_space<vmem>>, vector<1x64xf32>
    %87 = vector.broadcast %86 : vector<1x64xf32> to vector<64x64xf32>
    %88 = arith.mulf %85, %87 : vector<64x64xf32>
    %c0_40 = arith.constant 0 : index
    %c0_41 = arith.constant 0 : index
    %89 = vector.load %arg12[%c0_40, %c0_41] : memref<1x64xf32, #tpu.memory_space<vmem>>, vector<1x64xf32>
    %90 = vector.broadcast %89 : vector<1x64xf32> to vector<64x64xf32>
    %91 = arith.addf %88, %90 : vector<64x64xf32>
    %cst_42 = arith.constant 0.000000e+00 : f32
    %92 = vector.broadcast %cst_42 : f32 to vector<64x64xf32>
    %93 = arith.maximumf %91, %92 : vector<64x64xf32>
    %94 = arith.truncf %93 : vector<64x64xf32> to vector<64x64xbf16>
    %c0_43 = arith.constant 0 : index
    %c0_44 = arith.constant 0 : index
    %c0_45 = arith.constant 0 : index
    %95 = vector.load %arg13[%c0_43, %c0_44, %c0_45] : memref<1x64x64xbf16, #tpu.memory_space<vmem>>, vector<1x64x64xbf16>
    %96 = vector.shape_cast %95 : vector<1x64x64xbf16> to vector<64x64xbf16>
    %97 = vector.shape_cast %94 : vector<64x64xbf16> to vector<1x64x64xbf16>
    tpu.vector_store %arg13[%c0_43, %c0_44, %c0_45], %97 {strides = array<i32>} : memref<1x64x64xbf16, #tpu.memory_space<vmem>>, vector<1x64x64xbf16>,
    return
  }
  func.func @transform_0(%arg0: i32) -> (i32, i32, i32) {
    %c0_i32 = arith.constant 0 : i32
    %c0_i32_0 = arith.constant 0 : i32
    %c0_i32_1 = arith.constant 0 : i32
    return %arg0, %c0_i32, %c0_i32_0 : i32, i32, i32
  }
  func.func @transform_1(%arg0: i32) -> (i32, i32, i32) {
    %c0_i32 = arith.constant 0 : i32
    %c0_i32_0 = arith.constant 0 : i32
    %c0_i32_1 = arith.constant 0 : i32
    return %arg0, %c0_i32, %c0_i32_0 : i32, i32, i32
  }
  func.func @transform_2(%arg0: i32) -> (i32, i32) {
    %c0_i32 = arith.constant 0 : i32
    %c0_i32_0 = arith.constant 0 : i32
    %c0_i32_1 = arith.constant 0 : i32
    return %c0_i32, %c0_i32_0 : i32, i32
  }
  func.func @transform_3(%arg0: i32) -> (i32, i32) {
    %c0_i32 = arith.constant 0 : i32
    %c0_i32_0 = arith.constant 0 : i32
    %c0_i32_1 = arith.constant 0 : i32
    return %c0_i32, %c0_i32_0 : i32, i32
  }
  func.func @transform_4(%arg0: i32) -> (i32, i32) {
    %c0_i32 = arith.constant 0 : i32
    %c0_i32_0 = arith.constant 0 : i32
    %c0_i32_1 = arith.constant 0 : i32
    return %c0_i32, %c0_i32_0 : i32, i32
  }
  func.func @transform_5(%arg0: i32) -> (i32, i32) {
    %c0_i32 = arith.constant 0 : i32
    %c0_i32_0 = arith.constant 0 : i32
    %c0_i32_1 = arith.constant 0 : i32
    return %c0_i32, %c0_i32_0 : i32, i32
  }
  func.func @transform_6(%arg0: i32) -> (i32, i32) {
    %c0_i32 = arith.constant 0 : i32
    %c0_i32_0 = arith.constant 0 : i32
    %c0_i32_1 = arith.constant 0 : i32
    return %c0_i32, %c0_i32_0 : i32, i32
  }
  func.func @transform_7(%arg0: i32) -> (i32, i32) {
    %c0_i32 = arith.constant 0 : i32
    %c0_i32_0 = arith.constant 0 : i32
    %c0_i32_1 = arith.constant 0 : i32
    return %c0_i32, %c0_i32_0 : i32, i32
  }
  func.func @transform_8(%arg0: i32) -> (i32, i32) {
    %c0_i32 = arith.constant 0 : i32
    %c0_i32_0 = arith.constant 0 : i32
    %c0_i32_1 = arith.constant 0 : i32
    return %c0_i32, %c0_i32_0 : i32, i32
  }
  func.func @transform_9(%arg0: i32) -> (i32, i32, i32) {
    %c0_i32 = arith.constant 0 : i32
    %c0_i32_0 = arith.constant 0 : i32
    %c0_i32_1 = arith.constant 0 : i32
    %c0_i32_2 = arith.constant 0 : i32
    return %c0_i32, %c0_i32_0, %c0_i32_1 : i32, i32, i32
  }
  func.func @transform_10(%arg0: i32) -> (i32, i32) {
    %c0_i32 = arith.constant 0 : i32
    %c0_i32_0 = arith.constant 0 : i32
    %c0_i32_1 = arith.constant 0 : i32
    return %c0_i32, %c0_i32_0 : i32, i32
  }
  func.func @transform_11(%arg0: i32) -> (i32, i32) {
    %c0_i32 = arith.constant 0 : i32
    %c0_i32_0 = arith.constant 0 : i32
    %c0_i32_1 = arith.constant 0 : i32
    return %c0_i32, %c0_i32_0 : i32, i32
  }
  func.func @transform_12(%arg0: i32) -> (i32, i32, i32) {
    %c0_i32 = arith.constant 0 : i32
    %c0_i32_0 = arith.constant 0 : i32
    %c0_i32_1 = arith.constant 0 : i32
    return %arg0, %c0_i32, %c0_i32_0 : i32, i32, i32
  }
}

module attributes {stable_mosaic.version = 11 : i64} {
  func.func @_conv4_kernel(%arg0: i32, %arg1: memref<1x64x64xbf16, #tpu.memory_space<vmem>>, %arg2: memref<1x256x16xbf16, #tpu.memory_space<vmem>>, %arg3: memref<256x64xbf16, #tpu.memory_space<vmem>>, %arg4: memref<16x8xbf16, #tpu.memory_space<vmem>>, %arg5: memref<1x8xf32, #tpu.memory_space<vmem>>, %arg6: memref<1x8xf32, #tpu.memory_space<vmem>>, %arg7: memref<3x72x384xbf16, #tpu.memory_space<vmem>>, %arg8: memref<1x64xf32, #tpu.memory_space<vmem>>, %arg9: memref<1x64xf32, #tpu.memory_space<vmem>>, %arg10: memref<64x8xf32, #tpu.memory_space<vmem>>, %arg11: memref<1x8xf32, #tpu.memory_space<vmem>>, %arg12: memref<1x256x8xf32, #tpu.memory_space<vmem>>) attributes {dimension_semantics = [#tpu.dimension_semantics<parallel>], iteration_bounds = array<i64: 2>, scalar_prefetch = 0 : i64, scratch_operands = 0 : i64, tpu.core_type = #tpu.core_type<tc>, window_params = [{transform_indices = @transform_0, window_bounds = array<i64: 1, 64, 64>}, {transform_indices = @transform_1, window_bounds = array<i64: 1, 256, 16>}, {pipeline_mode = #tpu.pipeline_mode<synchronous>, transform_indices = @transform_2, window_bounds = array<i64: 256, 64>}, {pipeline_mode = #tpu.pipeline_mode<synchronous>, transform_indices = @transform_3, window_bounds = array<i64: 16, 8>}, {pipeline_mode = #tpu.pipeline_mode<synchronous>, transform_indices = @transform_4, window_bounds = array<i64: 1, 8>}, {pipeline_mode = #tpu.pipeline_mode<synchronous>, transform_indices = @transform_5, window_bounds = array<i64: 1, 8>}, {pipeline_mode = #tpu.pipeline_mode<synchronous>, transform_indices = @transform_6, window_bounds = array<i64: 3, 72, 384>}, {pipeline_mode = #tpu.pipeline_mode<synchronous>, transform_indices = @transform_7, window_bounds = array<i64: 1, 64>}, {pipeline_mode = #tpu.pipeline_mode<synchronous>, transform_indices = @transform_8, window_bounds = array<i64: 1, 64>}, {pipeline_mode = #tpu.pipeline_mode<synchronous>, transform_indices = @transform_9, window_bounds = array<i64: 64, 8>}, {pipeline_mode = #tpu.pipeline_mode<synchronous>, transform_indices = @transform_10, window_bounds = array<i64: 1, 8>}, {transform_indices = @transform_11, window_bounds = array<i64: 1, 256, 8>}]} {
    %c0 = arith.constant 0 : index
    %c0_0 = arith.constant 0 : index
    %0 = vector.load %arg3[%c0, %c0_0] : memref<256x64xbf16, #tpu.memory_space<vmem>>, vector<256x64xbf16>
    %c0_1 = arith.constant 0 : index
    %c0_2 = arith.constant 0 : index
    %c0_3 = arith.constant 0 : index
    %1 = vector.load %arg1[%c0_1, %c0_2, %c0_3] : memref<1x64x64xbf16, #tpu.memory_space<vmem>>, vector<1x64x64xbf16>
    %2 = vector.shape_cast %1 : vector<1x64x64xbf16> to vector<64x64xbf16>
    %cst = arith.constant dense<0.000000e+00> : vector<256x64xf32>
    %3 = tpu.matmul %0, %2, %cst {dimension_numbers = #tpu.dot_dimension_numbers<[1], [0], [0], [1], [0, 0, 1, 1], [], []>} : vector<256x64xbf16>, vector<64x64xbf16>, vector<256x64xf32> -> vector<256x64xf32>
    %c0_4 = arith.constant 0 : index
    %c0_5 = arith.constant 0 : index
    %c0_6 = arith.constant 0 : index
    %4 = vector.load %arg2[%c0_4, %c0_5, %c0_6] : memref<1x256x16xbf16, #tpu.memory_space<vmem>>, vector<1x256x16xbf16>
    %5 = vector.shape_cast %4 : vector<1x256x16xbf16> to vector<256x16xbf16>
    %c0_7 = arith.constant 0 : index
    %c0_8 = arith.constant 0 : index
    %6 = vector.load %arg4[%c0_7, %c0_8] : memref<16x8xbf16, #tpu.memory_space<vmem>>, vector<16x8xbf16>
    %cst_9 = arith.constant dense<0.000000e+00> : vector<256x8xf32>
    %7 = tpu.matmul %5, %6, %cst_9 {dimension_numbers = #tpu.dot_dimension_numbers<[1], [0], [0], [1], [0, 0, 1, 1], [], []>} : vector<256x16xbf16>, vector<16x8xbf16>, vector<256x8xf32> -> vector<256x8xf32>
    %c0_10 = arith.constant 0 : index
    %c0_11 = arith.constant 0 : index
    %8 = vector.load %arg5[%c0_10, %c0_11] : memref<1x8xf32, #tpu.memory_space<vmem>>, vector<1x8xf32>
    %9 = vector.broadcast %8 : vector<1x8xf32> to vector<256x8xf32>
    %10 = arith.mulf %7, %9 : vector<256x8xf32>
    %c0_12 = arith.constant 0 : index
    %c0_13 = arith.constant 0 : index
    %11 = vector.load %arg6[%c0_12, %c0_13] : memref<1x8xf32, #tpu.memory_space<vmem>>, vector<1x8xf32>
    %12 = vector.broadcast %11 : vector<1x8xf32> to vector<256x8xf32>
    %13 = arith.addf %10, %12 : vector<256x8xf32>
    %cst_14 = arith.constant 0.000000e+00 : f32
    %14 = vector.broadcast %cst_14 : f32 to vector<256x8xf32>
    %15 = arith.maximumf %13, %14 : vector<256x8xf32>
    %16 = tpu.concatenate %3, %15 in 1 : vector<256x64xf32>, vector<256x8xf32> -> vector<256x72xf32>
    %17 = arith.truncf %16 : vector<256x72xf32> to vector<256x72xbf16>
    %18 = tpu.iota {dimensions = array<i32: 0>} : vector<256x1xi32>
    %c16_i32 = arith.constant 16 : i32
    %c0_i32 = arith.constant 0 : i32
    %19 = arith.cmpi eq, %c16_i32, %c0_i32 : i32
    %c1_i32 = arith.constant 1 : i32
    %20 = arith.select %19, %c1_i32, %c16_i32 : i32
    %21 = vector.broadcast %20 : i32 to vector<256x1xi32>
    %22 = arith.remsi %18, %21 : vector<256x1xi32>
    %c0_i32_15 = arith.constant 0 : i32
    %23 = vector.broadcast %c0_i32_15 : i32 to vector<256x1xi32>
    %24 = arith.cmpi ne, %22, %23 : vector<256x1xi32>
    %c0_i32_16 = arith.constant 0 : i32
    %25 = vector.broadcast %c0_i32_16 : i32 to vector<256x1xi32>
    %26 = arith.cmpi slt, %22, %25 : vector<256x1xi32>
    %c0_i32_17 = arith.constant 0 : i32
    %27 = arith.cmpi slt, %20, %c0_i32_17 : i32
    %28 = vector.broadcast %27 : i1 to vector<256x1xi1>
    %29 = vector.broadcast %28 : vector<256x1xi1> to vector<256x1xi1>
    %30 = arith.xori %26, %29 : vector<256x1xi1>
    %31 = arith.andi %30, %24 : vector<256x1xi1>
    %32 = vector.broadcast %20 : i32 to vector<256x1xi32>
    %33 = arith.addi %22, %32 : vector<256x1xi32>
    %34 = arith.select %31, %33, %22 : vector<256x1xi1>, vector<256x1xi32>
    %c0_i32_18 = arith.constant 0 : i32
    %35 = vector.broadcast %c0_i32_18 : i32 to vector<256x1xi32>
    %36 = arith.cmpi ne, %34, %35 : vector<256x1xi32>
    %37 = arith.extui %36 : vector<256x1xi1> to vector<256x1xi32>
    %38 = arith.sitofp %37 : vector<256x1xi32> to vector<256x1xf32>
    %39 = arith.truncf %38 : vector<256x1xf32> to vector<256x1xbf16>
    %c15_i32 = arith.constant 15 : i32
    %40 = vector.broadcast %c15_i32 : i32 to vector<256x1xi32>
    %41 = arith.cmpi ne, %34, %40 : vector<256x1xi32>
    %42 = arith.extui %41 : vector<256x1xi1> to vector<256x1xi32>
    %43 = arith.sitofp %42 : vector<256x1xi32> to vector<256x1xf32>
    %44 = arith.truncf %43 : vector<256x1xf32> to vector<256x1xbf16>
    %45 = vector.extract_strided_slice %17 {offsets = [255, 0], sizes = [1, 72], strides = [1, 1]} : vector<256x72xbf16> to vector<1x72xbf16>
    %46 = vector.extract_strided_slice %17 {offsets = [0, 0], sizes = [255, 72], strides = [1, 1]} : vector<256x72xbf16> to vector<255x72xbf16>
    %47 = tpu.concatenate %45, %46 in 0 : vector<1x72xbf16>, vector<255x72xbf16> -> vector<256x72xbf16>
    %48 = vector.broadcast %39 : vector<256x1xbf16> to vector<256x72xbf16>
    %49 = arith.mulf %47, %48 : vector<256x72xbf16>
    %50 = vector.extract_strided_slice %17 {offsets = [1, 0], sizes = [255, 72], strides = [1, 1]} : vector<256x72xbf16> to vector<255x72xbf16>
    %51 = vector.extract_strided_slice %17 {offsets = [0, 0], sizes = [1, 72], strides = [1, 1]} : vector<256x72xbf16> to vector<1x72xbf16>
    %52 = tpu.concatenate %50, %51 in 0 : vector<255x72xbf16>, vector<1x72xbf16> -> vector<256x72xbf16>
    %53 = vector.broadcast %44 : vector<256x1xbf16> to vector<256x72xbf16>
    %54 = arith.mulf %52, %53 : vector<256x72xbf16>
    %c0_19 = arith.constant 0 : index
    %c0_20 = arith.constant 0 : index
    %c0_21 = arith.constant 0 : index
    %55 = vector.load %arg7[%c0_19, %c0_20, %c0_21] : memref<3x72x384xbf16, #tpu.memory_space<vmem>>, vector<1x72x384xbf16>
    %56 = vector.shape_cast %55 : vector<1x72x384xbf16> to vector<72x384xbf16>
    %cst_22 = arith.constant dense<0.000000e+00> : vector<256x384xf32>
    %57 = tpu.matmul %49, %56, %cst_22 {dimension_numbers = #tpu.dot_dimension_numbers<[1], [0], [0], [1], [0, 0, 1, 1], [], []>} : vector<256x72xbf16>, vector<72x384xbf16>, vector<256x384xf32> -> vector<256x384xf32>
    %c1 = arith.constant 1 : index
    %c0_23 = arith.constant 0 : index
    %c0_24 = arith.constant 0 : index
    %58 = vector.load %arg7[%c1, %c0_23, %c0_24] : memref<3x72x384xbf16, #tpu.memory_space<vmem>>, vector<1x72x384xbf16>
    %59 = vector.shape_cast %58 : vector<1x72x384xbf16> to vector<72x384xbf16>
    %cst_25 = arith.constant dense<0.000000e+00> : vector<256x384xf32>
    %60 = tpu.matmul %17, %59, %cst_25 {dimension_numbers = #tpu.dot_dimension_numbers<[1], [0], [0], [1], [0, 0, 1, 1], [], []>} : vector<256x72xbf16>, vector<72x384xbf16>, vector<256x384xf32> -> vector<256x384xf32>
    %61 = arith.addf %57, %60 : vector<256x384xf32>
    %c2 = arith.constant 2 : index
    %c0_26 = arith.constant 0 : index
    %c0_27 = arith.constant 0 : index
    %62 = vector.load %arg7[%c2, %c0_26, %c0_27] : memref<3x72x384xbf16, #tpu.memory_space<vmem>>, vector<1x72x384xbf16>
    %63 = vector.shape_cast %62 : vector<1x72x384xbf16> to vector<72x384xbf16>
    %cst_28 = arith.constant dense<0.000000e+00> : vector<256x384xf32>
    %64 = tpu.matmul %54, %63, %cst_28 {dimension_numbers = #tpu.dot_dimension_numbers<[1], [0], [0], [1], [0, 0, 1, 1], [], []>} : vector<256x72xbf16>, vector<72x384xbf16>, vector<256x384xf32> -> vector<256x384xf32>
    %65 = arith.addf %61, %64 : vector<256x384xf32>
    %cst_29 = arith.constant 0.000000e+00 : f32
    %66 = vector.broadcast %cst_29 : f32 to vector<16x128xf32>
    %67 = vector.extract_strided_slice %65 {offsets = [0, 128], sizes = [256, 128], strides = [1, 1]} : vector<256x384xf32> to vector<256x128xf32>
    %68 = vector.extract_strided_slice %65 {offsets = [0, 0], sizes = [240, 128], strides = [1, 1]} : vector<256x384xf32> to vector<240x128xf32>
    %69 = tpu.concatenate %66, %68 in 0 : vector<16x128xf32>, vector<240x128xf32> -> vector<256x128xf32>
    %70 = arith.addf %67, %69 : vector<256x128xf32>
    %71 = vector.extract_strided_slice %65 {offsets = [16, 256], sizes = [240, 128], strides = [1, 1]} : vector<256x384xf32> to vector<240x128xf32>
    %72 = tpu.concatenate %71, %66 in 0 : vector<240x128xf32>, vector<16x128xf32> -> vector<256x128xf32>
    %73 = arith.addf %70, %72 : vector<256x128xf32>
    %74 = vector.extract_strided_slice %73 {offsets = [0, 0], sizes = [256, 64], strides = [1, 1]} : vector<256x128xf32> to vector<256x64xf32>
    %c0_30 = arith.constant 0 : index
    %c0_31 = arith.constant 0 : index
    %75 = vector.load %arg8[%c0_30, %c0_31] : memref<1x64xf32, #tpu.memory_space<vmem>>, vector<1x64xf32>
    %76 = vector.broadcast %75 : vector<1x64xf32> to vector<256x64xf32>
    %77 = arith.mulf %74, %76 : vector<256x64xf32>
    %c0_32 = arith.constant 0 : index
    %c0_33 = arith.constant 0 : index
    %78 = vector.load %arg9[%c0_32, %c0_33] : memref<1x64xf32, #tpu.memory_space<vmem>>, vector<1x64xf32>
    %79 = vector.broadcast %78 : vector<1x64xf32> to vector<256x64xf32>
    %80 = arith.addf %77, %79 : vector<256x64xf32>
    %cst_34 = arith.constant 0.000000e+00 : f32
    %81 = vector.broadcast %cst_34 : f32 to vector<256x64xf32>
    %82 = arith.maximumf %80, %81 : vector<256x64xf32>
    %c0_35 = arith.constant 0 : index
    %c0_36 = arith.constant 0 : index
    %83 = vector.load %arg10[%c0_35, %c0_36] : memref<64x8xf32, #tpu.memory_space<vmem>>, vector<64x8xf32>
    %cst_37 = arith.constant dense<0.000000e+00> : vector<256x8xf32>
    %84 = tpu.matmul %82, %83, %cst_37 {dimension_numbers = #tpu.dot_dimension_numbers<[1], [0], [0], [1], [0, 0, 1, 1], [], []>} : vector<256x64xf32>, vector<64x8xf32>, vector<256x8xf32> -> vector<256x8xf32>
    %c0_38 = arith.constant 0 : index
    %c0_39 = arith.constant 0 : index
    %85 = vector.load %arg11[%c0_38, %c0_39] : memref<1x8xf32, #tpu.memory_space<vmem>>, vector<1x8xf32>
    %86 = vector.broadcast %85 : vector<1x8xf32> to vector<256x8xf32>
    %87 = arith.addf %84, %86 : vector<256x8xf32>
    %c0_40 = arith.constant 0 : index
    %c0_41 = arith.constant 0 : index
    %c0_42 = arith.constant 0 : index
    %88 = vector.load %arg12[%c0_40, %c0_41, %c0_42] : memref<1x256x8xf32, #tpu.memory_space<vmem>>, vector<1x256x8xf32>
    %89 = vector.shape_cast %88 : vector<1x256x8xf32> to vector<256x8xf32>
    %90 = vector.shape_cast %87 : vector<256x8xf32> to vector<1x256x8xf32>
    tpu.vector_store %arg12[%c0_40, %c0_41, %c0_42], %90 {strides = array<i32>} : memref<1x256x8xf32, #tpu.memory_space<vmem>>, vector<1x256x8xf32>,
    return
  }
  func.func @transform_0(%arg0: i32) -> (i32, i32, i32) {
    %c0_i32 = arith.constant 0 : i32
    %c0_i32_0 = arith.constant 0 : i32
    %c0_i32_1 = arith.constant 0 : i32
    return %arg0, %c0_i32, %c0_i32_0 : i32, i32, i32
  }
  func.func @transform_1(%arg0: i32) -> (i32, i32, i32) {
    %c0_i32 = arith.constant 0 : i32
    %c0_i32_0 = arith.constant 0 : i32
    %c0_i32_1 = arith.constant 0 : i32
    return %arg0, %c0_i32, %c0_i32_0 : i32, i32, i32
  }
  func.func @transform_2(%arg0: i32) -> (i32, i32) {
    %c0_i32 = arith.constant 0 : i32
    %c0_i32_0 = arith.constant 0 : i32
    %c0_i32_1 = arith.constant 0 : i32
    return %c0_i32, %c0_i32_0 : i32, i32
  }
  func.func @transform_3(%arg0: i32) -> (i32, i32) {
    %c0_i32 = arith.constant 0 : i32
    %c0_i32_0 = arith.constant 0 : i32
    %c0_i32_1 = arith.constant 0 : i32
    return %c0_i32, %c0_i32_0 : i32, i32
  }
  func.func @transform_4(%arg0: i32) -> (i32, i32) {
    %c0_i32 = arith.constant 0 : i32
    %c0_i32_0 = arith.constant 0 : i32
    %c0_i32_1 = arith.constant 0 : i32
    return %c0_i32, %c0_i32_0 : i32, i32
  }
  func.func @transform_5(%arg0: i32) -> (i32, i32) {
    %c0_i32 = arith.constant 0 : i32
    %c0_i32_0 = arith.constant 0 : i32
    %c0_i32_1 = arith.constant 0 : i32
    return %c0_i32, %c0_i32_0 : i32, i32
  }
  func.func @transform_6(%arg0: i32) -> (i32, i32, i32) {
    %c0_i32 = arith.constant 0 : i32
    %c0_i32_0 = arith.constant 0 : i32
    %c0_i32_1 = arith.constant 0 : i32
    %c0_i32_2 = arith.constant 0 : i32
    return %c0_i32, %c0_i32_0, %c0_i32_1 : i32, i32, i32
  }
  func.func @transform_7(%arg0: i32) -> (i32, i32) {
    %c0_i32 = arith.constant 0 : i32
    %c0_i32_0 = arith.constant 0 : i32
    %c0_i32_1 = arith.constant 0 : i32
    return %c0_i32, %c0_i32_0 : i32, i32
  }
  func.func @transform_8(%arg0: i32) -> (i32, i32) {
    %c0_i32 = arith.constant 0 : i32
    %c0_i32_0 = arith.constant 0 : i32
    %c0_i32_1 = arith.constant 0 : i32
    return %c0_i32, %c0_i32_0 : i32, i32
  }
  func.func @transform_9(%arg0: i32) -> (i32, i32) {
    %c0_i32 = arith.constant 0 : i32
    %c0_i32_0 = arith.constant 0 : i32
    %c0_i32_1 = arith.constant 0 : i32
    return %c0_i32, %c0_i32_0 : i32, i32
  }
  func.func @transform_10(%arg0: i32) -> (i32, i32) {
    %c0_i32 = arith.constant 0 : i32
    %c0_i32_0 = arith.constant 0 : i32
    %c0_i32_1 = arith.constant 0 : i32
    return %c0_i32, %c0_i32_0 : i32, i32
  }
  func.func @transform_11(%arg0: i32) -> (i32, i32, i32) {
    %c0_i32 = arith.constant 0 : i32
    %c0_i32_0 = arith.constant 0 : i32
    %c0_i32_1 = arith.constant 0 : i32
    return %arg0, %c0_i32, %c0_i32_0 : i32, i32, i32
  }
}

</mosaic_0001>

<bundles_post_ra>
// kernel: decoder26_forward.2
= control target key start
LH: loop header
LB: loop body
LE: loop exit
PB: predicated region body
PF: predicated region fallthrough
CT: control target
= control target key end

     0   :  { %17 = vsyncpa [#allocation3], 0  ;;  %s2544_s21 = smov 0   ;;  %s2879_s0 = inlined_call_operand.vmem [shape: bf16[2,16,32], index: 0, kind: input, shape index: {}]   ;;  %s2880_s1 = inlined_call_operand.vmem [shape: bf16[2,64,24], index: 1, kind: input, shape index: {}]   ;;  %s2881_s2 = inlined_call_operand.vmem [shape: bf16[64,16], index: 2, kind: input, shape index: {}]   ;;  %s2882_s3 = inlined_call_operand.vmem [shape: bf16[32,128], index: 3, kind: input, shape index: {}]   ;;  %s2883_s4 = inlined_call_operand.vmem [shape: f32[1,128], index: 4, kind: input, shape index: {}]   ;;  %s2884_s5 = inlined_call_operand.vmem [shape: f32[1,128], index: 5, kind: input, shape index: {}]   ;;  %s2885_s6 = inlined_call_operand.vmem [shape: bf16[24,128], index: 6, kind: input, shape index: {}]   ;;  %s2886_s7 = inlined_call_operand.vmem [shape: f32[1,128], index: 7, kind: input, shape index: {}]   ;;  %s2887_s8 = inlined_call_operand.vmem [shape: f32[1,128], index: 8, kind: input, shape index: {}]   ;;  %s2888_s9 = inlined_call_operand.hbm [shape: bf16[3,128,384], index: 9, kind: input, shape index: {}]   ;;  %s2889_s10 = inlined_call_operand.vmem [shape: f32[1,64], index: 10, kind: input, shape index: {}]   ;;  %s2890_s11 = inlined_call_operand.vmem [shape: f32[1,64], index: 11, kind: input, shape index: {}]   ;;  %s2891_s12 = inlined_call_operand.vmem [shape: bf16[2,64,64], index: 12, kind: output, shape index: {}]  }
   0x1 LB: > { %s348_s24 = sshll.u32 %s2888_s9, 4  ;;  %s1934_s25 = sadd.s32 4294967295, %s2473_s21   ;;  %s2473_s21 = sphi %s2544_s21, %s23_s21   ;;  %s349_s24 = int_to_ptr.hbm [resolvable:$true] %s348_s24 }
   0x2   : > { %p1936_p0 = scmp.ge.s32.totalorder %s2473_s21, 1  ;;  %p316_p1 = scmp.lt.s32.totalorder %s2473_s21, 3 }
   0x3   : > { %p2413_p2 = scmp.eq.s32.totalorder %s1934_s25, 0  ;;  %s2475_s26 = smov [#allocation2]  }
   0x4   : > { %p317_p3 = pnand %p1936_p0, %p316_p1  ;;  %s350_s27 = sshll.u32 %s2475_s26, 4  ;;  %s351_s27 = int_to_ptr.vmem [resolvable:$true] %s350_s27 }
   0x5   : > { %s2476_s28 = smov 192   ;;  %s2477_s29 = smov 12  }
   0x6   : > { %p2409_p4 = pneg %p317_p3  ;;  %388 = sbr.rel (%p317_p3) target bundleno = 636 (0x27c), region = 68 }
   0x8   : > { %p2410_p5 = pnand %p2413_p2, %p2409_p4 }
   0xa   : > { %2412 = dma.hbm_to_vmem [thread:$0]  (!%p2410_p5), %s349_s24, 9216, %s351_s27, [#allocation3], %s2476_s28, %s2476_s28, %s2477_s29  }
   0xb   : > { %2468 = dma.done.wait (%p2413_p2), [#allocation3], 9216  }
   0xc   : > { %2470 = vsyncadd (%p2413_p2), [#allocation3], 4294958080  ;;  %p436_p6 = scmp.lt.s32.totalorder %s1934_s25, 1  ;;  %v2315_v0 = vld [vmem:[%s2882_s3 + $0x8] sm:$0xff]  ;;  %v2314_v1 = vld [vmem:[%s2882_s3] sm:$0xff]  ;;  %vm631_vm0 = vcmask 1043456  }
   0xd   : > { %v588_v2 = vld [vmem:[%s2885_s6 + $0x8] sm:$0xf]  ;;  %485 = vmatpush.bf16.msra.mxu0 %v2315_v0  ;;  %vm475_vm1 = vcmask 261120   ;;  %v2324_v7 = vld [vmem:[%s2885_s6] sm:$0xff]  ;;  %vm618_vm2 = vcmask 195584   ;;  %vm536_vm3 = vcmask 130048  }
   0xe   : > { %s2903_s25 = smov (!%p436_p6, %s1934_s25), 1  ;;  %v614_v3 = vunpack.c.l.b16 %v588_v2  ;;  %v2427_v12 = vld [vmem:[%s2883_s4] ss:$0 sm:$0xff]  ;;  %v2317_v24 = vld [vmem:[%s2881_s2 + $0x8] sm:$0xff]  ;;  %v2318_v25 = vld [vmem:[%s2881_s2 + $0x10] sm:$0xff]  ;;  %vm943_vm6 = vcmask 1040384  }
   0xf   : > { %s2310_s30 = sshll.u32 %s2903_s25, 3  ;;  %s2311_s26 = sshll.u32 %s2903_s25, 5  ;;  %v2428_v14 = vld [vmem:[%s2884_s5] ss:$0 sm:$0xff]  ;;  %v2319_v26 = vld [vmem:[%s2881_s2 + $0x18] sm:$0xff] }
  0x10   : > { %s440_s22 = scalar_lea.vmem %s2879_s0, %s2310_s30  ;;  %v616_v4 = vpack.c.b16 %v614_v3, %v614_v3  ;;  %s445_s29 = scalar_lea.vmem %s2880_s1, %s2311_s26  ;;  %v2316_v23 = vld [vmem:[%s2881_s2] sm:$0xff]  ;;  %v2106_v27 = vld [vmem:[#allocation2 + $0x168] sm:$0xf]  ;;  %v2371_v28 = vld [vmem:[#allocation2 + $0x170] sm:$0xf0] }
  0x11   : > { %v2313_v5 = vld [vmem:[%s440_s22] sm:$0xff]  ;;  %486 = vmatpush.bf16.msra.mxu0 %v2314_v1  ;;  %v2321_v9 = vld [vmem:[%s445_s29 + $0x8] sm:$0xff]  ;;  %v2322_v10 = vld [vmem:[%s445_s29 + $0x10] sm:$0xff]  ;;  %v2107_v30 = vor.u32 %v2371_v28, %v2106_v27  ;;  %vm907_vm4 = vsmask.f32 256  ;;  %s2830_s19 = scalar_lea.vmem %s2891_s12, %s2311_s26 }
  0x12   : > { %v633_v6 = vsel %vm631_vm0, %v616_v4, 0  ;;  %v2320_v8 = vld [vmem:[%s445_s29] sm:$0xff]  ;;  %v2323_v19 = vld [vmem:[%s445_s29 + $0x18] sm:$0xff]  ;;  %v2114_v29 = vld [vmem:[#allocation2 + $0x170] sm:$0xf] }
  0x13   : > { %641 = vmatpush.bf16.msra.mxu2 %v633_v6  ;;  %v2372_v31 = vld [vmem:[#allocation2 + $0x178] sm:$0xf0]  ;;  %v2094_v32 = vld [vmem:[#allocation2 + $0x150] sm:$0xf]  ;;  %v2102_v35 = vld [vmem:[#allocation2 + $0x158] sm:$0xf]  ;;  %2397 = vmatpush.bf16.msra.mxu3 %v2107_v30 }
  0x14   : > { %1959 = vmatmul.msk.bf16.vlgmr.msra.gmra.mxu0 %vm475_vm1, %v2313_v5  ;;  %v2368_v33 = vld [vmem:[#allocation2 + $0x158] sm:$0xf0]  ;;  %v2115_v34 = vor.u32 %v2372_v31, %v2114_v29  ;;  %v2369_v36 = vld [vmem:[#allocation2 + $0x160] sm:$0xf0]  ;;  %v2082_v39 = vld [vmem:[#allocation2 + $0x138] sm:$0xf] }
  0x15   : > { %1224 = vmatpush.bf16.msrb.mxu0 %v2107_v30  ;;  %v2095_v37 = vor.u32 %v2368_v33, %v2094_v32  ;;  %v2103_v38 = vor.u32 %v2369_v36, %v2102_v35  ;;  %v2365_v40 = vld [vmem:[#allocation2 + $0x140] sm:$0xf0]  ;;  %v2090_v41 = vld [vmem:[#allocation2 + $0x140] sm:$0xf]  ;;  %v2366_v43 = vld [vmem:[#allocation2 + $0x148] sm:$0xf0] }
  0x16   : > { %v2083_v42 = vor.u32 %v2365_v40, %v2082_v39  ;;  %v2070_v44 = vld [vmem:[#allocation2 + $0x120] sm:$0xf]  ;;  %v2362_v45 = vld [vmem:[#allocation2 + $0x128] sm:$0xf0]  ;;  %v2091_v46 = vor.u32 %v2366_v43, %v2090_v41  ;;  %v2078_v47 = vld [vmem:[#allocation2 + $0x128] sm:$0xf] }
  0x17   : > { %642 = vmatpush.bf16.msra.mxu2 %v2324_v7  ;;  %2398 = vmatpush.bf16.msra.mxu3 %v2095_v37  ;;  %v2363_v48 = vld [vmem:[#allocation2 + $0x130] sm:$0xf0]  ;;  %v2071_v49 = vor.u32 %v2362_v45, %v2070_v44  ;;  %v2058_v51 = vld [vmem:[#allocation2 + $0x108] sm:$0xf]  ;;  %v2066_v54 = vld [vmem:[#allocation2 + $0x110] sm:$0xf] }
  0x18   : > { %v2079_v50 = vor.u32 %v2363_v48, %v2078_v47  ;;  %v2359_v52 = vld [vmem:[#allocation2 + $0x110] sm:$0xf0]  ;;  %v2360_v55 = vld [vmem:[#allocation2 + $0x118] sm:$0xf0]  ;;  %v2046_v57 = vld [vmem:[#allocation2 + $0xf0] sm:$0xf] }
  0x19   : > { %1225 = vmatpush.bf16.msrb.mxu0 %v2095_v37  ;;  %v2059_v53 = vor.u32 %v2359_v52, %v2058_v51  ;;  %v2067_v56 = vor.u32 %v2360_v55, %v2066_v54  ;;  %v2356_v58 = vld [vmem:[#allocation2 + $0xf8] sm:$0xf0]  ;;  %v2054_v59 = vld [vmem:[#allocation2 + $0xf8] sm:$0xf]  ;;  %v2357_v61 = vld [vmem:[#allocation2 + $0x100] sm:$0xf0] }
  0x1a   : > { %2000 = vmatmul.msk.bf16.vlgmr.msra.gmra.mxu2 %vm618_vm2, %v2320_v8  ;;  %v2047_v60 = vor.u32 %v2356_v58, %v2046_v57  ;;  %v2055_v62 = vor.u32 %v2357_v61, %v2054_v59  ;;  %v2034_v0 = vld [vmem:[#allocation2 + $0xd8] sm:$0xf]  ;;  %v2353_v1 = vld [vmem:[#allocation2 + $0xe0] sm:$0xf0]  ;;  %v2042_v2 = vld [vmem:[#allocation2 + $0xe0] sm:$0xf] }
  0x1b   : > { %2399 = vmatpush.bf16.msra.mxu3 %v2083_v42  ;;  %v2035_v3 = vor.u32 %v2353_v1, %v2034_v0  ;;  %v2354_v4 = vld [vmem:[#allocation2 + $0xe8] sm:$0xf0]  ;;  %v2022_v6 = vld [vmem:[#allocation2 + $0xc0] sm:$0xf]  ;;  %v2030_v8 = vld [vmem:[#allocation2 + $0xc8] sm:$0xf] }
  0x1c   : > { %v2043_v5 = vor.u32 %v2354_v4, %v2042_v2  ;;  %v2350_v7 = vld [vmem:[#allocation2 + $0xc8] sm:$0xf0]  ;;  %v2610_v27 = vld [vmem:[%s2887_s8] ss:$0 sm:$0xff]  ;;  %v2361_v29 = vld [vmem:[#allocation2 + $0x124] sm:$0xf] }
  0x1d   : > { %1226 = vmatpush.bf16.msrb.mxu0 %v2083_v42  ;;  %v2072_v30 = vld [vmem:[#allocation2 + $0x12c] sm:$0xf0]  ;;  %v2060_v35 = vld [vmem:[#allocation2 + $0x114] sm:$0xf0]  ;;  %v2344_v40 = vld [vmem:[#allocation2 + $0x98] sm:$0xf0] }
  0x1e   : > { %v2075_v31 = vor.u32 %v2361_v29, %v2072_v30  ;;  %v2190_v39 = vld [vmem:[#allocation2 + $0x90] sm:$0xf]  ;;  %v2355_v43 = vld [vmem:[#allocation2 + $0xf4] sm:$0xf]  ;;  %v2048_v44 = vld [vmem:[#allocation2 + $0xfc] sm:$0xf0] }
  0x1f   : > { %2400 = vmatpush.bf16.msra.mxu3 %v2071_v49  ;;  %v2191_v41 = vor.u32 %v2344_v40, %v2190_v39  ;;  %v2178_v48 = vld [vmem:[#allocation2 + $0x78] sm:$0xf]  ;;  %v2352_v52 = vld [vmem:[#allocation2 + $0xdc] sm:$0xf]  ;;  %v2024_v61 = vld [vmem:[#allocation2 + $0xcc] sm:$0xf0] }
  0x20   : > { %v2389_v39 = vld [vmem:[#allocation2 + $0x200] sm:$0xf0]  ;;  %vm974_vm7 = vsmask.f32 7424  ;;  %vm2681_vm11 = vmand %vm943_vm6, %vm907_vm4 }
  0x21   : > { %1227 = vmatpush.bf16.msrb.mxu0 %v2071_v49  ;;  %v2341_v49 = vld [vmem:[#allocation2 + $0x80] sm:$0xf0] }
  0x23   : > { %2401 = vmatpush.bf16.msra.mxu3 %v2059_v53 }
  0x25   : > { %1228 = vmatpush.bf16.msrb.mxu0 %v2059_v53  ;;  %v2036_v53 = vld [vmem:[#allocation2 + $0xe4] sm:$0xf0] }
  0x26   : > { %v2039_v55 = vor.u32 %v2352_v52, %v2036_v53  ;;  %v2142_v53 = vld [vmem:[#allocation2 + $0x30] sm:$0xf] }
  0x27   : > { %2402 = vmatpush.bf16.msra.mxu3 %v2047_v60 }
  0x29   : > { %1229 = vmatpush.bf16.msrb.mxu0 %v2047_v60  ;;  %v2349_v60 = vld [vmem:[#allocation2 + $0xc4] sm:$0xf] }
  0x2a   : > { %2001 = vmatmul.msk.bf16.gmra.mxu2 %vm618_vm2, %v2321_v9  ;;  %v2023_v9 = vor.u32 %v2350_v7, %v2022_v6  ;;  %v2346_v6 = vld [vmem:[#allocation2 + $0xac] sm:$0xf]  ;;  %v2204_v7 = vld [vmem:[#allocation2 + $0xb4] sm:$0xf0] }
  0x2b   : > { %2403 = vmatpush.bf16.msra.mxu3 %v2035_v3 }
  0x2d   : > { %1230 = vmatpush.bf16.msrb.mxu0 %v2035_v3 }
  0x2f   : > { %2404 = vmatpush.bf16.msra.mxu3 %v2023_v9 }
  0x31   : > { %1231 = vmatpush.bf16.msrb.mxu0 %v2023_v9 }
  0x3a   : > { %2002 = vmatmul.msk.bf16.gmra.mxu2 %vm618_vm2, %v2322_v10  ;;  %v2351_v10 = vld [vmem:[#allocation2 + $0xd0] sm:$0xf0] }
  0x4a   : > { %2003 = vmatmul.msk.bf16.gmra.mxu2 %vm618_vm2, %v2323_v19  ;;  %v2604_v19 = vld [vmem:[%s2886_s7] ss:$0 sm:$0xff] }
  0x91   : > { %v488_v11 = vpop.f32.mrf.mxu0 }
  0x92   : > { %v497_v13 = vmul.f32 %v2427_v12, %v488_v11  ;;  %v2031_v11 = vor.u32 %v2351_v10, %v2030_v8  ;;  %v2298_v8 = vld [vmem:[#allocation2 + $0x228] sm:$0xf]  ;;  %v2166_v10 = vld [vmem:[#allocation2 + $0x60] sm:$0xf] }
  0x94   : > { %v503_v17 = vadd.f32 %v2428_v14, %v497_v13  ;;  %v2108_v13 = vld [vmem:[#allocation2 + $0x174] sm:$0xf0] }
  0x96   : > { %v505_v20 = vmax.f32 %v503_v17, 0.0  ;;  %v2096_v17 = vld [vmem:[#allocation2 + $0x15c] sm:$0xf0] }
  0x99   : > { %v490_v15 = vpop.f32.mrf.mxu0 }
  0x9a   : > { %v498_v16 = vmul.f32 %v2427_v12, %v490_v15  ;;  %v2370_v12 = vld [vmem:[#allocation2 + $0x16c] sm:$0xf] }
  0x9b   : > { %v2111_v15 = vor.u32 %v2370_v12, %v2108_v13  ;;  %v2207_v12 = vor.u32 %v2346_v6, %v2204_v7  ;;  %v2331_v6 = vld [vmem:[#allocation2 + $0x34] sm:$0xf] }
  0x9c   : > { %v504_v18 = vadd.f32 %v2428_v14, %v498_v16  ;;  %v2367_v16 = vld [vmem:[#allocation2 + $0x154] sm:$0xf] }
  0x9d   : > { %v644_v63 = vpop.f32.mrf.mxu2  ;;  %1252 = vmatpush.bf16.msra.mxu0 %v2111_v15  ;;  %1465 = vmatpush.bf16.msrb.mxu3 %v2207_v12 }
  0x9e   : > { %v506_v21 = vmax.f32 %v504_v18, 0.0  ;;  %v2099_v18 = vor.u32 %v2367_v16, %v2096_v17  ;;  %v2343_v17 = vld [vmem:[#allocation2 + $0x94] sm:$0xf] }
  0xa0   : > { %v515_v22 = vpack.c.bf16 %v506_v21, %v505_v20  ;;  %v2202_v20 = vld [vmem:[#allocation2 + $0xa8] sm:$0xf]  ;;  %v2347_v21 = vld [vmem:[#allocation2 + $0xb0] sm:$0xf0] }
  0xa1   : > { %1253 = vmatpush.bf16.msra.mxu0 %v2099_v18  ;;  %v2192_v18 = vld [vmem:[#allocation2 + $0x9c] sm:$0xf0] }
  0xa2   : > { %556 = vmatpush.bf16.msra.mxu1 %v515_v22  ;;  %v2203_v22 = vor.u32 %v2347_v21, %v2202_v20  ;;  %v2286_v20 = vld [vmem:[#allocation2 + $0x210] sm:$0xf] }
  0xa4   : > { %1437 = vmatpush.bf16.msrb.mxu2 %v2203_v22  ;;  %v2154_v22 = vld [vmem:[#allocation2 + $0x48] sm:$0xf] }
  0xa5   : > { %1976 = vmatmul.msk.bf16.vlgmr.msra.gmra.mxu1 %vm536_vm3, %v2316_v23  ;;  %v646_v14 = vpop.f32.mrf.mxu2  ;;  %v2364_v23 = vld [vmem:[#allocation2 + $0x13c] sm:$0xf] }
  0xa6   : > { %1281 = vmatpush.bf16.msrb.mxu1 %v2115_v34  ;;  %v669_v33 = vmul.f32 %v2604_v19, %v646_v14  ;;  %v2358_v34 = vld [vmem:[#allocation2 + $0x10c] sm:$0xf]  ;;  %v2395_v14 = vld [vmem:[#allocation2 + $0x230] sm:$0xf0] }
  0xa7   : > { %v2063_v37 = vor.u32 %v2358_v34, %v2060_v35  ;;  %v2299_v16 = vor.u32 %v2395_v14, %v2298_v8  ;;  %v2274_v34 = vld [vmem:[#allocation2 + $0x1f8] sm:$0xf]  ;;  %v2144_v8 = vld [vmem:[#allocation2 + $0x3c] sm:$0xf0]  ;;  %v2326_v14 = vld [vmem:[#allocation2 + $0x8] sm:$0xf0] }
  0xa8   : > { %v681_v42 = vadd.f32 %v2610_v27, %v669_v33  ;;  %1438 = vmatpush.bf16.msrb.mxu2 %v2191_v41  ;;  %v2180_v33 = vld [vmem:[#allocation2 + $0x84] sm:$0xf0]  ;;  %v2275_v40 = vor.u32 %v2389_v39, %v2274_v34  ;;  %v2147_v12 = vor.u32 %v2331_v6, %v2144_v8  ;;  %v2120_v34 = vld [vmem:[#allocation2 + $0xc] sm:$0xf0]  ;;  %v2342_v6 = vld [vmem:[#allocation2 + $0x88] sm:$0xf0] }
  0xaa   : > { %1282 = vmatpush.bf16.msrb.mxu1 %v2103_v38  ;;  %v689_v51 = vmax.f32 %v681_v42, 0.0  ;;  %v2337_v42 = vld [vmem:[#allocation2 + $0x64] sm:$0xf] }
  0xad   : > { %v649_v28 = vpop.f32.mrf.mxu2 }
  0xae   : > { %1283 = vmatpush.bf16.msrb.mxu1 %v2091_v46  ;;  %v2051_v46 = vor.u32 %v2355_v43, %v2048_v44  ;;  %v670_v57 = vmul.f32 %v2604_v19, %v649_v28  ;;  %v2168_v43 = vld [vmem:[#allocation2 + $0x6c] sm:$0xf0]  ;;  %v2262_v44 = vld [vmem:[#allocation2 + $0x1e0] sm:$0xf] }
  0xb0   : > { %v682_v0 = vadd.f32 %v2610_v27, %v670_v57  ;;  %v2334_v57 = vld [vmem:[#allocation2 + $0x4c] sm:$0xf] }
  0xb2   : > { %1284 = vmatpush.bf16.msrb.mxu1 %v2079_v50  ;;  %v2179_v50 = vor.u32 %v2341_v49, %v2178_v48  ;;  %v690_v9 = vmax.f32 %v682_v0, 0.0  ;;  %v2171_v48 = vor.u32 %v2337_v42, %v2168_v43  ;;  %v2386_v49 = vld [vmem:[#allocation2 + $0x1e8] sm:$0xf0] }
  0xb4   : > { %1439 = vmatpush.bf16.msrb.mxu2 %v2179_v50  ;;  %v2263_v50 = vor.u32 %v2386_v49, %v2262_v44  ;;  %v2306_v49 = vld [vmem:[#allocation2 + $0x230] sm:$0xf] }
  0xb5   : > { %1977 = vmatmul.msk.bf16.gmra.mxu1 %vm536_vm3, %v2317_v24  ;;  %v2084_v24 = vld [vmem:[#allocation2 + $0x144] sm:$0xf0]  ;;  %v651_v45 = vpop.f32.mrf.mxu2 }
  0xb6   : > { %1285 = vmatpush.bf16.msrb.mxu1 %v2067_v56  ;;  %v671_v4 = vmul.f32 %v2604_v19, %v651_v45 }
  0xb8   : > { %v683_v15 = vadd.f32 %v2610_v27, %v671_v4  ;;  %v2130_v4 = vld [vmem:[#allocation2 + $0x18] sm:$0xf] }
  0xba   : > { %1286 = vmatpush.bf16.msrb.mxu1 %v2055_v62  ;;  %v2027_v62 = vor.u32 %v2349_v60, %v2024_v61  ;;  %v691_v29 = vmax.f32 %v683_v15, 0.0  ;;  %v2328_v15 = vld [vmem:[#allocation2 + $0x1c] sm:$0xf] }
  0xbd   : > { %v654_v2 = vpop.f32.mrf.mxu2 }
  0xbe   : > { %1287 = vmatpush.bf16.msrb.mxu1 %v2043_v5 }
  0xc2   : > { %1288 = vmatpush.bf16.msrb.mxu1 %v2031_v11  ;;  %v2338_v11 = vld [vmem:[#allocation2 + $0x68] sm:$0xf0] }
  0xc3   : > { %v2167_v13 = vor.u32 %v2338_v11, %v2166_v10  ;;  %v2380_v10 = vld [vmem:[#allocation2 + $0x1b8] sm:$0xf0] }
  0xc5   : > { %1978 = vmatmul.msk.bf16.gmra.mxu1 %vm536_vm3, %v2318_v25  ;;  %v2087_v25 = vor.u32 %v2364_v23, %v2084_v24  ;;  %1440 = vmatpush.bf16.msrb.mxu2 %v2167_v13  ;;  %v2335_v23 = vld [vmem:[#allocation2 + $0x50] sm:$0xf0]  ;;  %v2195_v24 = vor.u32 %v2343_v17, %v2192_v18  ;;  %v2118_v13 = vld [vmem:[#allocation2] sm:$0xf]  ;;  %v2132_v18 = vld [vmem:[#allocation2 + $0x24] sm:$0xf0] }
  0xc6   : > { %1683 = vmatpush.bf16.msra.mxu1 %v2299_v16  ;;  %v2119_v17 = vor.u32 %v2326_v14, %v2118_v13 }
  0xc7   : > { %1254 = vmatpush.bf16.msra.mxu0 %v2087_v25  ;;  %v2392_v25 = vld [vmem:[#allocation2 + $0x218] sm:$0xf0]  ;;  %1466 = vmatpush.bf16.msrb.mxu3 %v2195_v24 }
  0xc8   : > { %v2287_v28 = vor.u32 %v2392_v25, %v2286_v20 }
  0xca   : > { %1684 = vmatpush.bf16.msra.mxu1 %v2287_v28 }
  0xcb   : > { %1255 = vmatpush.bf16.msra.mxu0 %v2075_v31  ;;  %v656_v31 = vpop.f32.mrf.mxu2 }
  0xcc   : > { %v673_v52 = vmul.f32 %v2604_v19, %v656_v31 }
  0xce   : > { %1685 = vmatpush.bf16.msra.mxu1 %v2275_v40  ;;  %v2374_v40 = vld [vmem:[#allocation2 + $0x188] sm:$0xf0] }
  0xcf   : > { %1256 = vmatpush.bf16.msra.mxu0 %v2063_v37 }
  0xd2   : > { %1686 = vmatpush.bf16.msra.mxu1 %v2263_v50 }
  0xd3   : > { %1257 = vmatpush.bf16.msra.mxu0 %v2051_v46  ;;  %v659_v0 = vpop.f32.mrf.mxu2 }
  0xd5   : > { %1979 = vmatmul.msk.bf16.gmra.mxu1 %vm536_vm3, %v2319_v26  ;;  %v668_v26 = vmul.f32 %v2604_v19, %v644_v63 }
  0xd7   : > { %v680_v32 = vadd.f32 %v2610_v27, %v668_v26  ;;  %1258 = vmatpush.bf16.msra.mxu0 %v2039_v55  ;;  %v2155_v26 = vor.u32 %v2335_v23, %v2154_v22  ;;  %v2226_v22 = vld [vmem:[#allocation2 + $0x198] sm:$0xf]  ;;  %v2377_v23 = vld [vmem:[#allocation2 + $0x1a0] sm:$0xf0] }
  0xd9   : > { %v688_v38 = vmax.f32 %v680_v32, 0.0  ;;  %1441 = vmatpush.bf16.msrb.mxu2 %v2155_v26  ;;  %v2340_v32 = vld [vmem:[#allocation2 + $0x7c] sm:$0xf]  ;;  %v674_v26 = vmul.f32 %v2604_v19, %v659_v0  ;;  %v2393_v0 = vld [vmem:[#allocation2 + $0x220] sm:$0xf0] }
  0xdb   : > { %1259 = vmatpush.bf16.msra.mxu0 %v2027_v62  ;;  %v2383_v62 = vld [vmem:[#allocation2 + $0x1d0] sm:$0xf0]  ;;  %v661_v31 = vpop.f32.mrf.mxu2 }
  0xdc   : > { %v675_v42 = vmul.f32 %v2604_v19, %v661_v31 }
  0xde   : > { %v687_v50 = vadd.f32 %v2610_v27, %v675_v42  ;;  %v2276_v42 = vld [vmem:[#allocation2 + $0x204] sm:$0xf0] }
 0x122   : > { %v558_v36 = vpop.f32.mrf.mxu1 }
 0x123   : > { %v696_v47 = vadd.f32 %v688_v38, %v558_v36  ;;  %v672_v36 = vmul.f32 %v2604_v19, %v654_v2  ;;  %v2183_v38 = vor.u32 %v2340_v32, %v2180_v33  ;;  %v685_v2 = vadd.f32 %v2610_v27, %v673_v52  ;;  %v2325_v33 = vld [vmem:[#allocation2 + $0x4] sm:$0xf]  ;;  %v2396_v19 = vld [vmem:[#allocation2 + $0x238] sm:$0xf0] }
 0x124   : > { %v712_v32 = vlaneseq  ;;  %v2123_v39 = vor.u32 %v2325_v33, %v2120_v34 }
 0x125   : > { %v704_v56 = vpack.c.bf16 %v696_v47, %v696_v47  ;;  %1467 = vmatpush.bf16.msrb.mxu3 %v2183_v38  ;;  %v684_v46 = vadd.f32 %v2610_v27, %v672_v36  ;;  %v693_v20 = vmax.f32 %v685_v2, 0.0 }
 0x127   : > { %v2616_v63 = vunpack.c.l.b16 %v704_v56  ;;  %v692_v60 = vmax.f32 %v684_v46, 0.0  ;;  %v2641_v46 = vshrl.u32 %v712_v32, 7 }
 0x129   : > { %1468 = vmatpush.bf16.msrb.mxu3 %v2171_v48  ;;  %v2300_v48 = vld [vmem:[#allocation2 + $0x234] sm:$0xf0]  ;;  %v714_v8 = vadd.s32 8, %v2641_v46  ;;  %v725_v14 = vand.u32 7, %v2641_v46  ;;  %v2671_v32 = vadd.s32 16, %v2641_v46 }
 0x12a   : > { %v560_v54 = vpop.f32.mrf.mxu1 }
 0x12b   : > { %v697_v58 = vadd.f32 %v689_v51, %v560_v54  ;;  %v2332_v54 = vld [vmem:[#allocation2 + $0x38] sm:$0xf0]  ;;  %vm2650_vm5 = vcmp.ne.s32.totalorder %v725_v14, 0  ;;  %vm2662_vm9 = vcmp.ne.s32.totalorder %v725_v14, 7 }
 0x12c   : > { %v2143_v56 = vor.u32 %v2332_v54, %v2142_v53  ;;  %v2210_v53 = vld [vmem:[#allocation2 + $0xb0] sm:$0xf]  ;;  %v2348_v54 = vld [vmem:[#allocation2 + $0xb8] sm:$0xf0] }
 0x12d   : > { %v705_v59 = vpack.c.bf16 %v697_v58, %v697_v58  ;;  %v2156_v58 = vld [vmem:[#allocation2 + $0x54] sm:$0xf0] }
 0x12e   : > { %v2159_v61 = vor.u32 %v2334_v57, %v2156_v58  ;;  %1442 = vmatpush.bf16.msrb.mxu2 %v2143_v56  ;;  %v2211_v56 = vor.u32 %v2348_v54, %v2210_v53  ;;  %v2198_v57 = vld [vmem:[#allocation2 + $0x98] sm:$0xf]  ;;  %v2345_v58 = vld [vmem:[#allocation2 + $0xa0] sm:$0xf0] }
 0x12f   : > { %v897_v1 = vunpack.c.l.b16 %v705_v59  ;;  %v2250_v59 = vld [vmem:[#allocation2 + $0x1c8] sm:$0xf]  ;;  %v2150_v53 = vld [vmem:[#allocation2 + $0x38] sm:$0xf]  ;;  %v2333_v54 = vld [vmem:[#allocation2 + $0x40] sm:$0xf0] }
 0x130   : > { %1469 = vmatpush.bf16.msrb.mxu3 %v2159_v61  ;;  %v2288_v61 = vld [vmem:[#allocation2 + $0x21c] sm:$0xf0] }
 0x131   : > { %v2620_v3 = vpack.c.b16 %v897_v1, %v2616_v63  ;;  %v2251_v1 = vor.u32 %v2383_v62, %v2250_v59  ;;  %v2391_v59 = vld [vmem:[#allocation2 + $0x214] sm:$0xf]  ;;  %v2294_v62 = vld [vmem:[#allocation2 + $0x218] sm:$0xf] }
 0x132   : > { %v563_v5 = vpop.f32.mrf.mxu1  ;;  %v2291_v2 = vor.u32 %v2391_v59, %v2288_v61  ;;  %v2264_v59 = vld [vmem:[#allocation2 + $0x1ec] sm:$0xf0] }
 0x133   : > { %1232 = vmatmul.bf16.vlgmr.msrb.gmra.mxu0 %v2620_v3  ;;  %1289 = vmatmul.bf16.vlgmr.msrb.gmra.mxu1 %v2620_v3  ;;  %v698_v21 = vadd.f32 %v690_v9, %v563_v5  ;;  %v2329_v5 = vld [vmem:[#allocation2 + $0x20] sm:$0xf0]  ;;  %v2238_v9 = vld [vmem:[#allocation2 + $0x1b0] sm:$0xf] }
 0x134   : > { %v2131_v7 = vor.u32 %v2329_v5, %v2130_v4  ;;  %1687 = vmatpush.bf16.msra.mxu1 %v2251_v1  ;;  %v2239_v16 = vor.u32 %v2380_v10, %v2238_v9  ;;  %1470 = vmatpush.bf16.msrb.mxu3 %v2147_v12  ;;  %v2199_v1 = vor.u32 %v2345_v58, %v2198_v57  ;;  %v695_v4 = vmax.f32 %v687_v50, 0.0  ;;  %v2186_v5 = vld [vmem:[#allocation2 + $0x80] sm:$0xf]  ;;  %v2162_v50 = vld [vmem:[#allocation2 + $0x50] sm:$0xf] }
 0x135   : > { %v706_v35 = vpack.c.bf16 %v698_v21, %v698_v21  ;;  %v2135_v21 = vor.u32 %v2328_v15, %v2132_v18  ;;  %1494 = vmatpush.bf16.msrb.mxu0 %v2211_v56  ;;  %v2187_v12 = vor.u32 %v2342_v6, %v2186_v5  ;;  %v912_v15 = vshll.u32 %v2620_v3, 16  ;;  %v2339_v18 = vld [vmem:[#allocation2 + $0x70] sm:$0xf0]  ;;  %v2385_v58 = vld [vmem:[#allocation2 + $0x1e4] sm:$0xf] }
 0x136   : > { %1443 = vmatpush.bf16.msrb.mxu2 %v2131_v7 }
 0x137   : > { %v898_v45 = vunpack.c.l.b16 %v706_v35  ;;  %v2214_v35 = vld [vmem:[#allocation2 + $0x180] sm:$0xf] }
 0x138   : > { %1688 = vmatpush.bf16.msra.mxu1 %v2239_v16  ;;  %1471 = vmatpush.bf16.msrb.mxu3 %v2135_v21  ;;  %v2215_v43 = vor.u32 %v2374_v40, %v2214_v35  ;;  %v732_v16 = vand.u32 7, %v714_v8  ;;  %v2478_v35 = vmov 0.0   ;;  %v2388_v40 = vld [vmem:[#allocation2 + $0x1fc] sm:$0xf] }
 0x139   : > { %1495 = vmatpush.bf16.msrb.mxu0 %v2199_v1  ;;  %v2267_v1 = vor.u32 %v2385_v58, %v2264_v59 }
 0x13a   : > { %v565_v30 = vpop.f32.mrf.mxu1  ;;  %1444 = vmatpush.bf16.msrb.mxu2 %v2119_v17  ;;  %v2174_v17 = vld [vmem:[#allocation2 + $0x68] sm:$0xf]  ;;  %vm2658_vm8 = vcmp.ne.s32.totalorder %v732_v16, 0  ;;  %vm2666_vm10 = vcmp.ne.s32.totalorder %v732_v16, 7 }
 0x13b   : > { %v699_v37 = vadd.f32 %v691_v29, %v565_v30  ;;  %v2227_v29 = vor.u32 %v2377_v23, %v2226_v22  ;;  %v2126_v23 = vld [vmem:[#allocation2 + $0x8] sm:$0xf] }
 0x13c   : > { %1472 = vmatpush.bf16.msrb.mxu3 %v2123_v39 }
 0x13d   : > { %v707_v41 = vpack.c.bf16 %v699_v37, %v699_v37  ;;  %v686_v37 = vadd.f32 %v2610_v27, %v674_v26  ;;  %1689 = vmatpush.bf16.msra.mxu1 %v2227_v29  ;;  %v2295_v27 = vor.u32 %v2393_v0, %v2294_v62  ;;  %1496 = vmatpush.bf16.msrb.mxu0 %v2187_v12  ;;  %v2699_v0 = vadd.s32 24, %v2641_v46 }
 0x13e   : > { %v2012_v12 = vsel %vm2662_vm9, 1.0, %v2478_v35 }
 0x13f   : > { %v899_v47 = vunpack.c.l.b16 %v707_v41  ;;  %v746_v16 = vand.u32 7, %v2699_v0 }
 0x141   : > { %v2628_v51 = vpack.c.b16 %v899_v47, %v898_v45  ;;  %v694_v45 = vmax.f32 %v686_v37, 0.0  ;;  %v2394_v47 = vld [vmem:[#allocation2 + $0x22c] sm:$0xf]  ;;  %1690 = vmatpush.bf16.msra.mxu1 %v2215_v43  ;;  %v2282_v43 = vld [vmem:[#allocation2 + $0x200] sm:$0xf]  ;;  %vm820_vm13 = vcmp.ne.s32.totalorder %v746_v16, 0 }
 0x142   : > { %v568_v55 = vpop.f32.mrf.mxu1  ;;  %v2303_v52 = vor.u32 %v2394_v47, %v2300_v48  ;;  %v2279_v48 = vor.u32 %v2388_v40, %v2276_v42  ;;  %v2258_v40 = vld [vmem:[#allocation2 + $0x1d0] sm:$0xf]  ;;  %vm852_vm15 = vcmp.ne.s32.totalorder %v746_v16, 7 }
 0x143   : > { %1237 = vmatmul.bf16.gmra.mxu0 %v2628_v51  ;;  %1293 = vmatmul.bf16.gmra.mxu1 %v2628_v51  ;;  %v700_v11 = vadd.f32 %v692_v60, %v568_v55  ;;  %v2307_v55 = vor.u32 %v2396_v19, %v2306_v49  ;;  %v916_v33 = vshrl.u32 %v2628_v51, 16  ;;  %v2390_v49 = vld [vmem:[#allocation2 + $0x208] sm:$0xf0]  ;;  %v2336_v19 = vld [vmem:[#allocation2 + $0x58] sm:$0xf0]  ;;  %v2015_v59 = vsel %vm852_vm15, 1.0, %v2478_v35 }
 0x144   : > { %1711 = vmatpush.bf16.msra.mxu2 %v2303_v52  ;;  %v2283_v52 = vor.u32 %v2390_v49, %v2282_v43  ;;  %v2163_v57 = vor.u32 %v2336_v19, %v2162_v50  ;;  %v2246_v50 = vld [vmem:[#allocation2 + $0x1b8] sm:$0xf] }
 0x145   : > { %v708_v25 = vpack.c.bf16 %v700_v11, %v700_v11  ;;  %v909_v11 = vshrl.u32 %v2620_v3, 16 }
 0x147   : > { %v900_v36 = vunpack.c.l.b16 %v708_v25  ;;  %v2175_v25 = vor.u32 %v2339_v18, %v2174_v17 }
 0x148   : > { %1712 = vmatpush.bf16.msra.mxu2 %v2291_v2  ;;  %v2387_v2 = vld [vmem:[#allocation2 + $0x1f0] sm:$0xf0] }
 0x149   : > { %1497 = vmatpush.bf16.msrb.mxu0 %v2175_v25  ;;  %v2327_v25 = vld [vmem:[#allocation2 + $0x10] sm:$0xf0] }
 0x14a   : > { %v570_v24 = vpop.f32.mrf.mxu1  ;;  %v2127_v29 = vor.u32 %v2327_v25, %v2126_v23  ;;  %v2222_v23 = vld [vmem:[#allocation2 + $0x188] sm:$0xf]  ;;  %v2375_v25 = vld [vmem:[#allocation2 + $0x190] sm:$0xf0] }
 0x14b   : > { %v701_v28 = vadd.f32 %v693_v20, %v570_v24  ;;  %v919_v20 = vshll.u32 %v2628_v51, 16  ;;  %v2654_v24 = vrot.slane %v909_v11, 7 }
 0x14c   : > { %1713 = vmatpush.bf16.msra.mxu2 %v2279_v48  ;;  %v717_v48 = vadd.s32 32, %v2641_v46 }
 0x14d   : > { %v709_v30 = vpack.c.bf16 %v701_v28, %v701_v28  ;;  %v914_v39 = vor.u32 %v912_v15, %v2654_v24  ;;  %1498 = vmatpush.bf16.msrb.mxu0 %v2163_v57 }
 0x14f   : > { %v901_v38 = vunpack.c.l.b16 %v709_v30 }
 0x150   : > { %1714 = vmatpush.bf16.msra.mxu2 %v2267_v1 }
 0x151   : > { %v2636_v41 = vpack.c.b16 %v901_v38, %v900_v36  ;;  %v2004_v36 = vsel %vm2650_vm5, 1.0, %v2478_v35  ;;  %v2687_v38 = vrot.slane %v919_v20, 1  ;;  %vm996_vm5 = vcmask 1047552  }
 0x152   : > { %v573_v44 = vpop.f32.mrf.mxu1  ;;  %vm997_vm9 = vmand %vm996_vm5, %vm974_vm7 }
 0x153   : > { %1242 = vmatmul.bf16.vlgmr.msra.gmra.mxu3 %v2636_v41  ;;  %1260 = vmatmul.bf16.vlgmr.msra.gmra.mxu0 %v2620_v3  ;;  %v702_v60 = vadd.f32 %v694_v45, %v573_v44  ;;  %v975_v3 = vrot.slane %v912_v15, 1  ;;  %v2005_v45 = vsel %vm2658_vm8, 1.0, %v2478_v35  ;;  %v739_v15 = vand.u32 7, %v2671_v32 }
 0x154   : > { %1298 = vmatmul.bf16.gmra.mxu1 %v2636_v41  ;;  %1740 = vmatpush.bf16.msra.mxu3 %v2307_v55  ;;  %v2007_v32 = vsel %vm820_vm13, 1.0, %v2478_v35  ;;  %v979_v42 = vor.u32 %v2687_v38, %v916_v33 }
 0x155   : > { %v710_v9 = vpack.c.bf16 %v702_v60, %v702_v60  ;;  %v976_v47 = vor.u32 %v975_v3, %v909_v11  ;;  %v2270_v60 = vld [vmem:[#allocation2 + $0x1e8] sm:$0xf]  ;;  %v2330_v11 = vld [vmem:[#allocation2 + $0x28] sm:$0xf0]  ;;  %vm819_vm12 = vcmp.ne.s32.totalorder %v739_v15, 0  ;;  %vm851_vm14 = vcmp.ne.s32.totalorder %v739_v15, 7 }
 0x156   : > { %v2271_v5 = vor.u32 %v2387_v2, %v2270_v60  ;;  %v2006_v31 = vsel %vm819_vm12, 1.0, %v2478_v35  ;;  %v2014_v58 = vsel %vm851_vm14, 1.0, %v2478_v35  ;;  %v2228_v15 = vld [vmem:[#allocation2 + $0x1a4] sm:$0xf0] }
 0x157   : > { %v902_v21 = vunpack.c.l.b16 %v710_v9  ;;  %v978_v56 = vsel %vm974_vm7, %v976_v47, %v2687_v38  ;;  %v2240_v47 = vld [vmem:[#allocation2 + $0x1bc] sm:$0xf0] }
 0x158   : > { %1741 = vmatpush.bf16.msra.mxu3 %v2295_v27  ;;  %v2703_v27 = vrot.slane %v916_v33, 7  ;;  %v999_v8 = vunpack.c.l.bf16 %v978_v56  ;;  %v1000_v9 = vunpack.c.h.bf16 %v978_v56 }
 0x15a   : > { %v575_v7 = vpop.f32.mrf.mxu1  ;;  %v921_v17 = vor.u32 %v919_v20, %v2703_v27  ;;  %v924_v20 = vshrl.u32 %v2636_v41, 16 }
 0x15b   : > { %v703_v10 = vadd.f32 %v695_v4, %v575_v7  ;;  %v2151_v4 = vor.u32 %v2333_v54, %v2150_v53  ;;  %v718_v53 = vadd.s32 40, %v2641_v46 }
 0x15c   : > { %1742 = vmatpush.bf16.msra.mxu3 %v2283_v52  ;;  %v922_v3 = vsel %vm907_vm4, %v2654_v24, %v921_v17  ;;  %v2382_v24 = vld [vmem:[#allocation2 + $0x1cc] sm:$0xf]  ;;  %v2381_v52 = vld [vmem:[#allocation2 + $0x1c0] sm:$0xf0]  ;;  %v2738_v38 = vrot.slane %v924_v20, 7 }
 0x15d   : > { %v711_v13 = vpack.c.bf16 %v703_v10, %v703_v10  ;;  %v2138_v10 = vld [vmem:[#allocation2 + $0x20] sm:$0xf]  ;;  %1499 = vmatpush.bf16.msrb.mxu0 %v2151_v4  ;;  %v949_v37 = vunpack.c.h.bf16 %v922_v3  ;;  %v2247_v33 = vor.u32 %v2381_v52, %v2246_v50 }
 0x15e   : > { %v2139_v18 = vor.u32 %v2330_v11, %v2138_v10 }
 0x15f   : > { %v882_v22 = vunpack.c.l.b16 %v711_v13  ;;  %v2013_v13 = vsel %vm2666_vm10, 1.0, %v2478_v35 }
 0x160   : > { %1743 = vmatpush.bf16.msra.mxu3 %v2271_v5 }
 0x161   : > { %v883_v26 = vpack.c.b16 %v882_v22, %v882_v22  ;;  %v2656_v28 = vpack.c.b16 %v882_v22, %v902_v21  ;;  %v1015_v21 = vmul.f32 %v2012_v12, %v999_v8  ;;  %v1016_v22 = vmul.f32 %v2013_v13, %v1000_v9  ;;  %1500 = vmatpush.bf16.msrb.mxu0 %v2139_v18  ;;  %v2376_v13 = vld [vmem:[#allocation2 + $0x19c] sm:$0xf]  ;;  %v2378_v18 = vld [vmem:[#allocation2 + $0x1a8] sm:$0xf0] }
 0x162   : > { %v2231_v17 = vor.u32 %v2376_v13, %v2228_v15 }
 0x163   : > { %v885_v34 = vshrl.u32 %v883_v26, 16  ;;  %1247 = vmatmul.bf16.gmra.mxu3 %v2656_v28  ;;  %1265 = vmatmul.bf16.gmra.mxu0 %v2628_v51  ;;  %v927_v26 = vshll.u32 %v2636_v41, 16  ;;  %v2722_v30 = vpack.c.bf16 %v1016_v22, %v1015_v21  ;;  %v935_v4 = vshll.u32 %v2656_v28, 16  ;;  %v2216_v21 = vld [vmem:[#allocation2 + $0x18c] sm:$0xf0] }
 0x164   : > { %1303 = vmatmul.bf16.gmra.mxu1 %v2656_v28 }
 0x165   : > { %v887_v44 = vrot.slane %v885_v34, 3  ;;  %v980_v34 = vrot.slane %v927_v26, 1  ;;  %1501 = vmatpush.bf16.msrb.mxu0 %v2127_v29  ;;  %v929_v0 = vor.u32 %v927_v26, %v2738_v38  ;;  %v983_v10 = vrot.slane %v935_v4, 1 }
 0x167   : > { %v945_v55 = vsel %vm2681_vm11, %v887_v44, %v914_v39  ;;  %v2252_v39 = vld [vmem:[#allocation2 + $0x1d4] sm:$0xf0]  ;;  %v2384_v44 = vld [vmem:[#allocation2 + $0x1d8] sm:$0xf0]  ;;  %v981_v19 = vsel %vm974_vm7, %v979_v42, %v980_v34  ;;  %v930_v5 = vsel %vm907_vm4, %v2703_v27, %v929_v0  ;;  %v2234_v27 = vld [vmem:[#allocation2 + $0x1a0] sm:$0xf]  ;;  %v982_v16 = vor.u32 %v980_v34, %v924_v20 }
 0x168   : > { %v946_v61 = vunpack.c.l.bf16 %v945_v55  ;;  %v947_v62 = vunpack.c.h.bf16 %v945_v55  ;;  %v2255_v43 = vor.u32 %v2382_v24, %v2252_v39  ;;  %v2259_v49 = vor.u32 %v2384_v44, %v2258_v40 }
 0x169   : > { %v965_v55 = vmul.f32 %v2007_v32, %v949_v37  ;;  %v1001_v56 = vunpack.c.l.bf16 %v981_v19  ;;  %v1002_v57 = vunpack.c.h.bf16 %v981_v19  ;;  %v950_v11 = vunpack.c.l.bf16 %v930_v5 }
 0x16a   : > { %v962_v6 = vmul.f32 %v2004_v36, %v946_v61  ;;  %v963_v7 = vmul.f32 %v2005_v45, %v947_v62  ;;  %v948_v36 = vunpack.c.l.bf16 %v922_v3  ;;  %v2379_v45 = vld [vmem:[#allocation2 + $0x1b4] sm:$0xf]  ;;  %1715 = vmatpush.bf16.msra.mxu2 %v2255_v43  ;;  %1744 = vmatpush.bf16.msra.mxu3 %v2259_v49  ;;  %v753_v61 = vand.u32 7, %v717_v48 }
 0x16b   : > { %v2243_v54 = vor.u32 %v2379_v45, %v2240_v47  ;;  %v760_v62 = vand.u32 7, %v718_v53  ;;  %v1017_v1 = vmul.f32 %v2014_v58, %v1001_v56  ;;  %v1018_v2 = vmul.f32 %v2015_v59, %v1002_v57 }
 0x16c   : > { %v2711_v14 = vpack.c.bf16 %v963_v7, %v962_v6  ;;  %v964_v51 = vmul.f32 %v2006_v31, %v948_v36  ;;  %vm821_vm0 = vcmp.ne.s32.totalorder %v753_v61, 0  ;;  %v932_v7 = vshrl.u32 %v2656_v28, 16 }
 0x16d   : > { %vm822_vm1 = vcmp.ne.s32.totalorder %v760_v62, 0  ;;  %v2749_v6 = vpack.c.bf16 %v1018_v2, %v1017_v1  ;;  %v2008_v8 = vsel %vm821_vm0, 1.0, %v2478_v35  ;;  %v951_v12 = vunpack.c.h.bf16 %v930_v5 }
 0x16e   : > { %1445 = vmatmul.bf16.vlgmr.msrb.gmra.mxu2 %v2711_v14  ;;  %v2742_v60 = vpack.c.bf16 %v965_v55, %v964_v51  ;;  %1745 = vmatpush.bf16.msra.mxu3 %v2247_v33  ;;  %v2009_v9 = vsel %vm822_vm1, 1.0, %v2478_v35  ;;  %v2235_v22 = vor.u32 %v2378_v18, %v2234_v27  ;;  %vm853_vm2 = vcmp.ne.s32.totalorder %v753_v61, 7 }
 0x16f   : > { %1716 = vmatpush.bf16.msra.mxu2 %v2243_v54  ;;  %v984_v26 = vsel %vm974_vm7, %v982_v16, %v983_v10  ;;  %v966_v29 = vmul.f32 %v2008_v8, %v950_v11  ;;  %v967_v31 = vmul.f32 %v2009_v9, %v951_v12  ;;  %vm854_vm3 = vcmp.ne.s32.totalorder %v760_v62, 7 }
 0x170   : > { %v2223_v32 = vor.u32 %v2375_v25, %v2222_v23  ;;  %v934_v36 = vrot.slane %v932_v7, 7  ;;  %v1004_v20 = vunpack.c.h.bf16 %v984_v26  ;;  %v719_v34 = vadd.s32 48, %v2641_v46 }
 0x171   : > { %v720_v37 = vadd.s32 56, %v2641_v46  ;;  %v2016_v24 = vsel %vm853_vm2, 1.0, %v2478_v35  ;;  %v2017_v39 = vsel %vm854_vm3, 1.0, %v2478_v35  ;;  %v972_v40 = vpack.c.bf16 %v967_v31, %v966_v29 }
 0x172   : > { %1746 = vmatpush.bf16.msra.mxu3 %v2235_v22  ;;  %v990_v42 = vpack.c.b16 %v2616_v63, %v2616_v63  ;;  %v937_v43 = vor.u32 %v935_v4, %v934_v36  ;;  %v1020_v45 = vmul.f32 %v2017_v39, %v1004_v20  ;;  %v767_v47 = vand.u32 7, %v719_v34 }
 0x173   : > { %1270 = vmatmul.bf16.gmra.mxu0 %v2636_v41  ;;  %1473 = vmatmul.bf16.vlgmr.msrb.gmra.mxu3 %v2711_v14  ;;  %v1003_v41 = vunpack.c.l.bf16 %v984_v26  ;;  %v774_v48 = vand.u32 7, %v720_v37  ;;  %v985_v52 = vor.u32 %v983_v10, %v932_v7  ;;  %vm1846_vm7 = vcmask 519168  }
 0x174   : > { %1691 = vmatmul.bf16.vlgmr.msra.gmra.mxu1 %v2722_v30  ;;  %1717 = vmatpush.bf16.msra.mxu2 %v2231_v17  ;;  %v992_v49 = vshll.u32 %v990_v42, 16  ;;  %v938_v46 = vsel %vm907_vm4, %v2738_v38, %v937_v43  ;;  %vm823_vm6 = vcmp.ne.s32.totalorder %v767_v47, 0  ;;  %vm855_vm4 = vcmp.ne.s32.totalorder %v767_v47, 7 }
 0x175   : > { %v1019_v44 = vmul.f32 %v2016_v24, %v1003_v41  ;;  %vm824_vm8 = vcmp.ne.s32.totalorder %v774_v48, 0  ;;  %v952_v63 = vunpack.c.l.bf16 %v938_v46  ;;  %v953_v19 = vunpack.c.h.bf16 %v938_v46 }
 0x176   : > { %1747 = vmatpush.bf16.msra.mxu3 %v2223_v32  ;;  %v994_v53 = vrot.slane %v992_v49, 1  ;;  %v2010_v54 = vsel %vm823_vm6, 1.0, %v2478_v35  ;;  %v2011_v51 = vsel %vm824_vm8, 1.0, %v2478_v35  ;;  %vm856_vm10 = vcmp.ne.s32.totalorder %v774_v48, 7 }
 0x177   : > { %v1025_v50 = vpack.c.bf16 %v1020_v45, %v1019_v44  ;;  %v968_v33 = vmul.f32 %v2010_v54, %v952_v63  ;;  %v969_v38 = vmul.f32 %v2011_v51, %v953_v19  ;;  %v2019_v58 = vsel %vm856_vm10, 1.0, %v2478_v35 }
 0x178   : > { %v998_v55 = vsel %vm997_vm9, %v985_v52, %v994_v53 }
 0x179   : > { %v1005_v56 = vunpack.c.l.bf16 %v998_v55  ;;  %v1006_v57 = vunpack.c.h.bf16 %v998_v55  ;;  %v973_v59 = vpack.c.bf16 %v969_v38, %v968_v33 }
 0x17b   : > { %v1022_v62 = vmul.f32 %v2019_v58, %v1006_v57 }
 0x17e   : > { %1450 = vmatmul.bf16.gmra.mxu2 %v2742_v60 }
 0x183   : > { %1275 = vmatmul.bf16.gmra.mxu0 %v2656_v28  ;;  %1478 = vmatmul.bf16.gmra.mxu3 %v2742_v60  ;;  %v2373_v28 = vld [vmem:[#allocation2 + $0x184] sm:$0xf] }
 0x184   : > { %1696 = vmatmul.bf16.gmra.mxu1 %v2749_v6  ;;  %v2219_v3 = vor.u32 %v2373_v28, %v2216_v21 }
 0x186   : > { %1718 = vmatpush.bf16.msra.mxu2 %v2219_v3 }
 0x18e   : > { %1455 = vmatmul.bf16.gmra.mxu2 %v972_v40 }
 0x193   : > { %1483 = vmatmul.bf16.gmra.mxu3 %v972_v40  ;;  %1502 = vmatmul.bf16.vlgmr.msrb.gmra.mxu0 %v2711_v14  ;;  %v2018_v14 = vsel %vm855_vm4, 1.0, %v2478_v35 }
 0x194   : > { %1701 = vmatmul.bf16.gmra.mxu1 %v1025_v50  ;;  %v1021_v61 = vmul.f32 %v2018_v14, %v1005_v56 }
 0x196   : > { %v1026_v0 = vpack.c.bf16 %v1022_v62, %v1021_v61 }
 0x19e   : > { %1460 = vmatmul.bf16.gmra.mxu2 %v973_v59 }
 0x1a3   : > { %1488 = vmatmul.bf16.gmra.mxu3 %v973_v59  ;;  %1506 = vmatmul.bf16.gmra.mxu0 %v2742_v60 }
 0x1a4   : > { %1706 = vmatmul.bf16.gmra.mxu1 %v1026_v0 }
 0x1ae   : > { %1719 = vmatmul.bf16.vlgmr.msra.gmra.mxu2 %v2722_v30 }
 0x1b0   : > { %v1233_v1 = vpop.f32.mrf.mxu0  ;;  %v1290_v2 = vpop.f32.mrf.mxu1 }
 0x1b3   : > { %1511 = vmatmul.bf16.gmra.mxu0 %v972_v40  ;;  %1748 = vmatmul.bf16.vlgmr.msra.gmra.mxu3 %v2722_v30 }
 0x1b8   : > { %v1235_v4 = vpop.f32.mrf.mxu0  ;;  %v2777_v5 = vpop.f32.mrf.mxu1 }
 0x1be   : > { %1724 = vmatmul.bf16.gmra.mxu2 %v2749_v6 }
 0x1c0   : > { %v1238_v35 = vpop.f32.mrf.mxu0  ;;  %v2780_v7 = vpop.f32.mrf.mxu1 }
 0x1c3   : > { %1516 = vmatmul.bf16.gmra.mxu0 %v973_v59  ;;  %1752 = vmatmul.bf16.gmra.mxu3 %v2749_v6 }
 0x1c8   : > { %v1240_v60 = vpop.f32.mrf.mxu0  ;;  %v2783_v8 = vpop.f32.mrf.mxu1 }
 0x1ce   : > { %1729 = vmatmul.bf16.gmra.mxu2 %v1025_v50 }
 0x1d0   : > { %v1261_v9 = vpop.f32.mrf.mxu0 }
 0x1d1   : > { %v2785_v10 = vpop.f32.mrf.mxu1 }
 0x1d3   : > { %1757 = vmatmul.bf16.gmra.mxu3 %v1025_v50 }
 0x1d6   : > { %v1243_v30 = vpop.f32.mrf.mxu3 }
 0x1d8   : > { %v1263_v11 = vpop.f32.mrf.mxu0 }
 0x1d9   : > { %v2787_v12 = vpop.f32.mrf.mxu1 }
 0x1de   : > { %v1245_v13 = vpop.f32.mrf.mxu3  ;;  %1734 = vmatmul.bf16.gmra.mxu2 %v1026_v0 }
 0x1e0   : > { %v1266_v15 = vpop.f32.mrf.mxu0 }
 0x1e1   : > { %v2789_v27 = vpop.f32.mrf.mxu1 }
 0x1e3   : > { %1762 = vmatmul.bf16.gmra.mxu3 %v1026_v0 }
 0x1e6   : > { %v1248_v16 = vpop.f32.mrf.mxu3 }
 0x1e8   : > { %v1268_v6 = vpop.f32.mrf.mxu0 }
 0x1e9   : > { %v2791_v17 = vpop.f32.mrf.mxu1 }
 0x1ee   : > { %v1250_v18 = vpop.f32.mrf.mxu3 }
 0x1f0   : > { %v1271_v28 = vpop.f32.mrf.mxu0 }
 0x1f1   : > { %v1692_v21 = vpop.f32.mrf.mxu1  ;;  %v1446_v22 = vpop.f32.mrf.mxu2 }
 0x1f2   : > { %v1447_v23 = vadd.f32 %v1446_v22, %v1233_v1 }
 0x1f4   : > { %v1768_v25 = vadd.f32 %v1692_v21, %v1447_v23 }
 0x1f6   : > { %v1474_v26 = vpop.f32.mrf.mxu3 }
 0x1f7   : > { %v1475_v3 = vadd.f32 %v1474_v26, %v1261_v9  ;;  %v2815_v26 = vld [vmem:[%s2889_s10] ss:$0 sm:$0xff] }
 0x1f8   : > { %v1273_v29 = vpop.f32.mrf.mxu0 }
 0x1f9   : > { %v1694_v31 = vpop.f32.mrf.mxu1  ;;  %v1448_v32 = vpop.f32.mrf.mxu2 }
 0x1fa   : > { %v1449_v36 = vadd.f32 %v1448_v32, %v1235_v4 }
 0x1fc   : > { %v1770_v41 = vadd.f32 %v1694_v31, %v1449_v36  ;;  %v2820_v31 = vld [vmem:[%s2890_s11] ss:$0 sm:$0xff] }
 0x1fe   : > { %v1476_v20 = vpop.f32.mrf.mxu3 }
 0x1ff   : > { %v1477_v34 = vadd.f32 %v1476_v20, %v1263_v11 }
 0x200   : > { %v1276_v37 = vpop.f32.mrf.mxu0 }
 0x201   : > { %v1697_v24 = vpop.f32.mrf.mxu1  ;;  %v1451_v39 = vpop.f32.mrf.mxu2 }
 0x202   : > { %v1452_v40 = vadd.f32 %v1451_v39, %v1238_v35 }
 0x204   : > { %v2793_v42 = vadd.f32 %v1697_v24, %v1452_v40 }
 0x206   : > { %v1479_v43 = vpop.f32.mrf.mxu3 }
 0x207   : > { %v1480_v44 = vadd.f32 %v1479_v43, %v1266_v15 }
 0x208   : > { %v2795_v45 = vpop.f32.mrf.mxu0 }
 0x209   : > { %v1699_v47 = vpop.f32.mrf.mxu1  ;;  %v1453_v48 = vpop.f32.mrf.mxu2 }
 0x20a   : > { %v1454_v49 = vadd.f32 %v1453_v48, %v1240_v60 }
 0x20c   : > { %v2797_v46 = vadd.f32 %v1699_v47, %v1454_v49 }
 0x20e   : > { %v1481_v50 = vpop.f32.mrf.mxu3 }
 0x20f   : > { %v1482_v52 = vadd.f32 %v1481_v50, %v1268_v6 }
 0x210   : > { %v1503_v63 = vpop.f32.mrf.mxu0 }
 0x211   : > { %v1702_v19 = vpop.f32.mrf.mxu1  ;;  %v1456_v53 = vpop.f32.mrf.mxu2 }
 0x212   : > { %v1457_v54 = vadd.f32 %v1456_v53, %v1243_v30 }
 0x214   : > { %v2799_v51 = vadd.f32 %v1702_v19, %v1457_v54 }
 0x216   : > { %v1484_v55 = vpop.f32.mrf.mxu3 }
 0x217   : > { %v1485_v33 = vadd.f32 %v1484_v55, %v1271_v28 }
 0x218   : > { %v1504_v9 = vpop.f32.mrf.mxu0 }
 0x219   : > { %v1704_v38 = vpop.f32.mrf.mxu1  ;;  %v1458_v56 = vpop.f32.mrf.mxu2  ;;  %v1505_v21 = vadd.f32 %v1504_v9, %v2777_v5 }
 0x21a   : > { %v1459_v57 = vadd.f32 %v1458_v56, %v1245_v13 }
 0x21c   : > { %v2801_v14 = vadd.f32 %v1704_v38, %v1459_v57 }
 0x21e   : > { %v1486_v58 = vpop.f32.mrf.mxu3 }
 0x21f   : > { %v2803_v59 = vadd.f32 %v1486_v58, %v1273_v29 }
 0x220   : > { %v1507_v15 = vpop.f32.mrf.mxu0 }
 0x221   : > { %v1707_v61 = vpop.f32.mrf.mxu1  ;;  %v1461_v62 = vpop.f32.mrf.mxu2 }
 0x222   : > { %v1462_v0 = vadd.f32 %v1461_v62, %v1248_v16 }
 0x224   : > { %v2805_v1 = vadd.f32 %v1707_v61, %v1462_v0 }
 0x226   : > { %v1489_v2 = vpop.f32.mrf.mxu3 }
 0x227   : > { %v2807_v4 = vadd.f32 %v1489_v2, %v1276_v37 }
 0x228   : > { %v1509_v36 = vpop.f32.mrf.mxu0 }
 0x229   : > { %v1709_v35 = vpop.f32.mrf.mxu1  ;;  %v1463_v60 = vpop.f32.mrf.mxu2  ;;  %v1510_v49 = vadd.f32 %v1509_v36, %v2783_v8 }
 0x22e   : > { %v2809_v30 = vpop.f32.mrf.mxu3 }
 0x230   : > { %v1512_v47 = vpop.f32.mrf.mxu0 }
 0x231   : > { %v1720_v11 = vpop.f32.mrf.mxu2 }
 0x232   : > { %v1769_v16 = vadd.f32 %v1720_v11, %v1475_v3  ;;  %v1508_v3 = vadd.f32 %v1507_v15, %v2780_v7 }
 0x236   : > { %v1749_v13 = vpop.f32.mrf.mxu3 }
 0x238   : > { %v1514_v58 = vpop.f32.mrf.mxu0 }
 0x239   : > { %v1722_v6 = vpop.f32.mrf.mxu2 }
 0x23a   : > { %v1771_v18 = vadd.f32 %v1722_v6, %v1477_v34 }
 0x23c   : > { %v1791_v28 = vadd.f32 %v1771_v18, %v1768_v25 }
 0x23e   : > { %v1750_v22 = vpop.f32.mrf.mxu3 }
 0x23f   : > { %v1772_v23 = vadd.f32 %v1750_v22, %v1505_v21 }
 0x240   : > { %v1517_v18 = vpop.f32.mrf.mxu0 }
 0x241   : > { %v1798_v29 = vadd.f32 %v1772_v23, %v1769_v16  ;;  %v1725_v32 = vpop.f32.mrf.mxu2 }
 0x242   : > { %v1774_v25 = vadd.f32 %v1725_v32, %v1480_v44 }
 0x243   : > { %v1810_v5 = vmul.f32 %v2815_v26, %v1798_v29 }
 0x244   : > { %v1792_v20 = vadd.f32 %v1774_v25, %v1770_v41  ;;  %v1492_v25 = vadd.f32 %v2809_v30, %v2795_v45 }
 0x245   : > { %v1822_v34 = vadd.f32 %v2820_v31, %v1810_v5 }
 0x246   : > { %v1753_v37 = vpop.f32.mrf.mxu3 }
 0x247   : > { %v1830_v24 = vmax.f32 %v1822_v34, 0.0  ;;  %v1775_v39 = vadd.f32 %v1753_v37, %v1508_v3 }
 0x249   : > { %v1838_v40 = vpack.c.bf16 %v1830_v24, %v1830_v24  ;;  %v1799_v43 = vadd.f32 %v1791_v28, %v1775_v39  ;;  %v1727_v44 = vpop.f32.mrf.mxu2 }
 0x24a   : > { %v1777_v41 = vadd.f32 %v1727_v44, %v1482_v52 }
 0x24b   : > { %1847 = vst.msk [vmem:[%s2830_s19] sm:$0xf] %vm1846_vm7, %v1838_v40  ;;  %v1811_v7 = vmul.f32 %v2815_v26, %v1799_v43 }
 0x24c   : > { %v1793_v48 = vadd.f32 %v1777_v41, %v2793_v42  ;;  %v1513_v42 = vadd.f32 %v1512_v47, %v2785_v10  ;;  %v1515_v10 = vadd.f32 %v1514_v58, %v2787_v12  ;;  %v1518_v12 = vadd.f32 %v1517_v18, %v2789_v27 }
 0x24d   : > { %v1823_v50 = vadd.f32 %v2820_v31, %v1811_v7 }
 0x24e   : > { %v1755_v63 = vpop.f32.mrf.mxu3 }
 0x24f   : > { %v1831_v19 = vmax.f32 %v1823_v50, 0.0  ;;  %v1778_v53 = vadd.f32 %v1755_v63, %v1510_v49 }
 0x251   : > { %v1839_v54 = vpack.c.bf16 %v1831_v19, %v1831_v19  ;;  %v1800_v55 = vadd.f32 %v1792_v20, %v1778_v53  ;;  %v1730_v38 = vpop.f32.mrf.mxu2 }
 0x252   : > { %v1780_v56 = vadd.f32 %v1730_v38, %v1485_v33 }
 0x253   : > { %1848 = vst.msk [vmem:[%s2830_s19 + $0x4] sm:$0xf] %vm1846_vm7, %v1839_v54  ;;  %v1812_v52 = vmul.f32 %v2815_v26, %v1800_v55 }
 0x254   : > { %v1794_v57 = vadd.f32 %v1780_v56, %v2797_v46 }
 0x255   : > { %v1824_v8 = vadd.f32 %v2820_v31, %v1812_v52 }
 0x256   : > { %v1758_v61 = vpop.f32.mrf.mxu3 }
 0x257   : > { %v1832_v62 = vmax.f32 %v1824_v8, 0.0  ;;  %v1781_v0 = vadd.f32 %v1758_v61, %v1513_v42 }
 0x259   : > { %v1840_v2 = vpack.c.bf16 %v1832_v62, %v1832_v62  ;;  %v1801_v35 = vadd.f32 %v1793_v48, %v1781_v0  ;;  %v1732_v60 = vpop.f32.mrf.mxu2 }
 0x25a   : > { %v1783_v33 = vadd.f32 %v1732_v60, %v2803_v59 }
 0x25b   : > { %1849 = vst.msk [vmem:[%s2830_s19 + $0x8] sm:$0xf] %vm1846_vm7, %v1840_v2  ;;  %v1813_v9 = vmul.f32 %v2815_v26, %v1801_v35 }
 0x25c   : > { %v1795_v46 = vadd.f32 %v1783_v33, %v2799_v51 }
 0x25d   : > { %v1825_v11 = vadd.f32 %v2820_v31, %v1813_v9 }
 0x25e   : > { %v1760_v13 = vpop.f32.mrf.mxu3 }
 0x25f   : > { %v1833_v15 = vmax.f32 %v1825_v11, 0.0  ;;  %v1784_v6 = vadd.f32 %v1760_v13, %v1515_v10 }
 0x261   : > { %v1841_v28 = vpack.c.bf16 %v1833_v15, %v1833_v15  ;;  %v1802_v21 = vadd.f32 %v1794_v57, %v1784_v6  ;;  %v1735_v22 = vpop.f32.mrf.mxu2 }
 0x262   : > { %v1786_v59 = vadd.f32 %v1735_v22, %v2807_v4  ;;  %v1519_v4 = vpop.f32.mrf.mxu0 }
 0x263   : > { %1850 = vst.msk [vmem:[%s2830_s19 + $0xc] sm:$0xf] %vm1846_vm7, %v1841_v28  ;;  %v1814_v16 = vmul.f32 %v2815_v26, %v1802_v21  ;;  %v1520_v37 = vadd.f32 %v1519_v4, %v2791_v17 }
 0x264   : > { %v1796_v51 = vadd.f32 %v1786_v59, %v2801_v14 }
 0x265   : > { %v1826_v23 = vadd.f32 %v2820_v31, %v1814_v16 }
 0x266   : > { %v1763_v29 = vpop.f32.mrf.mxu3 }
 0x267   : > { %v1834_v32 = vmax.f32 %v1826_v23, 0.0  ;;  %v1787_v36 = vadd.f32 %v1763_v29, %v1518_v12 }
 0x269   : > { %v1842_v5 = vpack.c.bf16 %v1834_v32, %v1834_v32  ;;  %v1803_v20 = vadd.f32 %v1795_v46, %v1787_v36  ;;  %v1737_v3 = vpop.f32.mrf.mxu2 }
 0x26a   : > { %v1788_v34 = vadd.f32 %v1737_v3, %v1492_v25 }
 0x26b   : > { %1851 = vst.msk [vmem:[%s2830_s19 + $0x10] sm:$0xf] %vm1846_vm7, %v1842_v5  ;;  %v1815_v14 = vmul.f32 %v2815_v26, %v1803_v20 }
 0x26c   : > { %v1797_v27 = vadd.f32 %v1788_v34, %v2805_v1 }
 0x26d   : > { %v1827_v24 = vadd.f32 %v2820_v31, %v1815_v14 }
 0x26e   : > { %v1817_v45 = vmul.f32 %v2815_v26, %v1797_v27  ;;  %v1765_v30 = vpop.f32.mrf.mxu3 }
 0x26f   : > { %v1835_v39 = vmax.f32 %v1827_v24, 0.0  ;;  %v1789_v40 = vadd.f32 %v1765_v30, %v1520_v37 }
 0x270   : > { %v1829_v43 = vadd.f32 %v2820_v31, %v1817_v45 }
 0x271   : > { %v1843_v44 = vpack.c.bf16 %v1835_v39, %v1835_v39  ;;  %v1804_v41 = vadd.f32 %v1796_v51, %v1789_v40 }
 0x272   : > { %v1837_v7 = vmax.f32 %v1829_v43, 0.0 }
 0x273   : > { %1852 = vst.msk [vmem:[%s2830_s19 + $0x14] sm:$0xf] %vm1846_vm7, %v1843_v44  ;;  %v1816_v47 = vmul.f32 %v2815_v26, %v1804_v41 }
 0x274   : > { %v1845_v1 = vpack.c.bf16 %v1837_v7, %v1837_v7 }
 0x275   : > { %v1828_v17 = vadd.f32 %v2820_v31, %v1816_v47 }
 0x276   : > { %1854 = vst.msk [vmem:[%s2830_s19 + $0x1c] sm:$0xf] %vm1846_vm7, %v1845_v1 }
 0x277   : > { %v1836_v48 = vmax.f32 %v1828_v17, 0.0 }
 0x279   : > { %v1844_v49 = vpack.c.bf16 %v1836_v48, %v1836_v48 }
 0x27b   : > { %1853 = vst.msk [vmem:[%s2830_s19 + $0x18] sm:$0xf] %vm1846_vm7, %v1844_v49 }
 0x27c PF: > { %s23_s21 = sadd.s32 1, %s2473_s21  }
 0x27d   : > { %p20_p7 = scmp.ge.s32.totalorder %s23_s21, 4  }
 0x27f   :  { %22 = sbr.rel (!%p20_p7) target bundleno = 1 (0x1), region = 108 }
 0x284   :  { %1876 = vsyncpa [#allocation3], 1 }
 0x285   :  { %1878 = vsyncpa [#allocation3 + $0x1], 1 }

// kernel: decoder26_forward.3
= control target key start
LH: loop header
LB: loop body
LE: loop exit
PB: predicated region body
PF: predicated region fallthrough
CT: control target
= control target key end

     0   :  { %s5070_s17 = smov 0   ;;  %s7016_s0 = inlined_call_operand.vmem [shape: bf16[2,64,64], index: 0, kind: input, shape index: {}]   ;;  %s7017_s1 = inlined_call_operand.vmem [shape: bf16[2,256,16], index: 1, kind: input, shape index: {}]   ;;  %s7018_s2 = inlined_call_operand.vmem [shape: bf16[256,64], index: 2, kind: input, shape index: {}]   ;;  %s7019_s3 = inlined_call_operand.vmem [shape: bf16[16,8], index: 3, kind: input, shape index: {}]   ;;  %s7020_s4 = inlined_call_operand.vmem [shape: f32[1,8], index: 4, kind: input, shape index: {}]   ;;  %s7021_s5 = inlined_call_operand.vmem [shape: f32[1,8], index: 5, kind: input, shape index: {}]   ;;  %s7022_s6 = inlined_call_operand.vmem [shape: bf16[3,72,384], index: 6, kind: input, shape index: {}]   ;;  %s7023_s7 = inlined_call_operand.vmem [shape: f32[1,64], index: 7, kind: input, shape index: {}]   ;;  %s7024_s8 = inlined_call_operand.vmem [shape: f32[1,64], index: 8, kind: input, shape index: {}]   ;;  %s7025_s9 = inlined_call_operand.vmem [shape: f32[64,8], index: 9, kind: input, shape index: {}]   ;;  %s7026_s10 = inlined_call_operand.vmem [shape: f32[1,8], index: 10, kind: input, shape index: {}]   ;;  %s7027_s11 = inlined_call_operand.vmem [shape: f32[2,256,8], index: 11, kind: output, shape index: {}]  }
   0x1 LB: > { %s4246_s18 = sadd.s32 4294967295, %s5005_s17   ;;  %p4250_p0 = scmp.ge.s32.totalorder %s5005_s17, 1  ;;  %s5005_s17 = sphi %s5070_s17, %s21_s17  }
   0x2   : > { %p347_p1 = scmp.lt.s32.totalorder %s5005_s17, 3 }
   0x4   : > { %p348_p2 = pnand %p4250_p0, %p347_p1 }
   0x6   : > { %351 = sbr.rel (%p348_p2) target bundleno = 1336 (0x538), region = 64 }
   0xb   : > { %v4866_v0 = vld [vmem:[%s7019_s3] sm:$0xff]  ;;  %p392_p3 = scmp.lt.s32.totalorder %s4246_s18, 1  ;;  %vm810_vm0 = vcmask 130048   ;;  %vm552_vm1 = vcmask 523264   ;;  %v4831_v12 = vld [vmem:[%s7018_s2 + $0x8] sm:$0xff]  ;;  %v4832_v14 = vld [vmem:[%s7018_s2 + $0x10] sm:$0xff] }
   0xc   : > { %866 = vmatpush.bf16.msra.mxu1 %v4866_v0  ;;  %v4830_v10 = vld [vmem:[%s7018_s2] sm:$0xff]  ;;  %v4833_v16 = vld [vmem:[%s7018_s2 + $0x18] sm:$0xff]  ;;  %s5007_s27 = smov 64   ;;  %v4835_v33 = vld [vmem:[%s7018_s2 + $0x28] sm:$0xff]  ;;  %vm2589_vm2 = vcmask 1043456   ;;  %vm2556_vm3 = vcmask 588800  }
   0xd   : > { %s7263_s18 = smov (!%p392_p3, %s4246_s18), 1  ;;  %v5129_v19 = vld [vmem:[%s7020_s4] ss:$0 sm:$0xff]  ;;  %v4836_v44 = vld [vmem:[%s7018_s2 + $0x30] sm:$0xff]  ;;  %v4837_v55 = vld [vmem:[%s7018_s2 + $0x38] sm:$0xff]  ;;  %vm2147_vm6 = vcmask 1040384  }
   0xe   : > { %s4828_s21 = sshll.u32 %s7263_s18, 7  ;;  %s4827_s25 = sshll.u32 %s7263_s18, 5  ;;  %v5136_v21 = vld [vmem:[%s7021_s5] ss:$0 sm:$0xff]  ;;  %vm2262_vm4 = vsmask.f32 7424 }
   0xf   : > { %s5087_s24 = scalar_lea.vmem %s7017_s1, %s4828_s21  ;;  %s396_s28 = scalar_lea.vmem %s7016_s0, %s4827_s25  ;;  %v4834_v22 = vld [vmem:[%s7018_s2 + $0x20] sm:$0xff]  ;;  %vm2003_vm5 = vsmask.f32 256  ;;  %vm2332_vm8 = vcmask 1047552  }
  0x10   : > { %v4850_v1 = vld [vmem:[%s5087_s24] sm:$0xff]  ;;  %v4851_v2 = vld [vmem:[%s5087_s24 + $0x8] sm:$0xff]  ;;  %v4852_v3 = vld [vmem:[%s5087_s24 + $0x10] sm:$0xff]  ;;  %s4829_s12 = sshll.u32 %s7263_s18, 8 }
  0x11   : > { %4421 = vmatmul.msk.bf16.vlgmr.msra.gmra.mxu1 %vm810_vm0, %v4850_v1  ;;  %v4853_v4 = vld [vmem:[%s5087_s24 + $0x18] sm:$0xff]  ;;  %v4848_v6 = vld [vmem:[%s396_s28 + $0x10] sm:$0xff]  ;;  %v4847_v7 = vld [vmem:[%s396_s28 + $0x8] sm:$0xff]  ;;  %s6816_s16 = scalar_lea.vmem %s7027_s11, %s4829_s12 }
  0x12   : > { %v4849_v5 = vld [vmem:[%s396_s28 + $0x18] sm:$0xff]  ;;  %v4854_v8 = vld [vmem:[%s5087_s24 + $0x20] sm:$0xff]  ;;  %v4855_v11 = vld [vmem:[%s5087_s24 + $0x28] sm:$0xff] }
  0x13   : > { %605 = vmatpush.bf16.msra.mxu0 %v4849_v5  ;;  %v4846_v9 = vld [vmem:[%s396_s28] sm:$0xff]  ;;  %v4856_v13 = vld [vmem:[%s5087_s24 + $0x30] sm:$0xff]  ;;  %v4857_v15 = vld [vmem:[%s5087_s24 + $0x38] sm:$0xff] }
  0x14   : > { %v4858_v17 = vld [vmem:[%s5087_s24 + $0x40] sm:$0xff]  ;;  %v4859_v30 = vld [vmem:[%s5087_s24 + $0x48] sm:$0xff]  ;;  %v4860_v41 = vld [vmem:[%s5087_s24 + $0x50] sm:$0xff] }
  0x15   : > { %v4861_v52 = vld [vmem:[%s5087_s24 + $0x58] sm:$0xff]  ;;  %v4862_v63 = vld [vmem:[%s5087_s24 + $0x60] sm:$0xff]  ;;  %vm5897_vm9 = vmand %vm2147_vm6, %vm2003_vm5 }
  0x16   : > { %vm2333_vm10 = vmand %vm2332_vm8, %vm2262_vm4 }
  0x17   : > { %606 = vmatpush.bf16.msra.mxu0 %v4848_v6 }
  0x1b   : > { %607 = vmatpush.bf16.msra.mxu0 %v4847_v7 }
  0x1f   : > { %608 = vmatpush.bf16.msra.mxu0 %v4846_v9 }
  0x21   : > { %4422 = vmatmul.msk.bf16.gmra.mxu1 %vm810_vm0, %v4851_v2 }
  0x22   : > { %4337 = vmatmul.msk.bf16.vlgmr.msra.gmra.mxu0 %vm552_vm1, %v4830_v10 }
  0x31   : > { %4423 = vmatmul.msk.bf16.gmra.mxu1 %vm810_vm0, %v4852_v3  ;;  %v4838_v3 = vld [vmem:[%s7018_s2 + $0x40] sm:$0xff] }
  0x32   : > { %4338 = vmatmul.msk.bf16.gmra.mxu0 %vm552_vm1, %v4831_v12  ;;  %v4863_v12 = vld [vmem:[%s5087_s24 + $0x68] sm:$0xff] }
  0x41   : > { %4424 = vmatmul.msk.bf16.gmra.mxu1 %vm810_vm0, %v4853_v4 }
  0x42   : > { %4339 = vmatmul.msk.bf16.gmra.mxu0 %vm552_vm1, %v4832_v14 }
  0x51   : > { %4425 = vmatmul.msk.bf16.gmra.mxu1 %vm810_vm0, %v4854_v8 }
  0x52   : > { %4340 = vmatmul.msk.bf16.gmra.mxu0 %vm552_vm1, %v4833_v16  ;;  %v4486_v16 = vld [vmem:[%s7022_s6 + $0xd4] sm:$0xf] }
  0x61   : > { %4426 = vmatmul.msk.bf16.gmra.mxu1 %vm810_vm0, %v4855_v11 }
  0x62   : > { %4341 = vmatmul.msk.bf16.gmra.mxu0 %vm552_vm1, %v4834_v22 }
  0x71   : > { %4427 = vmatmul.msk.bf16.gmra.mxu1 %vm810_vm0, %v4856_v13 }
  0x72   : > { %4342 = vmatmul.msk.bf16.gmra.mxu0 %vm552_vm1, %v4835_v33 }
  0x81   : > { %4428 = vmatmul.msk.bf16.gmra.mxu1 %vm810_vm0, %v4857_v15  ;;  %v4485_v15 = vld [vmem:[%s7022_s6 + $0xcc] sm:$0xff] }
  0x82   : > { %4343 = vmatmul.msk.bf16.gmra.mxu0 %vm552_vm1, %v4836_v44  ;;  %v2527_v22 = vunpack.c.h.b16 %v4485_v15 }
  0x8e   : > { %v868_v18 = vpop.f32.mrf.mxu1 }
  0x8f   : > { %v952_v20 = vmul.f32 %v5129_v19, %v868_v18  ;;  %v4839_v18 = vld [vmem:[%s7018_s2 + $0x48] sm:$0xff] }
  0x91   : > { %4429 = vmatmul.msk.bf16.gmra.mxu1 %vm810_vm0, %v4858_v17  ;;  %v988_v24 = vadd.f32 %v5136_v21, %v952_v20  ;;  %v2526_v20 = vunpack.c.l.b16 %v4485_v15  ;;  %v4881_v15 = vld [vmem:[%s7022_s6 + $0x7c] sm:$0xf0] }
  0x92   : > { %4344 = vmatmul.msk.bf16.gmra.mxu0 %vm552_vm1, %v4837_v55  ;;  %v4887_v55 = vld [vmem:[%s7022_s6 + $0xac] sm:$0xf0] }
  0x93   : > { %v1020_v27 = vmax.f32 %v988_v24, 0.0  ;;  %v2541_v24 = vpack.c.b16 %v2526_v20, %v2526_v20 }
  0x96   : > { %v870_v23 = vpop.f32.mrf.mxu1 }
  0x97   : > { %v953_v25 = vmul.f32 %v5129_v19, %v870_v23  ;;  %v2528_v23 = vunpack.c.l.b16 %v4486_v16 }
  0x99   : > { %v989_v26 = vadd.f32 %v5136_v21, %v953_v25  ;;  %v2542_v25 = vpack.c.b16 %v2527_v22, %v2527_v22 }
  0x9b   : > { %v1021_v28 = vmax.f32 %v989_v26, 0.0  ;;  %v2543_v26 = vpack.c.b16 %v2528_v23, %v2528_v23 }
  0x9d   : > { %v4914_v29 = vpack.i.bf16 %v1021_v28, %v1020_v27 }
  0x9e   : > { %v873_v31 = vpop.f32.mrf.mxu1 }
  0x9f   : > { %4915 = vrot.lane.b32.xlu0 %v4914_v29, %s5007_s27  ;;  %v954_v32 = vmul.f32 %v5129_v19, %v873_v31  ;;  %v5182_v2 = vpop.f32.mrf.mxu0  ;;  %v2594_v31 = vsel %vm2589_vm2, %v2542_v25, 0 }
  0xa0   : > { %2689 = vmatpush.bf16.msra.mxu3 %v2594_v31 }
  0xa1   : > { %4430 = vmatmul.msk.bf16.gmra.mxu1 %vm810_vm0, %v4859_v30  ;;  %v990_v35 = vadd.f32 %v5136_v21, %v954_v32  ;;  %v2591_v30 = vsel %vm2589_vm2, %v2541_v24, 0  ;;  %v2597_v32 = vsel %vm2589_vm2, %v2543_v26, 0 }
  0xa2   : > { %4345 = vmatmul.msk.bf16.gmra.mxu0 %vm552_vm1, %v4838_v3  ;;  %2602 = vmatpush.bf16.msra.mxu2 %v2591_v30 }
  0xa3   : > { %v1022_v38 = vmax.f32 %v990_v35, 0.0  ;;  %2778 = vmatpush.bf16.msrb.mxu1 %v2597_v32  ;;  %v4889_v35 = vld [vmem:[%s7022_s6 + $0xbc] sm:$0xf0] }
  0xa6   : > { %v875_v34 = vpop.f32.mrf.mxu1 }
  0xa7   : > { %v955_v36 = vmul.f32 %v5129_v19, %v875_v34  ;;  %v5191_v10 = vpop.f32.mrf.mxu0  ;;  %v4525_v34 = vld [vmem:[%s7022_s6 + $0xb4] sm:$0xf] }
  0xa9   : > { %v991_v37 = vadd.f32 %v5136_v21, %v955_v36  ;;  %v4888_v36 = vld [vmem:[%s7022_s6 + $0xb8] sm:$0xf] }
  0xab   : > { %v1023_v39 = vmax.f32 %v991_v37, 0.0  ;;  %v4526_v37 = vor.u32 %v4889_v35, %v4525_v34 }
  0xad   : > { %v4919_v40 = vpack.i.bf16 %v1023_v39, %v1022_v38  ;;  %v4527_v38 = vld [vmem:[%s7022_s6 + $0xc0] sm:$0xf0]  ;;  %v4533_v39 = vld [vmem:[%s7022_s6 + $0xbc] sm:$0xf]  ;;  %2603 = vmatpush.bf16.msra.mxu2 %v4526_v37 }
  0xae   : > { %v878_v42 = vpop.f32.mrf.mxu1  ;;  %v4530_v44 = vor.u32 %v4888_v36, %v4527_v38  ;;  %v4841_v36 = vld [vmem:[%s7018_s2 + $0x58] sm:$0xff] }
  0xaf   : > { %4920 = vrot.lane.b32.xlu0 %v4919_v40, %s5007_s27  ;;  %v956_v43 = vmul.f32 %v5129_v19, %v878_v42  ;;  %v5203_v17 = vpop.f32.mrf.mxu0  ;;  %v4890_v40 = vld [vmem:[%s7022_s6 + $0xc4] sm:$0xf0] }
  0xb0   : > { %2690 = vmatpush.bf16.msra.mxu3 %v4530_v44 }
  0xb1   : > { %4431 = vmatmul.msk.bf16.gmra.mxu1 %vm810_vm0, %v4860_v41  ;;  %v992_v46 = vadd.f32 %v5136_v21, %v956_v43 }
  0xb2   : > { %4346 = vmatmul.msk.bf16.gmra.mxu0 %vm552_vm1, %v4839_v18 }
  0xb3   : > { %v1024_v49 = vmax.f32 %v992_v46, 0.0  ;;  %v4864_v46 = vld [vmem:[%s5087_s24 + $0x70] sm:$0xff] }
  0xb6   : > { %v880_v45 = vpop.f32.mrf.mxu1 }
  0xb7   : > { %v957_v47 = vmul.f32 %v5129_v19, %v880_v45  ;;  %v5233_v43 = vpop.f32.mrf.mxu0  ;;  %v4534_v45 = vor.u32 %v4890_v40, %v4533_v39 }
  0xb9   : > { %v993_v48 = vadd.f32 %v5136_v21, %v957_v47  ;;  %2779 = vmatpush.bf16.msrb.mxu1 %v4534_v45 }
  0xbb   : > { %v1025_v50 = vmax.f32 %v993_v48, 0.0  ;;  %v4513_v48 = vld [vmem:[%s7022_s6 + $0x9c] sm:$0xf] }
  0xbd   : > { %v4924_v51 = vpack.i.bf16 %v1025_v50, %v1024_v49  ;;  %v4886_v49 = vld [vmem:[%s7022_s6 + $0xa4] sm:$0xf0]  ;;  %v4885_v50 = vld [vmem:[%s7022_s6 + $0xa0] sm:$0xf] }
  0xbe   : > { %v883_v53 = vpop.f32.mrf.mxu1 }
  0xbf   : > { %4925 = vrot.lane.b32.xlu1 %v4924_v51, %s5007_s27  ;;  %v958_v54 = vmul.f32 %v5129_v19, %v883_v53  ;;  %v4515_v53 = vld [vmem:[%s7022_s6 + $0xa8] sm:$0xf0]  ;;  %v5275_v3 = vpop.f32.mrf.mxu0 }
  0xc1   : > { %4432 = vmatmul.msk.bf16.gmra.mxu1 %vm810_vm0, %v4861_v52  ;;  %v994_v57 = vadd.f32 %v5136_v21, %v958_v54  ;;  %v4514_v52 = vor.u32 %v4886_v49, %v4513_v48  ;;  %v4521_v54 = vld [vmem:[%s7022_s6 + $0xa4] sm:$0xf] }
  0xc3   : > { %v1026_v60 = vmax.f32 %v994_v57, 0.0  ;;  %v4522_v57 = vor.u32 %v4887_v55, %v4521_v54  ;;  %2604 = vmatpush.bf16.msra.mxu2 %v4514_v52 }
  0xc5   : > { %2780 = vmatpush.bf16.msrb.mxu1 %v4522_v57 }
  0xc6   : > { %v885_v56 = vpop.f32.mrf.mxu1 }
  0xc7   : > { %v959_v58 = vmul.f32 %v5129_v19, %v885_v56  ;;  %v4518_v56 = vor.u32 %v4885_v50, %v4515_v53  ;;  %v5302_v26 = vpop.f32.mrf.mxu0 }
  0xc9   : > { %v995_v59 = vadd.f32 %v5136_v21, %v959_v58  ;;  %2691 = vmatpush.bf16.msra.mxu3 %v4518_v56  ;;  %v4501_v58 = vld [vmem:[%s7022_s6 + $0x84] sm:$0xf] }
  0xcb   : > { %v1027_v61 = vmax.f32 %v995_v59, 0.0  ;;  %v4883_v59 = vld [vmem:[%s7022_s6 + $0x8c] sm:$0xf0] }
  0xcd   : > { %v4929_v62 = vpack.i.bf16 %v1027_v61, %v1026_v60  ;;  %v4882_v60 = vld [vmem:[%s7022_s6 + $0x88] sm:$0xf]  ;;  %v4502_v61 = vor.u32 %v4883_v59, %v4501_v58  ;;  %v4842_v58 = vld [vmem:[%s7018_s2 + $0x60] sm:$0xff] }
  0xce   : > { %v888_v0 = vpop.f32.mrf.mxu1 }
  0xcf   : > { %4930 = vrot.lane.b32.xlu1 %v4929_v62, %s5007_s27  ;;  %v960_v1 = vmul.f32 %v5129_v19, %v888_v0  ;;  %v4503_v62 = vld [vmem:[%s7022_s6 + $0x90] sm:$0xf0]  ;;  %v4884_v0 = vld [vmem:[%s7022_s6 + $0x94] sm:$0xf0]  ;;  %2605 = vmatpush.bf16.msra.mxu2 %v4502_v61  ;;  %v5312_v35 = vpop.f32.mrf.mxu0 }
  0xd1   : > { %4433 = vmatmul.msk.bf16.gmra.mxu1 %vm810_vm0, %v4862_v63  ;;  %v996_v5 = vadd.f32 %v5136_v21, %v960_v1  ;;  %v4509_v63 = vld [vmem:[%s7022_s6 + $0x8c] sm:$0xf] }
  0xd3   : > { %v1028_v8 = vmax.f32 %v996_v5, 0.0  ;;  %v4510_v5 = vor.u32 %v4884_v0, %v4509_v63 }
  0xd5   : > { %2781 = vmatpush.bf16.msrb.mxu1 %v4510_v5 }
  0xd6   : > { %v890_v4 = vpop.f32.mrf.mxu1 }
  0xd7   : > { %v961_v6 = vmul.f32 %v5129_v19, %v890_v4  ;;  %v4506_v4 = vor.u32 %v4882_v60, %v4503_v62  ;;  %v5321_v44 = vpop.f32.mrf.mxu0 }
  0xd9   : > { %v997_v7 = vadd.f32 %v5136_v21, %v961_v6  ;;  %v4840_v6 = vld [vmem:[%s7018_s2 + $0x50] sm:$0xff]  ;;  %2692 = vmatpush.bf16.msra.mxu3 %v4506_v4 }
  0xda   : > { %4347 = vmatmul.msk.bf16.gmra.mxu0 %vm552_vm1, %v4840_v6 }
  0xdb   : > { %v1029_v9 = vmax.f32 %v997_v7, 0.0  ;;  %v4489_v7 = vld [vmem:[%s7022_s6 + $0x6c] sm:$0xf] }
  0xdd   : > { %v4934_v11 = vpack.i.bf16 %v1029_v9, %v1028_v8  ;;  %v4880_v8 = vld [vmem:[%s7022_s6 + $0x74] sm:$0xf0]  ;;  %v4879_v9 = vld [vmem:[%s7022_s6 + $0x70] sm:$0xf] }
  0xde   : > { %v893_v13 = vpop.f32.mrf.mxu1 }
  0xdf   : > { %4935 = vrot.lane.b32.xlu2 %v4934_v11, %s5007_s27  ;;  %v962_v14 = vmul.f32 %v5129_v19, %v893_v13  ;;  %v4491_v13 = vld [vmem:[%s7022_s6 + $0x78] sm:$0xf0]  ;;  %v5329_v54 = vpop.f32.mrf.mxu0 }
  0xe0   : > { %v4494_v20 = vor.u32 %v4879_v9, %v4491_v13 }
  0xe1   : > { %4434 = vmatmul.msk.bf16.gmra.mxu1 %vm810_vm0, %v4863_v12  ;;  %v998_v27 = vadd.f32 %v5136_v21, %v962_v14  ;;  %v4490_v12 = vor.u32 %v4880_v8, %v4489_v7  ;;  %v4497_v14 = vld [vmem:[%s7022_s6 + $0x74] sm:$0xf] }
  0xe2   : > { %v4498_v22 = vor.u32 %v4881_v15, %v4497_v14  ;;  %2693 = vmatpush.bf16.msra.mxu3 %v4494_v20  ;;  %v4843_v20 = vld [vmem:[%s7018_s2 + $0x68] sm:$0xff] }
  0xe3   : > { %v1030_v41 = vmax.f32 %v998_v27, 0.0  ;;  %2606 = vmatpush.bf16.msra.mxu2 %v4490_v12 }
  0xe4   : > { %2782 = vmatpush.bf16.msrb.mxu1 %v4498_v22 }
  0xe6   : > { %v895_v28 = vpop.f32.mrf.mxu1 }
  0xe7   : > { %v963_v29 = vmul.f32 %v5129_v19, %v895_v28  ;;  %v4865_v28 = vld [vmem:[%s5087_s24 + $0x78] sm:$0xff]  ;;  %v5350_v5 = vpop.f32.mrf.mxu0 }
  0xe9   : > { %v999_v33 = vadd.f32 %v5136_v21, %v963_v29  ;;  %v2463_v29 = vld [vmem:[%s7022_s6 + $0x60] sm:$0xff] }
  0xea   : > { %v2905_v31 = vunpack.c.h.b16 %v2463_v29  ;;  %4348 = vmatmul.msk.bf16.gmra.mxu0 %vm552_vm1, %v4841_v36 }
  0xeb   : > { %v1031_v42 = vmax.f32 %v999_v33, 0.0 }
  0xec   : > { %v2920_v32 = vpack.c.b16 %v2905_v31, %v2905_v31 }
  0xed   : > { %v4939_v47 = vpack.i.bf16 %v1031_v42, %v1030_v41 }
  0xee   : > { %v898_v51 = vpop.f32.mrf.mxu1  ;;  %v2986_v33 = vsel %vm2589_vm2, %v2920_v32, 0 }
  0xef   : > { %4940 = vrot.lane.b32.xlu2 %v4939_v47, %s5007_s27  ;;  %v964_v1 = vmul.f32 %v5129_v19, %v898_v51  ;;  %3081 = vmatpush.bf16.msrb.mxu2 %v2986_v33  ;;  %v2904_v51 = vunpack.c.l.b16 %v2463_v29  ;;  %v5358_v15 = vpop.f32.mrf.mxu0 }
  0xf1   : > { %4435 = vmatmul.msk.bf16.gmra.mxu1 %vm810_vm0, %v4864_v46  ;;  %v1000_v16 = vadd.f32 %v5136_v21, %v964_v1  ;;  %v2919_v57 = vpack.c.b16 %v2904_v51, %v2904_v51 }
  0xf3   : > { %v1032_v24 = vmax.f32 %v1000_v16, 0.0  ;;  %v2983_v63 = vsel %vm2589_vm2, %v2919_v57, 0 }
  0xf4   : > { %2994 = vmatpush.bf16.msrb.mxu0 %v2983_v63 }
  0xf6   : > { %v900_v11 = vpop.f32.mrf.mxu1 }
  0xf7   : > { %v965_v18 = vmul.f32 %v5129_v19, %v900_v11  ;;  %v5374_v36 = vpop.f32.mrf.mxu0 }
  0xf9   : > { %v1001_v23 = vadd.f32 %v5136_v21, %v965_v18 }
  0xfa   : > { %4349 = vmatmul.msk.bf16.gmra.mxu0 %vm552_vm1, %v4842_v58 }
  0xfb   : > { %v1033_v25 = vmax.f32 %v1001_v23, 0.0 }
  0xfd   : > { %v4944_v27 = vpack.i.bf16 %v1033_v25, %v1032_v24 }
  0xfe   : > { %v903_v30 = vpop.f32.mrf.mxu1 }
  0xff   : > { %4945 = vrot.lane.b32.xlu0 %v4944_v27, %s5007_s27  ;;  %v966_v34 = vmul.f32 %v5129_v19, %v903_v30 }
 0x101   : > { %4436 = vmatmul.msk.bf16.gmra.mxu1 %vm810_vm0, %v4865_v28  ;;  %v1002_v38 = vadd.f32 %v5136_v21, %v966_v34 }
 0x103   : > { %v1034_v41 = vmax.f32 %v1002_v38, 0.0 }
 0x106   : > { %v905_v37 = vpop.f32.mrf.mxu1 }
 0x107   : > { %v967_v39 = vmul.f32 %v5129_v19, %v905_v37 }
 0x109   : > { %v1003_v40 = vadd.f32 %v5136_v21, %v967_v39 }
 0x10a   : > { %4350 = vmatmul.msk.bf16.gmra.mxu0 %vm552_vm1, %v4843_v20 }
 0x10b   : > { %v1035_v42 = vmax.f32 %v1003_v40, 0.0 }
 0x10d   : > { %v4949_v45 = vpack.i.bf16 %v1035_v42, %v1034_v41 }
 0x10e   : > { %v908_v46 = vpop.f32.mrf.mxu1 }
 0x10f   : > { %4950 = vrot.lane.b32.xlu1 %v4949_v45, %s5007_s27  ;;  %v968_v48 = vmul.f32 %v5129_v19, %v908_v46 }
 0x111   : > { %v4916_v47 = vpop.permute.xlu0 %4915  ;;  %v1004_v59 = vadd.f32 %v5136_v21, %v968_v48 }
 0x112   : > { %v4918_v49 = vunpack.i.h.bf16 %v4916_v47  ;;  %v4917_v50 = vunpack.i.l.bf16 %v4916_v47 }
 0x113   : > { %v1036_v1 = vmax.f32 %v1004_v59, 0.0  ;;  %v5400_v59 = vpop.f32.mrf.mxu0 }
 0x114   : > { %v1180_v52 = vsel %vm552_vm1, %v5182_v2, %v4917_v50  ;;  %v1181_v53 = vsel %vm552_vm1, %v5191_v10, %v4918_v49 }
 0x115   : > { %v1212_v55 = vpack.c.bf16 %v1180_v52, %v1180_v52  ;;  %v1213_v56 = vpack.c.bf16 %v1181_v53, %v1181_v53  ;;  %v4876_v52 = vld [vmem:[%s7022_s6 + $0x4c] sm:$0xf]  ;;  %v4623_v53 = vld [vmem:[%s7022_s6 + $0x54] sm:$0xf0] }
 0x116   : > { %v910_v60 = vpop.f32.mrf.mxu1  ;;  %v4626_v58 = vor.u32 %v4876_v52, %v4623_v53 }
 0x117   : > { %v5335_v61 = vunpack.c.l.b16 %v1212_v55  ;;  %v1957_v62 = vunpack.c.l.b16 %v1213_v56  ;;  %v969_v2 = vmul.f32 %v5129_v19, %v910_v60  ;;  %v4844_v55 = vld [vmem:[%s7018_s2 + $0x70] sm:$0xff] }
 0x118   : > { %3082 = vmatpush.bf16.msrb.mxu2 %v4626_v58 }
 0x119   : > { %v5341_v10 = vpack.c.b16 %v1957_v62, %v5335_v61  ;;  %v1005_v0 = vadd.f32 %v5136_v21, %v969_v2 }
 0x11a   : > { %4351 = vmatmul.msk.bf16.gmra.mxu0 %vm552_vm1, %v4844_v55 }
 0x11b   : > { %v1037_v4 = vmax.f32 %v1005_v0, 0.0  ;;  %4535 = vmatmul.msk.bf16.vlgmr.msra.gmra.mxu2 %vm2556_vm3, %v5341_v10  ;;  %4551 = vmatmul.msk.bf16.vlgmr.msra.gmra.mxu3 %vm2556_vm3, %v5341_v10  ;;  %v7028_v22 = vshll.u32 %v5341_v10, 16  ;;  %v2005_v30 = vshrl.u32 %v5341_v10, 16 }
 0x11c   : > { %4567 = vmatmul.msk.bf16.vlgmr.msrb.gmra.mxu1 %vm2556_vm3, %v5341_v10 }
 0x11d   : > { %v4954_v6 = vpack.i.bf16 %v1037_v4, %v1036_v1  ;;  %v2263_v29 = vrot.slane %v7028_v22, 1  ;;  %v5377_v42 = vrot.slane %v2005_v30, 7 }
 0x11e   : > { %v913_v7 = vpop.f32.mrf.mxu1 }
 0x11f   : > { %4955 = vrot.lane.b32.xlu2 %v4954_v6, %s5007_s27  ;;  %v970_v12 = vmul.f32 %v5129_v19, %v913_v7  ;;  %v2264_v39 = vor.u32 %v2263_v29, %v2005_v30 }
 0x121   : > { %v4921_v8 = vpop.permute.xlu0 %4920  ;;  %v1006_v24 = vadd.f32 %v5136_v21, %v970_v12 }
 0x122   : > { %v4923_v9 = vunpack.i.h.bf16 %v4921_v8  ;;  %v4922_v11 = vunpack.i.l.bf16 %v4921_v8 }
 0x123   : > { %v1038_v31 = vmax.f32 %v1006_v24, 0.0 }
 0x124   : > { %v1182_v13 = vsel %vm552_vm1, %v5203_v17, %v4922_v11  ;;  %v1183_v14 = vsel %vm552_vm1, %v5233_v43, %v4923_v9 }
 0x125   : > { %v1214_v16 = vpack.c.bf16 %v1182_v13, %v1182_v13  ;;  %v1215_v18 = vpack.c.bf16 %v1183_v14, %v1183_v14 }
 0x126   : > { %v915_v23 = vpop.f32.mrf.mxu1 }
 0x127   : > { %v1958_v25 = vunpack.c.l.b16 %v1214_v16  ;;  %v1959_v27 = vunpack.c.l.b16 %v1215_v18  ;;  %v971_v17 = vmul.f32 %v5129_v19, %v915_v23  ;;  %v5420_v18 = vpop.f32.mrf.mxu0 }
 0x129   : > { %v1988_v43 = vpack.c.b16 %v1959_v27, %v1958_v25  ;;  %v1007_v28 = vadd.f32 %v5136_v21, %v971_v17 }
 0x12b   : > { %v2015_v32 = vshll.u32 %v1988_v43, 16  ;;  %v1039_v33 = vmax.f32 %v1007_v28, 0.0  ;;  %4536 = vmatmul.msk.bf16.gmra.mxu2 %vm2556_vm3, %v1988_v43  ;;  %4552 = vmatmul.msk.bf16.gmra.mxu3 %vm2556_vm3, %v1988_v43  ;;  %v2012_v34 = vshrl.u32 %v1988_v43, 16 }
 0x12c   : > { %4568 = vmatmul.msk.bf16.gmra.mxu1 %vm2556_vm3, %v1988_v43 }
 0x12d   : > { %v2265_v37 = vrot.slane %v2015_v32, 1  ;;  %v4959_v38 = vpack.i.bf16 %v1039_v33, %v1038_v31  ;;  %v2014_v40 = vrot.slane %v2012_v34, 7 }
 0x12e   : > { %v918_v41 = vpop.f32.mrf.mxu1 }
 0x12f   : > { %4960 = vrot.lane.b32.xlu0 %v4959_v38, %s5007_s27  ;;  %v5380_v45 = vsel %vm2262_vm4, %v2264_v39, %v2265_v37  ;;  %v2017_v46 = vor.u32 %v2015_v32, %v2014_v40  ;;  %v972_v51 = vmul.f32 %v5129_v19, %v918_v41  ;;  %v2267_v20 = vor.u32 %v2265_v37, %v2012_v34  ;;  %v4621_v37 = vld [vmem:[%s7022_s6 + $0x48] sm:$0xf] }
 0x131   : > { %v4926_v47 = vpop.permute.xlu1 %4925  ;;  %v5384_v48 = vsel %vm2003_vm5, %v5377_v42, %v2017_v46  ;;  %v1008_v63 = vadd.f32 %v5136_v21, %v972_v51  ;;  %v5439_v46 = vpop.f32.mrf.mxu0 }
 0x132   : > { %v4928_v49 = vunpack.i.h.bf16 %v4926_v47  ;;  %v4927_v50 = vunpack.i.l.bf16 %v4926_v47  ;;  %v4877_v47 = vld [vmem:[%s7022_s6 + $0x50] sm:$0xf0] }
 0x133   : > { %v1040_v9 = vmax.f32 %v1008_v63, 0.0  ;;  %v4622_v51 = vor.u32 %v4877_v47, %v4621_v37  ;;  %v4845_v37 = vld [vmem:[%s7018_s2 + $0x78] sm:$0xff] }
 0x134   : > { %v1184_v56 = vsel %vm552_vm1, %v5275_v3, %v4927_v50  ;;  %v1185_v57 = vsel %vm552_vm1, %v5302_v26, %v4928_v49  ;;  %4352 = vmatmul.msk.bf16.gmra.mxu0 %vm552_vm1, %v4845_v37 }
 0x135   : > { %v1216_v60 = vpack.c.bf16 %v1184_v56, %v1184_v56  ;;  %v1217_v62 = vpack.c.bf16 %v1185_v57, %v1185_v57  ;;  %2995 = vmatpush.bf16.msrb.mxu0 %v4622_v51 }
 0x136   : > { %v920_v2 = vpop.f32.mrf.mxu1 }
 0x137   : > { %v1960_v0 = vunpack.c.l.b16 %v1216_v60  ;;  %v1961_v1 = vunpack.c.l.b16 %v1217_v62  ;;  %v973_v4 = vmul.f32 %v5129_v19, %v920_v2 }
 0x139   : > { %v5405_v6 = vpack.c.b16 %v1961_v1, %v1960_v0  ;;  %v1009_v3 = vadd.f32 %v5136_v21, %v973_v4  ;;  %v4936_v26 = vpop.permute.xlu2 %4935 }
 0x13a   : > { %v4938_v7 = vunpack.i.h.bf16 %v4936_v26  ;;  %v4937_v8 = vunpack.i.l.bf16 %v4936_v26 }
 0x13b   : > { %v1041_v11 = vmax.f32 %v1009_v3, 0.0  ;;  %4537 = vmatmul.msk.bf16.gmra.mxu2 %vm2556_vm3, %v5405_v6  ;;  %4553 = vmatmul.msk.bf16.gmra.mxu3 %vm2556_vm3, %v5405_v6  ;;  %v2023_v12 = vshll.u32 %v5405_v6, 16  ;;  %v2020_v13 = vshrl.u32 %v5405_v6, 16 }
 0x13c   : > { %v1188_v14 = vsel %vm552_vm1, %v5329_v54, %v4937_v8  ;;  %v1189_v16 = vsel %vm552_vm1, %v5350_v5, %v4938_v7  ;;  %4569 = vmatmul.msk.bf16.gmra.mxu1 %vm2556_vm3, %v5405_v6  ;;  %v5456_v7 = vpop.f32.mrf.mxu0 }
 0x13d   : > { %v1220_v23 = vpack.c.bf16 %v1188_v14, %v1188_v14  ;;  %v1221_v24 = vpack.c.bf16 %v1189_v16, %v1189_v16  ;;  %v4964_v25 = vpack.i.bf16 %v1041_v11, %v1040_v9  ;;  %v2268_v27 = vrot.slane %v2023_v12, 1 }
 0x13e   : > { %v923_v17 = vpop.f32.mrf.mxu1  ;;  %v2022_v43 = vrot.slane %v2020_v13, 7 }
 0x13f   : > { %v1964_v28 = vunpack.c.l.b16 %v1220_v23  ;;  %v1965_v29 = vunpack.c.l.b16 %v1221_v24  ;;  %4965 = vrot.lane.b32.xlu1 %v4964_v25, %s5007_s27  ;;  %v5424_v54 = vsel %vm2262_vm4, %v2267_v20, %v2268_v27  ;;  %v974_v31 = vmul.f32 %v5129_v19, %v923_v17 }
 0x140   : > { %v2025_v5 = vor.u32 %v2023_v12, %v2022_v43  ;;  %v2270_v8 = vor.u32 %v2268_v27, %v2020_v13 }
 0x141   : > { %v4931_v30 = vpop.permute.xlu1 %4930  ;;  %v5427_v34 = vpack.c.b16 %v1965_v29, %v1964_v28  ;;  %v1010_v52 = vadd.f32 %v5136_v21, %v974_v31 }
 0x142   : > { %v4933_v32 = vunpack.i.h.bf16 %v4931_v30  ;;  %v4932_v33 = vunpack.i.l.bf16 %v4931_v30  ;;  %v5433_v38 = vsel %vm2003_vm5, %v2014_v40, %v2025_v5 }
 0x143   : > { %v2036_v40 = vshrl.u32 %v5427_v34, 16  ;;  %v1042_v60 = vmax.f32 %v1010_v52, 0.0  ;;  %v2039_v6 = vshll.u32 %v5427_v34, 16 }
 0x144   : > { %v1186_v39 = vsel %vm552_vm1, %v5312_v35, %v4932_v33  ;;  %v1187_v41 = vsel %vm552_vm1, %v5321_v44, %v4933_v32  ;;  %v5476_v33 = vpop.f32.mrf.mxu0 }
 0x145   : > { %v1218_v49 = vpack.c.bf16 %v1186_v39, %v1186_v39  ;;  %v1219_v50 = vpack.c.bf16 %v1187_v41, %v1187_v41  ;;  %v2038_v4 = vrot.slane %v2036_v40, 7  ;;  %v2274_v28 = vrot.slane %v2039_v6, 1 }
 0x146   : > { %v925_v53 = vpop.f32.mrf.mxu1 }
 0x147   : > { %v1962_v55 = vunpack.c.l.b16 %v1218_v49  ;;  %v1963_v56 = vunpack.c.l.b16 %v1219_v50  ;;  %v975_v35 = vmul.f32 %v5129_v19, %v925_v53  ;;  %v2041_v25 = vor.u32 %v2039_v6, %v2038_v4 }
 0x148   : > { %v2276_v39 = vor.u32 %v2274_v28, %v2036_v40 }
 0x149   : > { %v1990_v44 = vpack.c.b16 %v1963_v56, %v1962_v55  ;;  %v1011_v57 = vadd.f32 %v5136_v21, %v975_v35  ;;  %v4941_v58 = vpop.permute.xlu2 %4940 }
 0x14a   : > { %v4943_v62 = vunpack.i.h.bf16 %v4941_v58  ;;  %v4942_v2 = vunpack.i.l.bf16 %v4941_v58 }
 0x14b   : > { %v1043_v63 = vmax.f32 %v1011_v57, 0.0  ;;  %4538 = vmatmul.msk.bf16.gmra.mxu2 %vm2556_vm3, %v1990_v44  ;;  %4554 = vmatmul.msk.bf16.gmra.mxu3 %vm2556_vm3, %v1990_v44  ;;  %v2031_v0 = vshll.u32 %v1990_v44, 16  ;;  %v2028_v1 = vshrl.u32 %v1990_v44, 16 }
 0x14c   : > { %v1190_v3 = vsel %vm552_vm1, %v5358_v15, %v4942_v2  ;;  %v1191_v26 = vsel %vm552_vm1, %v5374_v36, %v4943_v62  ;;  %4570 = vmatmul.msk.bf16.gmra.mxu1 %vm2556_vm3, %v1990_v44  ;;  %v652_v57 = vpop.f32.mrf.mxu0 }
 0x14d   : > { %v1222_v9 = vpack.c.bf16 %v1190_v3, %v1190_v3  ;;  %v1223_v11 = vpack.c.bf16 %v1191_v26, %v1191_v26  ;;  %v4969_v12 = vpack.i.bf16 %v1043_v63, %v1042_v60  ;;  %v2271_v14 = vrot.slane %v2031_v0, 1 }
 0x14e   : > { %v928_v16 = vpop.f32.mrf.mxu1  ;;  %v2030_v20 = vrot.slane %v2028_v1, 7 }
 0x14f   : > { %v1966_v23 = vunpack.c.l.b16 %v1222_v9  ;;  %v1967_v24 = vunpack.c.l.b16 %v1223_v11  ;;  %4970 = vrot.lane.b32.xlu2 %v4969_v12, %s5007_s27  ;;  %v5460_v15 = vsel %vm2262_vm4, %v2270_v8, %v2271_v14  ;;  %v2273_v17 = vor.u32 %v2271_v14, %v2028_v1  ;;  %v4609_v9 = vld [vmem:[%s7022_s6 + $0x30] sm:$0xf]  ;;  %v4874_v11 = vld [vmem:[%s7022_s6 + $0x38] sm:$0xf0] }
 0x150   : > { %v2033_v36 = vor.u32 %v2031_v0, %v2030_v20  ;;  %v5465_v13 = vsel %vm2003_vm5, %v2030_v20, %v2041_v25  ;;  %v976_v32 = vmul.f32 %v5129_v19, %v928_v16  ;;  %v4873_v0 = vld [vmem:[%s7022_s6 + $0x34] sm:$0xf]  ;;  %v4610_v12 = vor.u32 %v4874_v11, %v4609_v9 }
 0x151   : > { %v5462_v29 = vpack.c.b16 %v1967_v24, %v1966_v23  ;;  %v5471_v5 = vsel %vm2262_vm4, %v2273_v17, %v2274_v28 }
 0x152   : > { %v5468_v27 = vsel %vm2003_vm5, %v2022_v43, %v2033_v36  ;;  %v1012_v49 = vadd.f32 %v5136_v21, %v976_v32  ;;  %2996 = vmatpush.bf16.msrb.mxu0 %v4610_v12 }
 0x153   : > { %v2044_v30 = vshrl.u32 %v5462_v29, 16  ;;  %v2047_v31 = vshll.u32 %v5462_v29, 16 }
 0x154   : > { %v1044_v40 = vmax.f32 %v1012_v49, 0.0  ;;  %v5516_v1 = vpop.f32.mrf.mxu0 }
 0x155   : > { %v5481_v41 = vrot.slane %v2047_v31, 1  ;;  %v5485_v47 = vrot.slane %v2044_v30, 7 }
 0x156   : > { %v930_v43 = vpop.f32.mrf.mxu1 }
 0x157   : > { %v977_v50 = vmul.f32 %v5129_v19, %v930_v43  ;;  %v5492_v51 = vsel %vm2262_vm4, %v2276_v39, %v5481_v41  ;;  %v2049_v53 = vor.u32 %v2047_v31, %v5485_v47 }
 0x159   : > { %v1013_v52 = vadd.f32 %v5136_v21, %v977_v50  ;;  %v5501_v56 = vsel %vm2003_vm5, %v2038_v4, %v2049_v53 }
 0x15b   : > { %v1045_v55 = vmax.f32 %v1013_v52, 0.0  ;;  %4539 = vmatmul.msk.bf16.gmra.mxu2 %vm2556_vm3, %v5427_v34  ;;  %4555 = vmatmul.msk.bf16.gmra.mxu3 %vm2556_vm3, %v5427_v34 }
 0x15c   : > { %4571 = vmatmul.msk.bf16.gmra.mxu1 %vm2556_vm3, %v5427_v34  ;;  %v4611_v34 = vld [vmem:[%s7022_s6 + $0x3c] sm:$0xf0]  ;;  %v5532_v24 = vpop.f32.mrf.mxu0 }
 0x15d   : > { %v4974_v35 = vpack.i.bf16 %v1045_v55, %v1044_v40  ;;  %v4614_v4 = vor.u32 %v4873_v0, %v4611_v34 }
 0x15e   : > { %v933_v44 = vpop.f32.mrf.mxu1 }
 0x15f   : > { %4975 = vrot.lane.b32.xlu0 %v4974_v35, %s5007_s27  ;;  %v978_v58 = vmul.f32 %v5129_v19, %v933_v44  ;;  %3083 = vmatpush.bf16.msrb.mxu2 %v4614_v4 }
 0x161   : > { %v1014_v62 = vadd.f32 %v5136_v21, %v978_v58 }
 0x163   : > { %v1046_v6 = vmax.f32 %v1014_v62, 0.0 }
 0x164   : > { %v5550_v0 = vpop.f32.mrf.mxu0 }
 0x166   : > { %v935_v60 = vpop.f32.mrf.mxu1 }
 0x167   : > { %v979_v2 = vmul.f32 %v5129_v19, %v935_v60  ;;  %v2279_v60 = vor.u32 %v5481_v41, %v2044_v30 }
 0x169   : > { %v1015_v63 = vadd.f32 %v5136_v21, %v979_v2 }
 0x16b   : > { %v1047_v3 = vmax.f32 %v1015_v63, 0.0  ;;  %4540 = vmatmul.msk.bf16.gmra.mxu2 %vm2556_vm3, %v5462_v29  ;;  %4556 = vmatmul.msk.bf16.gmra.mxu3 %vm2556_vm3, %v5462_v29 }
 0x16c   : > { %4572 = vmatmul.msk.bf16.gmra.mxu1 %vm2556_vm3, %v5462_v29 }
 0x16d   : > { %v4979_v26 = vpack.i.bf16 %v1047_v3, %v1046_v6 }
 0x16e   : > { %v938_v8 = vpop.f32.mrf.mxu1 }
 0x16f   : > { %4980 = vrot.lane.b32.xlu1 %v4979_v26, %s5007_s27  ;;  %v980_v23 = vmul.f32 %v5129_v19, %v938_v8 }
 0x171   : > { %v4946_v14 = vpop.permute.xlu0 %4945  ;;  %v1016_v32 = vadd.f32 %v5136_v21, %v980_v23 }
 0x172   : > { %v4948_v16 = vunpack.i.h.bf16 %v4946_v14  ;;  %v4947_v20 = vunpack.i.l.bf16 %v4946_v14 }
 0x173   : > { %v1048_v55 = vmax.f32 %v1016_v32, 0.0  ;;  %v5570_v32 = vpop.f32.mrf.mxu0 }
 0x174   : > { %v1192_v25 = vsel %vm552_vm1, %v5400_v59, %v4947_v20  ;;  %v1193_v36 = vsel %vm552_vm1, %v5420_v18, %v4948_v16 }
 0x175   : > { %v1224_v17 = vpack.c.bf16 %v1192_v25, %v1192_v25  ;;  %v1225_v28 = vpack.c.bf16 %v1193_v36, %v1193_v36 }
 0x176   : > { %v940_v31 = vpop.f32.mrf.mxu1 }
 0x177   : > { %v1968_v37 = vunpack.c.l.b16 %v1224_v17  ;;  %v1969_v39 = vunpack.c.l.b16 %v1225_v28  ;;  %v981_v43 = vmul.f32 %v5129_v19, %v940_v31 }
 0x179   : > { %v1993_v49 = vpack.c.b16 %v1969_v39, %v1968_v37  ;;  %v1017_v50 = vadd.f32 %v5136_v21, %v981_v43  ;;  %v4956_v52 = vpop.permute.xlu2 %4955 }
 0x17a   : > { %v4958_v53 = vunpack.i.h.bf16 %v4956_v52  ;;  %v4957_v40 = vunpack.i.l.bf16 %v4956_v52 }
 0x17b   : > { %v1049_v59 = vmax.f32 %v1017_v50, 0.0  ;;  %4541 = vmatmul.msk.bf16.gmra.mxu2 %vm2556_vm3, %v1993_v49  ;;  %4557 = vmatmul.msk.bf16.gmra.mxu3 %vm2556_vm3, %v1993_v49  ;;  %v2055_v18 = vshll.u32 %v1993_v49, 16  ;;  %v2052_v35 = vshrl.u32 %v1993_v49, 16 }
 0x17c   : > { %v1196_v44 = vsel %vm552_vm1, %v5476_v33, %v4957_v40  ;;  %v1197_v58 = vsel %vm552_vm1, %v652_v57, %v4958_v53  ;;  %4573 = vmatmul.msk.bf16.gmra.mxu1 %vm2556_vm3, %v1993_v49 }
 0x17d   : > { %v1228_v62 = vpack.c.bf16 %v1196_v44, %v1196_v44  ;;  %v1229_v2 = vpack.c.bf16 %v1197_v58, %v1197_v58  ;;  %v4984_v63 = vpack.i.bf16 %v1049_v59, %v1048_v55  ;;  %v2280_v34 = vrot.slane %v2055_v18, 1 }
 0x17e   : > { %v943_v4 = vpop.f32.mrf.mxu1  ;;  %v2054_v6 = vrot.slane %v2052_v35, 7 }
 0x17f   : > { %v1972_v3 = vunpack.c.l.b16 %v1228_v62  ;;  %v1973_v26 = vunpack.c.l.b16 %v1229_v2  ;;  %4985 = vrot.lane.b32.xlu2 %v4984_v63, %s5007_s27  ;;  %v5554_v33 = vsel %vm2262_vm4, %v2279_v60, %v2280_v34  ;;  %v982_v9 = vmul.f32 %v5129_v19, %v943_v4  ;;  %v665_v60 = vpop.f32.mrf.mxu0  ;;  %v4870_v63 = vld [vmem:[%s7022_s6 + $0x1c] sm:$0xf]  ;;  %v2464_v4 = vld [vmem:[%s7022_s6 + $0x68] sm:$0xf] }
 0x180   : > { %v2057_v57 = vor.u32 %v2055_v18, %v2054_v6 }
 0x181   : > { %v5556_v8 = vpack.c.b16 %v1973_v26, %v1972_v3  ;;  %v4951_v29 = vpop.permute.xlu1 %4950  ;;  %v1018_v36 = vadd.f32 %v5136_v21, %v982_v9  ;;  %v2906_v26 = vunpack.c.l.b16 %v2464_v4 }
 0x182   : > { %v4953_v30 = vunpack.i.h.bf16 %v4951_v29  ;;  %v4952_v41 = vunpack.i.l.bf16 %v4951_v29  ;;  %v5561_v11 = vsel %vm2003_vm5, %v5485_v47, %v2057_v57 }
 0x183   : > { %v2068_v16 = vshrl.u32 %v5556_v8, 16  ;;  %v1050_v39 = vmax.f32 %v1018_v36, 0.0  ;;  %v2921_v57 = vpack.c.b16 %v2906_v26, %v2906_v26 }
 0x184   : > { %v1194_v12 = vsel %vm552_vm1, %v5439_v46, %v4952_v41  ;;  %v1195_v14 = vsel %vm552_vm1, %v5456_v7, %v4953_v30  ;;  %v2071_v7 = vshll.u32 %v5556_v8, 16 }
 0x185   : > { %v1226_v20 = vpack.c.bf16 %v1194_v12, %v1194_v12  ;;  %v1227_v23 = vpack.c.bf16 %v1195_v14, %v1195_v14  ;;  %v5575_v46 = vrot.slane %v2068_v16, 7  ;;  %v2989_v41 = vsel %vm2589_vm2, %v2921_v57, 0 }
 0x186   : > { %v945_v25 = vpop.f32.mrf.mxu1  ;;  %v2286_v55 = vrot.slane %v2071_v7, 1  ;;  %3170 = vmatpush.bf16.msrb.mxu3 %v2989_v41 }
 0x187   : > { %v1970_v17 = vunpack.c.l.b16 %v1226_v20  ;;  %v1971_v28 = vunpack.c.l.b16 %v1227_v23  ;;  %v983_v31 = vmul.f32 %v5129_v19, %v945_v25  ;;  %v2282_v19 = vor.u32 %v2280_v34, %v2052_v35  ;;  %v4599_v34 = vld [vmem:[%s7022_s6 + $0x24] sm:$0xf0] }
 0x188   : > { %v2073_v40 = vor.u32 %v2071_v7, %v5575_v46  ;;  %v4602_v3 = vor.u32 %v4870_v63, %v4599_v34 }
 0x189   : > { %v1994_v47 = vpack.c.b16 %v1971_v28, %v1970_v17  ;;  %v1019_v37 = vadd.f32 %v5136_v21, %v983_v31 }
 0x18a   : > { %3084 = vmatpush.bf16.msrb.mxu2 %v4602_v3 }
 0x18b   : > { %v1051_v43 = vmax.f32 %v1019_v37, 0.0  ;;  %4542 = vmatmul.msk.bf16.gmra.mxu2 %vm2556_vm3, %v1994_v47  ;;  %4558 = vmatmul.msk.bf16.gmra.mxu3 %vm2556_vm3, %v1994_v47  ;;  %v2063_v49 = vshll.u32 %v1994_v47, 16  ;;  %v2060_v50 = vshrl.u32 %v1994_v47, 16 }
 0x18c   : > { %4574 = vmatmul.msk.bf16.gmra.mxu1 %vm2556_vm3, %v1994_v47 }
 0x18d   : > { %v4989_v52 = vpack.i.bf16 %v1051_v43, %v1050_v39  ;;  %v2283_v53 = vrot.slane %v2063_v49, 1  ;;  %v2062_v21 = vrot.slane %v2060_v50, 7 }
 0x18f   : > { %4990 = vrot.lane.b32.xlu0 %v4989_v52, %s5007_s27  ;;  %v5584_v59 = vsel %vm2262_vm4, %v2282_v19, %v2283_v53  ;;  %v2065_v18 = vor.u32 %v2063_v49, %v2062_v21  ;;  %v2285_v44 = vor.u32 %v2283_v53, %v2060_v50  ;;  %v5587_v58 = vsel %vm2003_vm5, %v2062_v21, %v2073_v40 }
 0x191   : > { %v5590_v62 = vsel %vm2003_vm5, %v2054_v6, %v2065_v18  ;;  %v5593_v35 = vsel %vm2262_vm4, %v2285_v44, %v2286_v55  ;;  %v667_v6 = vpop.f32.mrf.mxu0  ;;  %v2288_v44 = vor.u32 %v2286_v55, %v2068_v16 }
 0x199   : > { %v2784_v2 = vpop.f32.mrf.mxu1  ;;  %v5619_v28 = vpop.f32.mrf.mxu0 }
 0x19b   : > { %4543 = vmatmul.msk.bf16.gmra.mxu2 %vm2556_vm3, %v5556_v8  ;;  %4559 = vmatmul.msk.bf16.gmra.mxu3 %vm2556_vm3, %v5556_v8 }
 0x19c   : > { %4575 = vmatmul.msk.bf16.gmra.mxu1 %vm2556_vm3, %v5556_v8 }
 0x19e   : > { %v5610_v29 = vpop.f32.mrf.mxu2  ;;  %v5612_v30 = vpop.f32.mrf.mxu3 }
 0x19f   : > { %7042 = vst [vmem:[#allocation2_spill] sm:$0xff] %v5612_v30 }
 0x1a1   : > { %v2785_v9 = vpop.f32.mrf.mxu1  ;;  %v4961_v12 = vpop.permute.xlu0 %4960 }
 0x1a2   : > { %v4963_v14 = vunpack.i.h.bf16 %v4961_v12  ;;  %v4962_v20 = vunpack.i.l.bf16 %v4961_v12  ;;  %v5644_v9 = vpop.f32.mrf.mxu0 }
 0x1a4   : > { %v1198_v23 = vsel %vm552_vm1, %v5516_v1, %v4962_v20  ;;  %v1199_v25 = vsel %vm552_vm1, %v5532_v24, %v4963_v14  ;;  %v4597_v1 = vld [vmem:[%s7022_s6 + $0x18] sm:$0xf]  ;;  %v4871_v24 = vld [vmem:[%s7022_s6 + $0x20] sm:$0xf0] }
 0x1a5   : > { %v1230_v36 = vpack.c.bf16 %v1198_v23, %v1198_v23  ;;  %v1231_v17 = vpack.c.bf16 %v1199_v25, %v1199_v25  ;;  %v4598_v52 = vor.u32 %v4871_v24, %v4597_v1 }
 0x1a6   : > { %v5621_v31 = vpop.f32.mrf.mxu2  ;;  %v5623_v47 = vpop.f32.mrf.mxu3 }
 0x1a7   : > { %7043 = vst [vmem:[#allocation3_spill] sm:$0xff] %v5623_v47  ;;  %v1974_v37 = vunpack.c.l.b16 %v1230_v36  ;;  %v1975_v7 = vunpack.c.l.b16 %v1231_v17  ;;  %2997 = vmatpush.bf16.msrb.mxu0 %v4598_v52 }
 0x1a9   : > { %v1996_v39 = vpack.c.b16 %v1975_v7, %v1974_v37  ;;  %v5625_v43 = vpop.f32.mrf.mxu1  ;;  %v4971_v49 = vpop.permute.xlu2 %4970 }
 0x1aa   : > { %7044 = vst [vmem:[#allocation4_spill] sm:$0xff] %v5625_v43  ;;  %v4973_v50 = vunpack.i.h.bf16 %v4971_v49  ;;  %v4972_v19 = vunpack.i.l.bf16 %v4971_v49 }
 0x1ab   : > { %4544 = vmatmul.msk.bf16.gmra.mxu2 %vm2556_vm3, %v1996_v39  ;;  %4560 = vmatmul.msk.bf16.gmra.mxu3 %vm2556_vm3, %v1996_v39  ;;  %v2079_v53 = vshll.u32 %v1996_v39, 16  ;;  %v2076_v21 = vshrl.u32 %v1996_v39, 16 }
 0x1ac   : > { %v1202_v40 = vsel %vm552_vm1, %v665_v60, %v4972_v19  ;;  %v1203_v18 = vsel %vm552_vm1, %v667_v6, %v4973_v50  ;;  %4576 = vmatmul.msk.bf16.gmra.mxu1 %vm2556_vm3, %v1996_v39  ;;  %v5668_v50 = vpop.f32.mrf.mxu0 }
 0x1ad   : > { %v1234_v2 = vpack.c.bf16 %v1202_v40, %v1202_v40  ;;  %v1235_v63 = vpack.c.bf16 %v1203_v18, %v1203_v18  ;;  %v2289_v34 = vrot.slane %v2079_v53, 1  ;;  %v2078_v4 = vrot.slane %v2076_v21, 7 }
 0x1ae   : > { %v5640_v3 = vpop.f32.mrf.mxu2  ;;  %v5642_v26 = vpop.f32.mrf.mxu3 }
 0x1af   : > { %7045 = vst [vmem:[#allocation5_spill] sm:$0xff] %v5642_v26  ;;  %v1978_v57 = vunpack.c.l.b16 %v1234_v2  ;;  %v1979_v41 = vunpack.c.l.b16 %v1235_v63  ;;  %v5647_v60 = vsel %vm2262_vm4, %v2288_v44, %v2289_v34  ;;  %v2081_v6 = vor.u32 %v2079_v53, %v2078_v4 }
 0x1b0   : > { %v2291_v53 = vor.u32 %v2289_v34, %v2076_v21 }
 0x1b1   : > { %v5649_v12 = vpack.c.b16 %v1979_v41, %v1978_v57  ;;  %v5651_v8 = vpop.f32.mrf.mxu1  ;;  %v4966_v16 = vpop.permute.xlu1 %4965  ;;  %v5655_v55 = vsel %vm2003_vm5, %v5575_v46, %v2081_v6 }
 0x1b2   : > { %7046 = vst [vmem:[#allocation6_spill] sm:$0xff] %v5651_v8  ;;  %v4968_v14 = vunpack.i.h.bf16 %v4966_v16  ;;  %v4967_v20 = vunpack.i.l.bf16 %v4966_v16 }
 0x1b3   : > { %v7029_v36 = vshrl.u32 %v5649_v12, 16 }
 0x1b4   : > { %v1200_v23 = vsel %vm552_vm1, %v5550_v0, %v4967_v20  ;;  %v1201_v25 = vsel %vm552_vm1, %v5570_v32, %v4968_v14  ;;  %v2095_v32 = vshll.u32 %v5649_v12, 16 }
 0x1b5   : > { %v1232_v17 = vpack.c.bf16 %v1200_v23, %v1200_v23  ;;  %v1233_v37 = vpack.c.bf16 %v1201_v25, %v1201_v25  ;;  %v5672_v0 = vrot.slane %v7029_v36, 7  ;;  %v5697_v23 = vpop.f32.mrf.mxu0 }
 0x1b6   : > { %v5662_v7 = vpop.f32.mrf.mxu2  ;;  %v5664_v39 = vpop.f32.mrf.mxu3  ;;  %v2295_v57 = vrot.slane %v2095_v32, 1 }
 0x1b7   : > { %7047 = vst [vmem:[#allocation7_spill] sm:$0xff] %v5664_v39  ;;  %v1976_v49 = vunpack.c.l.b16 %v1232_v17  ;;  %v1977_v1 = vunpack.c.l.b16 %v1233_v37  ;;  %v2097_v44 = vor.u32 %v2095_v32, %v5672_v0  ;;  %v4878_v32 = vld [vmem:[%s7022_s6 + $0x58] sm:$0xf0] }
 0x1b9   : > { %v1997_v46 = vpack.c.b16 %v1977_v1, %v1976_v49  ;;  %v5666_v24 = vpop.f32.mrf.mxu1  ;;  %v4587_v49 = vld [vmem:[%s7022_s6 + $0xc] sm:$0xf0] }
 0x1ba   : > { %7048 = vst [vmem:[#allocation8_spill] sm:$0xff] %v5666_v24 }
 0x1bb   : > { %4545 = vmatmul.msk.bf16.gmra.mxu2 %vm2556_vm3, %v1997_v46  ;;  %4561 = vmatmul.msk.bf16.gmra.mxu3 %vm2556_vm3, %v1997_v46  ;;  %v2087_v19 = vshll.u32 %v1997_v46, 16  ;;  %v2084_v52 = vshrl.u32 %v1997_v46, 16 }
 0x1bc   : > { %4577 = vmatmul.msk.bf16.gmra.mxu1 %vm2556_vm3, %v1997_v46  ;;  %v4629_v46 = vld [vmem:[%s7022_s6 + $0x50] sm:$0xf] }
 0x1bd   : > { %v2292_v40 = vrot.slane %v2087_v19, 1  ;;  %v2086_v18 = vrot.slane %v2084_v52, 7 }
 0x1be   : > { %v5679_v2 = vpop.f32.mrf.mxu2  ;;  %v5681_v63 = vpop.f32.mrf.mxu3 }
 0x1bf   : > { %7049 = vst [vmem:[#allocation9_spill] sm:$0xff] %v5681_v63  ;;  %v5684_v41 = vsel %vm2262_vm4, %v2291_v53, %v2292_v40  ;;  %v2089_v6 = vor.u32 %v2087_v19, %v2086_v18  ;;  %v2294_v16 = vor.u32 %v2292_v40, %v2084_v52  ;;  %v5687_v14 = vsel %vm2003_vm5, %v2086_v18, %v2097_v44  ;;  %v680_v19 = vpop.f32.mrf.mxu0  ;;  %v4605_v63 = vld [vmem:[%s7022_s6 + $0x20] sm:$0xf] }
 0x1c0   : > { %v4630_v52 = vor.u32 %v4878_v32, %v4629_v46 }
 0x1c1   : > { %v5689_v20 = vpop.f32.mrf.mxu1  ;;  %v5692_v21 = vsel %vm2003_vm5, %v2078_v4, %v2089_v6  ;;  %v5695_v34 = vsel %vm2262_vm4, %v2294_v16, %v2295_v57  ;;  %v4867_v4 = vld [vmem:[%s7022_s6 + $0x4] sm:$0xf] }
 0x1c2   : > { %7050 = vst [vmem:[#allocation10_spill] sm:$0xff] %v5689_v20  ;;  %v4590_v1 = vor.u32 %v4867_v4, %v4587_v49  ;;  %3171 = vmatpush.bf16.msrb.mxu3 %v4630_v52 }
 0x1c4   : > { %3085 = vmatpush.bf16.msrb.mxu2 %v4590_v1 }
 0x1c6   : > { %v5699_v25 = vpop.f32.mrf.mxu2  ;;  %v5701_v17 = vpop.f32.mrf.mxu3 }
 0x1c7   : > { %7051 = vst [vmem:[#allocation11_spill] sm:$0xff] %v5701_v17  ;;  %v682_v52 = vpop.f32.mrf.mxu0 }
 0x1c9   : > { %v5703_v37 = vpop.f32.mrf.mxu1 }
 0x1ca   : > { %7052 = vst [vmem:[#allocation12_spill] sm:$0xff] %v5703_v37 }
 0x1cb   : > { %4546 = vmatmul.msk.bf16.gmra.mxu2 %vm2556_vm3, %v5649_v12  ;;  %4562 = vmatmul.msk.bf16.gmra.mxu3 %vm2556_vm3, %v5649_v12 }
 0x1cc   : > { %4578 = vmatmul.msk.bf16.gmra.mxu1 %vm2556_vm3, %v5649_v12 }
 0x1ce   : > { %v5723_v53 = vpop.f32.mrf.mxu2  ;;  %v5725_v40 = vpop.f32.mrf.mxu3 }
 0x1cf   : > { %7053 = vst [vmem:[#allocation13_spill] sm:$0xff] %v5725_v40 }
 0x1d1   : > { %v5727_v18 = vpop.f32.mrf.mxu1  ;;  %v4976_v44 = vpop.permute.xlu0 %4975 }
 0x1d2   : > { %7054 = vst [vmem:[#allocation14_spill] sm:$0xff] %v5727_v18  ;;  %v4978_v6 = vunpack.i.h.bf16 %v4976_v44  ;;  %v4977_v16 = vunpack.i.l.bf16 %v4976_v44 }
 0x1d4   : > { %v1204_v4 = vsel %vm552_vm1, %v5619_v28, %v4977_v16  ;;  %v1205_v49 = vsel %vm552_vm1, %v5644_v9, %v4978_v6 }
 0x1d5   : > { %v1236_v22 = vpack.c.bf16 %v1204_v4, %v1204_v4  ;;  %v1237_v36 = vpack.c.bf16 %v1205_v49, %v1205_v49 }
 0x1d6   : > { %v5733_v46 = vpop.f32.mrf.mxu2  ;;  %v5735_v32 = vpop.f32.mrf.mxu3 }
 0x1d7   : > { %7055 = vst [vmem:[#allocation15_spill] sm:$0xff] %v5735_v32  ;;  %v1980_v37 = vunpack.c.l.b16 %v1236_v22  ;;  %v1981_v1 = vunpack.c.l.b16 %v1237_v36  ;;  %v4585_v22 = vld [vmem:[%s7022_s6] sm:$0xf]  ;;  %v4868_v36 = vld [vmem:[%s7022_s6 + $0x8] sm:$0xf0] }
 0x1d9   : > { %v1999_v20 = vpack.c.b16 %v1981_v1, %v1980_v37  ;;  %v5737_v18 = vpop.f32.mrf.mxu1  ;;  %v4986_v40 = vpop.permute.xlu2 %4985  ;;  %v7057_v37 = vshrl.u32 %v5649_v12, 16  ;;  %v4586_v1 = vor.u32 %v4868_v36, %v4585_v22  ;;  %v5766_v22 = vld [vmem:[%s7022_s6 + $0x138] sm:$0xff] }
 0x1da   : > { %7056 = vst [vmem:[#allocation16_spill] sm:$0xff] %v5737_v18  ;;  %v4988_v44 = vunpack.i.h.bf16 %v4986_v40  ;;  %v4987_v24 = vunpack.i.l.bf16 %v4986_v40 }
 0x1db   : > { %4547 = vmatmul.msk.bf16.gmra.mxu2 %vm2556_vm3, %v1999_v20  ;;  %4563 = vmatmul.msk.bf16.gmra.mxu3 %vm2556_vm3, %v1999_v20  ;;  %v2103_v28 = vshll.u32 %v1999_v20, 16  ;;  %v2100_v9 = vshrl.u32 %v1999_v20, 16  ;;  %v2297_v40 = vor.u32 %v2295_v57, %v7057_v37 }
 0x1dc   : > { %v1208_v6 = vsel %vm552_vm1, %v680_v19, %v4987_v24  ;;  %v1209_v16 = vsel %vm552_vm1, %v682_v52, %v4988_v44  ;;  %4579 = vmatmul.msk.bf16.gmra.mxu1 %vm2556_vm3, %v1999_v20  ;;  %2998 = vmatpush.bf16.msrb.mxu0 %v4586_v1 }
 0x1dd   : > { %v1240_v4 = vpack.c.bf16 %v1208_v6, %v1208_v6  ;;  %v1241_v49 = vpack.c.bf16 %v1209_v16, %v1209_v16  ;;  %v2298_v18 = vrot.slane %v2103_v28, 1  ;;  %v2102_v20 = vrot.slane %v2100_v9, 7 }
 0x1de   : > { %v5752_v24 = vpop.f32.mrf.mxu2  ;;  %v5754_v19 = vpop.f32.mrf.mxu3 }
 0x1df   : > { %7058 = vst [vmem:[#allocation17_spill] sm:$0xff] %v5754_v19  ;;  %v1984_v52 = vunpack.c.l.b16 %v1240_v4  ;;  %v1985_v44 = vunpack.c.l.b16 %v1241_v49  ;;  %v5757_v32 = vsel %vm2262_vm4, %v2297_v40, %v2298_v18  ;;  %v2105_v17 = vor.u32 %v2103_v28, %v2102_v20 }
 0x1e0   : > { %v3315_v40 = vunpack.c.l.b16 %v5766_v22 }
 0x1e1   : > { %v5759_v8 = vpop.f32.mrf.mxu1  ;;  %v4981_v12 = vpop.permute.xlu1 %4980  ;;  %v5761_v16 = vpack.c.b16 %v1985_v44, %v1984_v52  ;;  %v5770_v36 = vsel %vm2003_vm5, %v5672_v0, %v2105_v17 }
 0x1e2   : > { %7059 = vst [vmem:[#allocation18_spill] sm:$0xff] %v5759_v8  ;;  %v4983_v57 = vunpack.i.h.bf16 %v4981_v12  ;;  %v4982_v6 = vunpack.i.l.bf16 %v4981_v12  ;;  %v3330_v44 = vpack.c.b16 %v3315_v40, %v3315_v40 }
 0x1e3   : > { %v7030_v12 = vshrl.u32 %v5761_v16, 16  ;;  %v2119_v40 = vshll.u32 %v5761_v16, 16 }
 0x1e4   : > { %v1206_v37 = vsel %vm552_vm1, %v5668_v50, %v4982_v6  ;;  %v1207_v28 = vsel %vm552_vm1, %v5697_v23, %v4983_v57  ;;  %v3394_v17 = vsel %vm2589_vm2, %v3330_v44, 0  ;;  %v4735_v23 = vld [vmem:[%s7022_s6 + $0x120] sm:$0xf]  ;;  %v4901_v57 = vld [vmem:[%s7022_s6 + $0x128] sm:$0xf0] }
 0x1e5   : > { %v1238_v4 = vpack.c.bf16 %v1206_v37, %v1206_v37  ;;  %v1239_v49 = vpack.c.bf16 %v1207_v28, %v1207_v28  ;;  %3405 = vmatpush.bf16.msra.mxu1 %v3394_v17  ;;  %v4736_v37 = vor.u32 %v4901_v57, %v4735_v23  ;;  %v4617_v23 = vld [vmem:[%s7022_s6 + $0x38] sm:$0xf]  ;;  %v4875_v57 = vld [vmem:[%s7022_s6 + $0x40] sm:$0xf0] }
 0x1e6   : > { %v5777_v1 = vpop.f32.mrf.mxu2  ;;  %v5779_v52 = vpop.f32.mrf.mxu3 }
 0x1e7   : > { %7060 = vst [vmem:[#allocation19_spill] sm:$0xff] %v5779_v52  ;;  %v1982_v8 = vunpack.c.l.b16 %v1238_v4  ;;  %v1983_v0 = vunpack.c.l.b16 %v1239_v49  ;;  %v2300_v4 = vor.u32 %v2298_v18, %v2100_v9  ;;  %v4898_v18 = vld [vmem:[%s7022_s6 + $0x110] sm:$0xf0] }
 0x1e9   : > { %v2000_v19 = vpack.c.b16 %v1983_v0, %v1982_v8  ;;  %v5783_v50 = vpop.f32.mrf.mxu1  ;;  %v5795_v8 = vrot.slane %v7030_v12, 7  ;;  %3406 = vmatpush.bf16.msra.mxu1 %v4736_v37  ;;  %v4618_v37 = vor.u32 %v4875_v57, %v4617_v23  ;;  %v4872_v23 = vld [vmem:[%s7022_s6 + $0x28] sm:$0xf0]  ;;  %v4895_v57 = vld [vmem:[%s7022_s6 + $0xf8] sm:$0xf0] }
 0x1ea   : > { %7061 = vst [vmem:[#allocation20_spill] sm:$0xff] %v5783_v50 }
 0x1eb   : > { %v2108_v6 = vshrl.u32 %v2000_v19, 16  ;;  %4548 = vmatmul.msk.bf16.gmra.mxu2 %vm2556_vm3, %v2000_v19  ;;  %4564 = vmatmul.msk.bf16.gmra.mxu3 %vm2556_vm3, %v2000_v19  ;;  %v2111_v28 = vshll.u32 %v2000_v19, 16  ;;  %v2121_v50 = vor.u32 %v2119_v40, %v5795_v8 }
 0x1ec   : > { %4580 = vmatmul.msk.bf16.gmra.mxu1 %vm2556_vm3, %v2000_v19  ;;  %v4723_v19 = vld [vmem:[%s7022_s6 + $0x108] sm:$0xf]  ;;  %3172 = vmatpush.bf16.msrb.mxu3 %v4618_v37 }
 0x1ed   : > { %v2301_v49 = vrot.slane %v2111_v28, 1  ;;  %v2110_v44 = vrot.slane %v2108_v6, 7 }
 0x1ee   : > { %v5799_v0 = vpop.f32.mrf.mxu2  ;;  %v5801_v17 = vpop.f32.mrf.mxu3 }
 0x1ef   : > { %7062 = vst [vmem:[#allocation21_spill] sm:$0xff] %v5799_v0  ;;  %v5816_v9 = vsel %vm2262_vm4, %v2300_v4, %v2301_v49  ;;  %v2113_v12 = vor.u32 %v2111_v28, %v2110_v44  ;;  %v2303_v52 = vor.u32 %v2301_v49, %v2108_v6  ;;  %v4711_v4 = vld [vmem:[%s7022_s6 + $0xf0] sm:$0xf]  ;;  %v5834_v6 = vsel %vm2003_vm5, %v2110_v44, %v2121_v50  ;;  %v4892_v50 = vld [vmem:[%s7022_s6 + $0xe0] sm:$0xf0]  ;;  %v685_v44 = vpop.f32.mrf.mxu0 }
 0x1f0   : > { %7063 = vst [vmem:[#allocation22_spill] sm:$0xff] %v5801_v17  ;;  %v4724_v17 = vor.u32 %v4898_v18, %v4723_v19  ;;  %v4606_v49 = vor.u32 %v4872_v23, %v4605_v63  ;;  %v2304_v19 = vrot.slane %v2119_v40, 1  ;;  %v4712_v37 = vor.u32 %v4895_v57, %v4711_v4  ;;  %v4869_v63 = vld [vmem:[%s7022_s6 + $0x10] sm:$0xf0]  ;;  %v4696_v23 = vld [vmem:[%s7022_s6 + $0x140] sm:$0xf] }
 0x1f1   : > { %v5819_v47 = vpop.f32.mrf.mxu1  ;;  %v5831_v28 = vsel %vm2003_vm5, %v2102_v20, %v2113_v12  ;;  %7065 = vst [vmem:[#allocation24_spill] sm:$0xff] %v5834_v6  ;;  %v4593_v20 = vld [vmem:[%s7022_s6 + $0x8] sm:$0xf]  ;;  %v4699_v12 = vld [vmem:[%s7022_s6 + $0xd8] sm:$0xf]  ;;  %v3317_v4 = vunpack.c.l.b16 %v4696_v23  ;;  %v7032_v0 = vmov 0.0  }
 0x1f2   : > { %7064 = vst [vmem:[#allocation23_spill] sm:$0xff] %v5819_v47  ;;  %3407 = vmatpush.bf16.msra.mxu1 %v4724_v17  ;;  %v5840_v18 = vsel %vm2262_vm4, %v2303_v52, %v2304_v19  ;;  %3173 = vmatpush.bf16.msrb.mxu3 %v4606_v49  ;;  %v4594_v52 = vor.u32 %v4869_v63, %v4593_v20  ;;  %v1244_v20 = vlaneseq }
 0x1f3   : > { %v4700_v40 = vor.u32 %v4892_v50, %v4699_v12 }
 0x1f4   : > { %v5878_v23 = vshrl.u32 %v1244_v20, 7 }
 0x1f6   : > { %v5842_v47 = vpop.f32.mrf.mxu2  ;;  %v5844_v43 = vpop.f32.mrf.mxu3  ;;  %3408 = vmatpush.bf16.msra.mxu1 %v4712_v37  ;;  %3174 = vmatpush.bf16.msrb.mxu3 %v4594_v52  ;;  %v3332_v37 = vpack.c.b16 %v3317_v4, %v3317_v4  ;;  %v2326_v4 = vpack.c.b16 %v5335_v61, %v5335_v61 }
 0x1f7   : > { %7066 = vst [vmem:[#allocation25_spill] sm:$0xff] %v5842_v47 }
 0x1f8   : > { %7067 = vst [vmem:[#allocation26_spill] sm:$0xff] %v5844_v43  ;;  %v3400_v52 = vsel %vm2589_vm2, %v3332_v37, 0  ;;  %v1281_v37 = vand.u32 15, %v5878_v23 }
 0x1f9   : > { %v5858_v17 = vpop.f32.mrf.mxu1  ;;  %3581 = vmatpush.bf16.msra.mxu2 %v3400_v52 }
 0x1fa   : > { %7068 = vst [vmem:[#allocation27_spill] sm:$0xff] %v5858_v17  ;;  %3409 = vmatpush.bf16.msra.mxu1 %v4700_v40  ;;  %v687_v17 = vpop.f32.mrf.mxu0  ;;  %vm5890_vm7 = vcmp.ne.s32.totalorder %v1281_v37, 0 }
 0x1fb   : > { %4549 = vmatmul.msk.bf16.gmra.mxu2 %vm2556_vm3, %v5761_v16  ;;  %4565 = vmatmul.msk.bf16.gmra.mxu3 %vm2556_vm3, %v5761_v16 }
 0x1fc   : > { %4581 = vmatmul.msk.bf16.gmra.mxu1 %vm2556_vm3, %v5761_v16 }
 0x1fe   : > { %v5869_v49 = vpop.f32.mrf.mxu2  ;;  %v5871_v57 = vpop.f32.mrf.mxu3 }
 0x1ff   : > { %7069 = vst [vmem:[#allocation28_spill] sm:$0xff] %v5869_v49  ;;  %v1246_v49 = vadd.s32 8, %v5878_v23 }
 0x200   : > { %7070 = vst [vmem:[#allocation29_spill] sm:$0xff] %v5871_v57 }
 0x201   : > { %v5873_v63 = vpop.f32.mrf.mxu1  ;;  %v4991_v12 = vpop.permute.xlu0 %4990  ;;  %v1288_v37 = vand.u32 15, %v1246_v49  ;;  %v3316_v49 = vunpack.c.h.b16 %v5766_v22  ;;  %v1247_v22 = vadd.s32 16, %v5878_v23 }
 0x202   : > { %7071 = vst [vmem:[#allocation30_spill] sm:$0xff] %v5873_v63  ;;  %v4993_v50 = vunpack.i.h.bf16 %v4991_v12  ;;  %v4992_v40 = vunpack.i.l.bf16 %v4991_v12 }
 0x203   : > { %vm1790_vm11 = vcmp.ne.s32.totalorder %v1288_v37, 15 }
 0x204   : > { %v1210_v43 = vsel %vm552_vm1, %v685_v44, %v4992_v40  ;;  %v1211_v30 = vsel %vm552_vm1, %v687_v17, %v4993_v50  ;;  %v7079_v40 = vshll.u32 %v5341_v10, 16  ;;  %v4437_v10 = vsel %vm5890_vm7, 1.0, %v7032_v0 }
 0x205   : > { %v1242_v39 = vpack.c.bf16 %v1210_v43, %v1210_v43  ;;  %v1243_v26 = vpack.c.bf16 %v1211_v30, %v1211_v30  ;;  %v2328_v43 = vshll.u32 %v2326_v4, 16  ;;  %v3331_v30 = vpack.c.b16 %v3316_v49, %v3316_v49 }
 0x206   : > { %v5882_v57 = vpop.f32.mrf.mxu2  ;;  %v5884_v63 = vpop.f32.mrf.mxu3  ;;  %v2010_v4 = vor.u32 %v7079_v40, %v5377_v42  ;;  %v5009_v42 = vmov 1.0|1.0  }
 0x207   : > { %7072 = vst [vmem:[#allocation31_spill] sm:$0xff] %v5882_v57  ;;  %v1918_v12 = vunpack.c.l.b16 %v1243_v26  ;;  %v1986_v52 = vunpack.c.l.b16 %v1242_v39  ;;  %v2330_v57 = vrot.slane %v2328_v43, 1  ;;  %v5914_v40 = vunpack.c.l.bf16 %v5009_v42 }
 0x208   : > { %7073 = vst [vmem:[#allocation32_spill] sm:$0xff] %v5884_v63  ;;  %v2335_v42 = vunpack.c.l.bf16 %v5380_v45 }
 0x209   : > { %v1919_v44 = vpack.c.b16 %v1918_v12, %v1918_v12  ;;  %v2002_v17 = vpack.c.b16 %v1918_v12, %v1986_v52  ;;  %v5888_v20 = vpop.f32.mrf.mxu1  ;;  %v7080_v52 = vshrl.u32 %v5761_v16, 16 }
 0x20a   : > { %7074 = vst [vmem:[#allocation33_spill] sm:$0xff] %v5888_v20 }
 0x20b   : > { %v1921_v61 = vshrl.u32 %v1919_v44, 16  ;;  %v2124_v50 = vshrl.u32 %v2002_v17, 16  ;;  %4550 = vmatmul.msk.bf16.gmra.mxu2 %vm2556_vm3, %v2002_v17  ;;  %4566 = vmatmul.msk.bf16.gmra.mxu3 %vm2556_vm3, %v2002_v17  ;;  %v2127_v26 = vshll.u32 %v2002_v17, 16  ;;  %v2306_v44 = vor.u32 %v2304_v19, %v7080_v52 }
 0x20c   : > { %4582 = vmatmul.msk.bf16.gmra.mxu1 %vm2556_vm3, %v2002_v17 }
 0x20d   : > { %v1923_v12 = vrot.slane %v1921_v61, 3  ;;  %v2307_v20 = vrot.slane %v2127_v26, 1  ;;  %v2126_v63 = vrot.slane %v2124_v50, 7 }
 0x20e   : > { %v5907_v47 = vpop.f32.mrf.mxu2  ;;  %v5909_v6 = vpop.f32.mrf.mxu3 }
 0x20f   : > { %7081 = vst [vmem:[#allocation34_spill] sm:$0xff] %v5909_v6  ;;  %v2149_v16 = vsel %vm5897_vm9, %v1923_v12, %v2010_v4  ;;  %v5922_v19 = vsel %vm2262_vm4, %v2306_v44, %v2307_v20  ;;  %v2129_v17 = vor.u32 %v2127_v26, %v2126_v63  ;;  %v2309_v43 = vor.u32 %v2307_v20, %v2124_v50 }
 0x210   : > { %v2150_v61 = vunpack.c.l.bf16 %v2149_v16  ;;  %v2151_v52 = vunpack.c.h.bf16 %v2149_v16  ;;  %v2336_v20 = vunpack.c.h.bf16 %v5380_v45  ;;  %v3397_v50 = vsel %vm2589_vm2, %v3331_v30, 0 }
 0x211   : > { %v5924_v0 = vpop.f32.mrf.mxu1  ;;  %v5930_v6 = vsel %vm2003_vm5, %v5795_v8, %v2129_v17  ;;  %v5932_v39 = vsel %vm2333_vm10, %v2309_v43, %v2330_v57  ;;  %v7083_v26 = vmov 0.0   ;;  %3492 = vmatpush.bf16.msra.mxu0 %v3397_v50  ;;  %v2399_v8 = vmul.f32 %v2335_v42, %v5914_v40 }
 0x212   : > { %7082 = vst [vmem:[#allocation35_spill] sm:$0xff] %v5924_v0  ;;  %v2214_v4 = vmul.f32 %v4437_v10, %v2150_v61  ;;  %v2215_v63 = vmul.f32 %v5914_v40, %v2151_v52  ;;  %v4453_v37 = vsel %vm1790_vm11, 1.0, %v7083_v26  ;;  %v1295_v10 = vand.u32 15, %v1247_v22 }
 0x213   : > { %v2400_v57 = vmul.f32 %v4453_v37, %v2336_v20  ;;  %v1248_v16 = vadd.s32 24, %v5878_v23  ;;  %v2152_v43 = vunpack.c.l.bf16 %v5384_v48  ;;  %v2153_v61 = vunpack.c.h.bf16 %v5384_v48 }
 0x214   : > { %v2246_v12 = vpack.c.bf16 %v2215_v63, %v2214_v4  ;;  %vm1663_vm12 = vcmp.ne.s32.totalorder %v1295_v10, 0  ;;  %v2337_v50 = vunpack.c.l.bf16 %v5424_v54  ;;  %v2338_v37 = vunpack.c.h.bf16 %v5424_v54 }
 0x215   : > { %v5947_v45 = vpack.c.bf16 %v2400_v57, %v2399_v8  ;;  %v1302_v52 = vand.u32 15, %v1248_v16  ;;  %v4438_v30 = vsel %vm1663_vm12, 1.0, %v7083_v26  ;;  %v2217_v63 = vmul.f32 %v5914_v40, %v2153_v61 }
 0x216   : > { %v5938_v44 = vpop.f32.mrf.mxu2  ;;  %v5940_v49 = vpop.f32.mrf.mxu3  ;;  %4631 = vmatmul.msk.bf16.vlgmr.msrb.gmra.mxu0 %vm2556_vm3, %v2246_v12  ;;  %v2216_v4 = vmul.f32 %v4438_v30, %v2152_v43  ;;  %v2401_v16 = vmul.f32 %v2337_v50, %v5914_v40 }
 0x217   : > { %7084 = vst [vmem:[#allocation36_spill] sm:$0xff] %v5940_v49  ;;  %vm1792_vm13 = vcmp.ne.s32.totalorder %v1302_v52, 15  ;;  %v1250_v52 = vadd.s32 40, %v5878_v23 }
 0x218   : > { %v4454_v48 = vsel %vm1792_vm13, 1.0, %v7083_v26  ;;  %v2247_v8 = vpack.c.bf16 %v2217_v63, %v2216_v4  ;;  %v2154_v4 = vunpack.c.l.bf16 %v5433_v38  ;;  %v2155_v63 = vunpack.c.h.bf16 %v5433_v38 }
 0x219   : > { %v5945_v17 = vpop.f32.mrf.mxu1  ;;  %v2402_v43 = vmul.f32 %v4454_v48, %v2338_v37  ;;  %v1316_v50 = vand.u32 15, %v1250_v52  ;;  %v2339_v52 = vunpack.c.l.bf16 %v5460_v15 }
 0x21a   : > { %7085 = vst [vmem:[#allocation37_spill] sm:$0xff] %v5945_v17 }
 0x21b   : > { %4647 = vmatmul.msk.bf16.vlgmr.msrb.gmra.mxu2 %vm2556_vm3, %v2246_v12  ;;  %4663 = vmatmul.msk.bf16.vlgmr.msrb.gmra.mxu3 %vm2556_vm3, %v2246_v12  ;;  %v1249_v12 = vadd.s32 32, %v5878_v23  ;;  %v5976_v54 = vpack.c.bf16 %v2402_v43, %v2401_v16  ;;  %v4743_v16 = vld [vmem:[%s7022_s6 + $0x128] sm:$0xf]  ;;  %vm1794_vm15 = vcmp.ne.s32.totalorder %v1316_v50, 15 }
 0x21c   : > { %4745 = vmatmul.msk.bf16.vlgmr.msra.gmra.mxu1 %vm2556_vm3, %v5947_v45  ;;  %v4455_v17 = vsel %vm1794_vm15, 1.0, %v7083_v26 }
 0x21d   : > { %v1309_v61 = vand.u32 15, %v1249_v12 }
 0x21e   : > { %v5956_v42 = vpop.f32.mrf.mxu2  ;;  %v5958_v22 = vpop.f32.mrf.mxu3 }
 0x21f   : > { %7086 = vst [vmem:[#allocation38_spill] sm:$0xff] %v5958_v22  ;;  %vm1665_vm14 = vcmp.ne.s32.totalorder %v1309_v61, 0 }
 0x220   : > { %v4439_v37 = vsel %vm1665_vm14, 1.0, %v7083_v26 }
 0x221   : > { %v5961_v20 = vpop.f32.mrf.mxu1  ;;  %v2218_v61 = vmul.f32 %v4439_v37, %v2154_v4  ;;  %v2403_v4 = vmul.f32 %v2339_v52, %v5914_v40  ;;  %v1252_v37 = vadd.s32 56, %v5878_v23 }
 0x222   : > { %7087 = vst [vmem:[#allocation39_spill] sm:$0xff] %v5961_v20  ;;  %v2340_v20 = vunpack.c.h.bf16 %v5460_v15 }
 0x226   : > { %v5967_v57 = vpop.f32.mrf.mxu2  ;;  %v5969_v10 = vpop.f32.mrf.mxu3  ;;  %4632 = vmatmul.msk.bf16.gmra.mxu0 %vm2556_vm3, %v2247_v8 }
 0x227   : > { %7088 = vst [vmem:[#allocation40_spill] sm:$0xff] %v5969_v10 }
 0x229   : > { %v5974_v30 = vpop.f32.mrf.mxu1 }
 0x22a   : > { %7089 = vst [vmem:[#allocation41_spill] sm:$0xff] %v5974_v30  ;;  %v2219_v30 = vmul.f32 %v5914_v40, %v2155_v63  ;;  %v2404_v63 = vmul.f32 %v4455_v17, %v2340_v20  ;;  %v1330_v17 = vand.u32 15, %v1252_v37  ;;  %v1253_v37 = vadd.s32 64, %v5878_v23 }
 0x22b   : > { %4648 = vmatmul.msk.bf16.gmra.mxu2 %vm2556_vm3, %v2247_v8  ;;  %4664 = vmatmul.msk.bf16.gmra.mxu3 %vm2556_vm3, %v2247_v8  ;;  %v4902_v8 = vld [vmem:[%s7022_s6 + $0x130] sm:$0xf0] }
 0x22c   : > { %4746 = vmatmul.msk.bf16.gmra.mxu1 %vm2556_vm3, %v5976_v54  ;;  %v4744_v43 = vor.u32 %v4902_v8, %v4743_v16  ;;  %v2248_v10 = vpack.c.bf16 %v2219_v30, %v2218_v61  ;;  %v6011_v15 = vpack.c.bf16 %v2404_v63, %v2403_v4  ;;  %v2156_v30 = vunpack.c.l.bf16 %v5468_v27 }
 0x22d   : > { %v2157_v8 = vunpack.c.h.bf16 %v5468_v27  ;;  %vm1796_vm2 = vcmp.ne.s32.totalorder %v1330_v17, 15  ;;  %v4737_v27 = vld [vmem:[%s7022_s6 + $0x12c] sm:$0xf0]  ;;  %v2341_v63 = vunpack.c.l.bf16 %v5471_v5 }
 0x22e   : > { %v5985_v12 = vpop.f32.mrf.mxu2  ;;  %v5987_v48 = vpop.f32.mrf.mxu3  ;;  %3582 = vmatpush.bf16.msra.mxu2 %v4744_v43 }
 0x22f   : > { %7090 = vst [vmem:[#allocation42_spill] sm:$0xff] %v5987_v48  ;;  %v1251_v48 = vadd.s32 48, %v5878_v23  ;;  %v2221_v52 = vmul.f32 %v5914_v40, %v2157_v8  ;;  %v4456_v8 = vsel %vm1796_vm2, 1.0, %v7083_v26 }
 0x231   : > { %v5996_v38 = vpop.f32.mrf.mxu1  ;;  %v1323_v50 = vand.u32 15, %v1251_v48 }
 0x232   : > { %7091 = vst [vmem:[#allocation43_spill] sm:$0xff] %v5996_v38 }
 0x233   : > { %vm1667_vm0 = vcmp.ne.s32.totalorder %v1323_v50, 0  ;;  %v2342_v50 = vunpack.c.h.bf16 %v5471_v5 }
 0x234   : > { %v4440_v20 = vsel %vm1667_vm0, 1.0, %v7083_v26 }
 0x235   : > { %v2220_v61 = vmul.f32 %v4440_v20, %v2156_v30  ;;  %v2406_v38 = vmul.f32 %v4456_v8, %v2342_v50  ;;  %v1255_v8 = vadd.s32 80, %v5878_v23 }
 0x236   : > { %v6002_v0 = vpop.f32.mrf.mxu2  ;;  %v6004_v22 = vpop.f32.mrf.mxu3  ;;  %4633 = vmatmul.msk.bf16.gmra.mxu0 %vm2556_vm3, %v2248_v10 }
 0x237   : > { %7092 = vst [vmem:[#allocation44_spill] sm:$0xff] %v6004_v22  ;;  %v2249_v17 = vpack.c.bf16 %v2221_v52, %v2220_v61  ;;  %v1254_v22 = vadd.s32 72, %v5878_v23  ;;  %v2158_v61 = vunpack.c.l.bf16 %v5465_v13  ;;  %v2159_v52 = vunpack.c.h.bf16 %v5465_v13 }
 0x239   : > { %v6009_v16 = vpop.f32.mrf.mxu1 }
 0x23a   : > { %7093 = vst [vmem:[#allocation45_spill] sm:$0xff] %v6009_v16  ;;  %v2405_v16 = vmul.f32 %v2341_v63, %v5914_v40 }
 0x23b   : > { %4649 = vmatmul.msk.bf16.gmra.mxu2 %vm2556_vm3, %v2248_v10  ;;  %4665 = vmatmul.msk.bf16.gmra.mxu3 %vm2556_vm3, %v2248_v10  ;;  %v4900_v10 = vld [vmem:[%s7022_s6 + $0x124] sm:$0xf] }
 0x23c   : > { %4747 = vmatmul.msk.bf16.gmra.mxu1 %vm2556_vm3, %v6011_v15  ;;  %v4740_v30 = vor.u32 %v4900_v10, %v4737_v27  ;;  %v6046_v49 = vpack.c.bf16 %v2406_v38, %v2405_v16  ;;  %v1344_v10 = vand.u32 15, %v1254_v22  ;;  %v2223_v16 = vmul.f32 %v5914_v40, %v2159_v52 }
 0x23e   : > { %v6020_v48 = vpop.f32.mrf.mxu2  ;;  %v6022_v43 = vpop.f32.mrf.mxu3  ;;  %3493 = vmatpush.bf16.msra.mxu0 %v4740_v30  ;;  %vm1798_vm5 = vcmp.ne.s32.totalorder %v1344_v10, 15  ;;  %v2344_v30 = vunpack.c.h.bf16 %v5492_v51  ;;  %v1351_v10 = vand.u32 15, %v1255_v8 }
 0x23f   : > { %7094 = vst [vmem:[#allocation46_spill] sm:$0xff] %v6022_v43  ;;  %v1337_v43 = vand.u32 15, %v1253_v37  ;;  %v2343_v37 = vunpack.c.l.bf16 %v5492_v51  ;;  %v4457_v13 = vsel %vm1798_vm5, 1.0, %v7083_v26 }
 0x240   : > { %v2408_v52 = vmul.f32 %v4457_v13, %v2344_v30  ;;  %vm1671_vm6 = vcmp.ne.s32.totalorder %v1351_v10, 0 }
 0x241   : > { %v6025_v4 = vpop.f32.mrf.mxu1  ;;  %vm1669_vm4 = vcmp.ne.s32.totalorder %v1337_v43, 0  ;;  %v4442_v30 = vsel %vm1671_vm6, 1.0, %v7083_v26 }
 0x242   : > { %7095 = vst [vmem:[#allocation47_spill] sm:$0xff] %v6025_v4  ;;  %v4441_v27 = vsel %vm1669_vm4, 1.0, %v7083_v26 }
 0x243   : > { %v2222_v38 = vmul.f32 %v4441_v27, %v2158_v61  ;;  %v2407_v61 = vmul.f32 %v2343_v37, %v5914_v40  ;;  %v1256_v27 = vadd.s32 88, %v5878_v23 }
 0x245   : > { %v2250_v22 = vpack.c.bf16 %v2223_v16, %v2222_v38  ;;  %v6075_v51 = vpack.c.bf16 %v2408_v52, %v2407_v61  ;;  %v2160_v38 = vunpack.c.l.bf16 %v5501_v56  ;;  %v2161_v16 = vunpack.c.h.bf16 %v5501_v56  ;;  %v4899_v56 = vld [vmem:[%s7022_s6 + $0x118] sm:$0xf0] }
 0x246   : > { %v6037_v20 = vpop.f32.mrf.mxu2  ;;  %v6039_v4 = vpop.f32.mrf.mxu3  ;;  %4634 = vmatmul.msk.bf16.gmra.mxu0 %vm2556_vm3, %v2249_v17  ;;  %v1358_v37 = vand.u32 15, %v1256_v27  ;;  %v2345_v27 = vunpack.c.l.bf16 %v5554_v33 }
 0x247   : > { %7096 = vst [vmem:[#allocation48_spill] sm:$0xff] %v6039_v4  ;;  %v2224_v61 = vmul.f32 %v4442_v30, %v2160_v38  ;;  %v2225_v52 = vmul.f32 %v5914_v40, %v2161_v16 }
 0x248   : > { %7102 = vst [vmem:[#allocation54_spill] sm:$0xff] %v6075_v51  ;;  %vm1800_vm7 = vcmp.ne.s32.totalorder %v1358_v37, 15 }
 0x249   : > { %v6044_v5 = vpop.f32.mrf.mxu1  ;;  %v4458_v16 = vsel %vm1800_vm7, 1.0, %v7083_v26  ;;  %v2251_v37 = vpack.c.bf16 %v2225_v52, %v2224_v61  ;;  %v2162_v61 = vunpack.c.l.bf16 %v5561_v11  ;;  %v2163_v52 = vunpack.c.h.bf16 %v5561_v11 }
 0x24a   : > { %7097 = vst [vmem:[#allocation49_spill] sm:$0xff] %v6044_v5 }
 0x24b   : > { %4650 = vmatmul.msk.bf16.gmra.mxu2 %vm2556_vm3, %v2249_v17  ;;  %4666 = vmatmul.msk.bf16.gmra.mxu3 %vm2556_vm3, %v2249_v17 }
 0x24c   : > { %4748 = vmatmul.msk.bf16.gmra.mxu1 %vm2556_vm3, %v6046_v49 }
 0x24e   : > { %v6055_v63 = vpop.f32.mrf.mxu2  ;;  %v6057_v50 = vpop.f32.mrf.mxu3 }
 0x24f   : > { %7098 = vst [vmem:[#allocation50_spill] sm:$0xff] %v6057_v50 }
 0x251   : > { %v6060_v43 = vpop.f32.mrf.mxu1 }
 0x252   : > { %7099 = vst [vmem:[#allocation51_spill] sm:$0xff] %v6060_v43 }
 0x256   : > { %v6066_v17 = vpop.f32.mrf.mxu2  ;;  %v6068_v5 = vpop.f32.mrf.mxu3  ;;  %4635 = vmatmul.msk.bf16.gmra.mxu0 %vm2556_vm3, %v2250_v22 }
 0x257   : > { %7100 = vst [vmem:[#allocation52_spill] sm:$0xff] %v6068_v5  ;;  %v2409_v5 = vmul.f32 %v2345_v27, %v5914_v40  ;;  %v2347_v27 = vunpack.c.l.bf16 %v5584_v59 }
 0x259   : > { %v6073_v43 = vpop.f32.mrf.mxu1 }
 0x25a   : > { %7101 = vst [vmem:[#allocation53_spill] sm:$0xff] %v6073_v43  ;;  %v2346_v43 = vunpack.c.h.bf16 %v5554_v33 }
 0x25b   : > { %4651 = vmatmul.msk.bf16.gmra.mxu2 %vm2556_vm3, %v2250_v22  ;;  %4667 = vmatmul.msk.bf16.gmra.mxu3 %vm2556_vm3, %v2250_v22  ;;  %v4731_v22 = vld [vmem:[%s7022_s6 + $0x110] sm:$0xf] }
 0x25c   : > { %4749 = vmatmul.msk.bf16.gmra.mxu1 %vm2556_vm3, %v6075_v51  ;;  %v4732_v38 = vor.u32 %v4899_v56, %v4731_v22  ;;  %v2410_v50 = vmul.f32 %v4458_v16, %v2346_v43  ;;  %v1259_v16 = vadd.s32 112, %v5878_v23 }
 0x25e   : > { %v6084_v8 = vpop.f32.mrf.mxu2  ;;  %v6086_v13 = vpop.f32.mrf.mxu3  ;;  %3583 = vmatpush.bf16.msra.mxu2 %v4732_v38  ;;  %v6110_v51 = vpack.c.bf16 %v2410_v50, %v2409_v5  ;;  %v2348_v38 = vunpack.c.h.bf16 %v5584_v59  ;;  %v4725_v59 = vld [vmem:[%s7022_s6 + $0x114] sm:$0xf0] }
 0x25f   : > { %7103 = vst [vmem:[#allocation55_spill] sm:$0xff] %v6084_v8  ;;  %v1258_v8 = vadd.s32 104, %v5878_v23 }
 0x260   : > { %7104 = vst [vmem:[#allocation56_spill] sm:$0xff] %v6086_v13  ;;  %v1257_v13 = vadd.s32 96, %v5878_v23 }
 0x261   : > { %v6089_v10 = vpop.f32.mrf.mxu1  ;;  %v1372_v43 = vand.u32 15, %v1258_v8 }
 0x262   : > { %7105 = vst [vmem:[#allocation57_spill] sm:$0xff] %v6089_v10  ;;  %v1365_v4 = vand.u32 15, %v1257_v13 }
 0x263   : > { %vm1802_vm9 = vcmp.ne.s32.totalorder %v1372_v43, 15  ;;  %v1379_v43 = vand.u32 15, %v1259_v16 }
 0x264   : > { %vm1673_vm8 = vcmp.ne.s32.totalorder %v1365_v4, 0  ;;  %v2227_v4 = vmul.f32 %v5914_v40, %v2163_v52  ;;  %v4459_v11 = vsel %vm1802_vm9, 1.0, %v7083_v26 }
 0x265   : > { %v4443_v13 = vsel %vm1673_vm8, 1.0, %v7083_v26  ;;  %v2412_v52 = vmul.f32 %v4459_v11, %v2348_v38  ;;  %vm1675_vm10 = vcmp.ne.s32.totalorder %v1379_v43, 0  ;;  %v2165_v38 = vunpack.c.h.bf16 %v5590_v62 }
 0x266   : > { %v6101_v30 = vpop.f32.mrf.mxu2  ;;  %v6103_v10 = vpop.f32.mrf.mxu3  ;;  %4636 = vmatmul.msk.bf16.gmra.mxu0 %vm2556_vm3, %v2251_v37  ;;  %v2226_v5 = vmul.f32 %v4443_v13, %v2162_v61  ;;  %v2411_v61 = vmul.f32 %v2347_v27, %v5914_v40  ;;  %v4897_v13 = vld [vmem:[%s7022_s6 + $0x10c] sm:$0xf]  ;;  %v2164_v27 = vunpack.c.l.bf16 %v5590_v62  ;;  %v4444_v11 = vsel %vm1675_vm10, 1.0, %v7083_v26 }
 0x267   : > { %7106 = vst [vmem:[#allocation58_spill] sm:$0xff] %v6103_v10 }
 0x268   : > { %v2252_v8 = vpack.c.bf16 %v2227_v4, %v2226_v5  ;;  %v1260_v5 = vadd.s32 120, %v5878_v23 }
 0x269   : > { %v6108_v33 = vpop.f32.mrf.mxu1 }
 0x26a   : > { %7107 = vst [vmem:[#allocation59_spill] sm:$0xff] %v6108_v33  ;;  %v1386_v16 = vand.u32 15, %v1260_v5 }
 0x26b   : > { %4652 = vmatmul.msk.bf16.gmra.mxu2 %vm2556_vm3, %v2251_v37  ;;  %4668 = vmatmul.msk.bf16.gmra.mxu3 %vm2556_vm3, %v2251_v37 }
 0x26c   : > { %4750 = vmatmul.msk.bf16.gmra.mxu1 %vm2556_vm3, %v6110_v51  ;;  %vm1804_vm11 = vcmp.ne.s32.totalorder %v1386_v16, 15 }
 0x26d   : > { %v4460_v62 = vsel %vm1804_vm11, 1.0, %v7083_v26 }
 0x26e   : > { %v6119_v22 = vpop.f32.mrf.mxu2  ;;  %v6121_v56 = vpop.f32.mrf.mxu3 }
 0x26f   : > { %7108 = vst [vmem:[#allocation60_spill] sm:$0xff] %v6121_v56 }
 0x271   : > { %v6124_v50 = vpop.f32.mrf.mxu1 }
 0x272   : > { %7109 = vst [vmem:[#allocation61_spill] sm:$0xff] %v6124_v50  ;;  %v4728_v50 = vor.u32 %v4897_v13, %v4725_v59  ;;  %v2350_v59 = vunpack.c.h.bf16 %v5593_v35 }
 0x274   : > { %3494 = vmatpush.bf16.msra.mxu0 %v4728_v50 }
 0x276   : > { %v6130_v37 = vpop.f32.mrf.mxu2  ;;  %v6132_v33 = vpop.f32.mrf.mxu3  ;;  %4637 = vmatmul.msk.bf16.gmra.mxu0 %vm2556_vm3, %v2252_v8 }
 0x277   : > { %7110 = vst [vmem:[#allocation62_spill] sm:$0xff] %v6132_v33  ;;  %v6145_v33 = vpack.c.bf16 %v2412_v52, %v2411_v61  ;;  %v2228_v61 = vmul.f32 %v4444_v11, %v2164_v27  ;;  %v2229_v52 = vmul.f32 %v5914_v40, %v2165_v38  ;;  %v2414_v38 = vmul.f32 %v4460_v62, %v2350_v59 }
 0x278   : > { %v1262_v11 = vadd.s32 136, %v5878_v23 }
 0x279   : > { %v6143_v4 = vpop.f32.mrf.mxu1  ;;  %v2253_v5 = vpack.c.bf16 %v2229_v52, %v2228_v61  ;;  %v2166_v61 = vunpack.c.l.bf16 %v5587_v58  ;;  %v2167_v52 = vunpack.c.h.bf16 %v5587_v58 }
 0x27a   : > { %7111 = vst [vmem:[#allocation63_spill] sm:$0xff] %v6143_v4  ;;  %v1261_v4 = vadd.s32 128, %v5878_v23 }
 0x27b   : > { %4653 = vmatmul.msk.bf16.gmra.mxu2 %vm2556_vm3, %v2252_v8  ;;  %4669 = vmatmul.msk.bf16.gmra.mxu3 %vm2556_vm3, %v2252_v8  ;;  %v2349_v8 = vunpack.c.l.bf16 %v5593_v35 }
 0x27c   : > { %4751 = vmatmul.msk.bf16.gmra.mxu1 %vm2556_vm3, %v6145_v33  ;;  %v1393_v16 = vand.u32 15, %v1261_v4 }
 0x27d   : > { %v2413_v27 = vmul.f32 %v2349_v8, %v5914_v40  ;;  %v1400_v8 = vand.u32 15, %v1262_v11 }
 0x27e   : > { %v6154_v13 = vpop.f32.mrf.mxu2  ;;  %v6156_v50 = vpop.f32.mrf.mxu3  ;;  %vm1677_vm12 = vcmp.ne.s32.totalorder %v1393_v16, 0 }
 0x27f   : > { %7112 = vst [vmem:[#allocation64_spill] sm:$0xff] %v6154_v13  ;;  %v6174_v35 = vpack.c.bf16 %v2414_v38, %v2413_v27  ;;  %v4445_v4 = vsel %vm1677_vm12, 1.0, %v7083_v26  ;;  %v2231_v38 = vmul.f32 %v5914_v40, %v2167_v52  ;;  %vm1806_vm13 = vcmp.ne.s32.totalorder %v1400_v8, 15 }
 0x280   : > { %7113 = vst [vmem:[#allocation65_spill] sm:$0xff] %v6156_v50  ;;  %v2230_v27 = vmul.f32 %v4445_v4, %v2166_v61  ;;  %v4461_v58 = vsel %vm1806_vm13, 1.0, %v7083_v26  ;;  %v4896_v61 = vld [vmem:[%s7022_s6 + $0x100] sm:$0xf0] }
 0x281   : > { %v6159_v43 = vpop.f32.mrf.mxu1  ;;  %7118 = vst [vmem:[#allocation70_spill] sm:$0xff] %v6174_v35 }
 0x282   : > { %7114 = vst [vmem:[#allocation66_spill] sm:$0xff] %v6159_v43  ;;  %v2254_v11 = vpack.c.bf16 %v2231_v38, %v2230_v27  ;;  %v1264_v38 = vadd.s32 152, %v5878_v23 }
 0x286   : > { %v6165_v56 = vpop.f32.mrf.mxu2  ;;  %v6167_v10 = vpop.f32.mrf.mxu3  ;;  %4638 = vmatmul.msk.bf16.gmra.mxu0 %vm2556_vm3, %v2253_v5 }
 0x287   : > { %7115 = vst [vmem:[#allocation67_spill] sm:$0xff] %v6165_v56 }
 0x288   : > { %7116 = vst [vmem:[#allocation68_spill] sm:$0xff] %v6167_v10  ;;  %v1263_v10 = vadd.s32 144, %v5878_v23 }
 0x289   : > { %v6172_v43 = vpop.f32.mrf.mxu1 }
 0x28a   : > { %7117 = vst [vmem:[#allocation69_spill] sm:$0xff] %v6172_v43  ;;  %v2352_v43 = vunpack.c.h.bf16 %v5647_v60 }
 0x28b   : > { %4654 = vmatmul.msk.bf16.gmra.mxu2 %vm2556_vm3, %v2253_v5  ;;  %4670 = vmatmul.msk.bf16.gmra.mxu3 %vm2556_vm3, %v2253_v5  ;;  %v2351_v5 = vunpack.c.l.bf16 %v5647_v60 }
 0x28c   : > { %4752 = vmatmul.msk.bf16.gmra.mxu1 %vm2556_vm3, %v6174_v35 }
 0x28d   : > { %v2415_v60 = vmul.f32 %v2351_v5, %v5914_v40 }
 0x28e   : > { %v2683_v59 = vpop.f32.mrf.mxu2  ;;  %v6183_v62 = vpop.f32.mrf.mxu3 }
 0x28f   : > { %7119 = vst [vmem:[#allocation71_spill] sm:$0xff] %v6183_v62  ;;  %v4719_v59 = vld [vmem:[%s7022_s6 + $0xf8] sm:$0xf]  ;;  %v1407_v62 = vand.u32 15, %v1263_v10  ;;  %v2169_v10 = vunpack.c.h.bf16 %v5655_v55 }
 0x290   : > { %v4720_v52 = vor.u32 %v4896_v61, %v4719_v59  ;;  %v3932_v59 = vld [vmem:[%s7025_s9 + $0x38] sm:$0xff] }
 0x291   : > { %v6186_v16 = vpop.f32.mrf.mxu1  ;;  %vm1679_vm14 = vcmp.ne.s32.totalorder %v1407_v62, 0  ;;  %4041 = vmatpush.msra.mxu3 %v3932_v59 }
 0x292   : > { %7120 = vst [vmem:[#allocation72_spill] sm:$0xff] %v6186_v16  ;;  %v2416_v16 = vmul.f32 %v4461_v58, %v2352_v43  ;;  %3584 = vmatpush.bf16.msra.mxu2 %v4720_v52  ;;  %v4446_v43 = vsel %vm1679_vm14, 1.0, %v7083_v26  ;;  %v2233_v58 = vmul.f32 %v5914_v40, %v2169_v10 }
 0x293   : > { %v3000_v50 = vpop.f32.mrf.mxu0 }
 0x294   : > { %v3001_v27 = vadd.f32 %v3000_v50, %v5610_v29  ;;  %v6206_v13 = vpack.c.bf16 %v2416_v16, %v2415_v60  ;;  %v2168_v29 = vunpack.c.l.bf16 %v5655_v55  ;;  %v1414_v50 = vand.u32 15, %v1264_v38 }
 0x295   : > { %v2354_v55 = vunpack.c.h.bf16 %v5684_v41  ;;  %v1265_v60 = vadd.s32 160, %v5878_v23 }
 0x296   : > { %v2684_v8 = vpop.f32.mrf.mxu2  ;;  %v6198_v4 = vpop.f32.mrf.mxu3  ;;  %4639 = vmatmul.msk.bf16.gmra.mxu0 %vm2556_vm3, %v2254_v11  ;;  %v2232_v5 = vmul.f32 %v4446_v43, %v2168_v29  ;;  %vm1808_vm15 = vcmp.ne.s32.totalorder %v1414_v50, 15 }
 0x297   : > { %7121 = vst [vmem:[#allocation73_spill] sm:$0xff] %v6198_v4  ;;  %v2353_v8 = vunpack.c.l.bf16 %v5684_v41  ;;  %v4462_v38 = vsel %vm1808_vm15, 1.0, %v7083_v26  ;;  %v1421_v50 = vand.u32 15, %v1265_v60  ;;  %v2171_v60 = vunpack.c.h.bf16 %v5692_v21 }
 0x298   : > { %v2255_v59 = vpack.c.bf16 %v2233_v58, %v2232_v5  ;;  %v2418_v10 = vmul.f32 %v4462_v38, %v2354_v55  ;;  %v4894_v5 = vld [vmem:[%s7022_s6 + $0xf4] sm:$0xf]  ;;  %v4713_v58 = vld [vmem:[%s7022_s6 + $0xfc] sm:$0xf0]  ;;  %v2170_v55 = vunpack.c.l.bf16 %v5692_v21  ;;  %v1267_v21 = vadd.s32 176, %v5878_v23 }
 0x299   : > { %v3411_v35 = vpop.f32.mrf.mxu1  ;;  %v2417_v29 = vmul.f32 %v2353_v8, %v5914_v40  ;;  %vm1681_vm0 = vcmp.ne.s32.totalorder %v1421_v50, 0  ;;  %v2235_v50 = vmul.f32 %v5914_v40, %v2171_v60 }
 0x29a   : > { %v6204_v56 = vadd.f32 %v3411_v35, %v3001_v27  ;;  %v4447_v38 = vsel %vm1681_vm0, 1.0, %v7083_v26  ;;  %v1435_v60 = vand.u32 15, %v1267_v21 }
 0x29b   : > { %v3002_v61 = vpop.f32.mrf.mxu0  ;;  %4655 = vmatmul.msk.bf16.gmra.mxu2 %vm2556_vm3, %v2254_v11  ;;  %4671 = vmatmul.msk.bf16.gmra.mxu3 %vm2556_vm3, %v2254_v11 }
 0x29c   : > { %4753 = vmatmul.msk.bf16.gmra.mxu1 %vm2556_vm3, %v6206_v13  ;;  %v3003_v16 = vadd.f32 %v3002_v61, %v5621_v31  ;;  %vm1683_vm4 = vcmp.ne.s32.totalorder %v1435_v60, 0 }
 0x29d   : > { %v4448_v21 = vsel %vm1683_vm4, 1.0, %v7083_v26 }
 0x29e   : > { %v6218_v35 = vpop.f32.mrf.mxu2  ;;  %v3176_v62 = vpop.f32.mrf.mxu3 }
 0x29f   : > { %v1266_v62 = vadd.s32 168, %v5878_v23 }
 0x2a1   : > { %v3413_v11 = vpop.f32.mrf.mxu1 }
 0x2a2   : > { %v6222_v52 = vadd.f32 %v3413_v11, %v3003_v16  ;;  %v6236_v11 = vpack.c.bf16 %v2418_v10, %v2417_v29  ;;  %v2234_v10 = vmul.f32 %v4447_v38, %v2170_v55  ;;  %v1268_v38 = vadd.s32 184, %v5878_v23 }
 0x2a3   : > { %v3005_v27 = vpop.f32.mrf.mxu0 }
 0x2a4   : > { %v3006_v43 = vadd.f32 %v3005_v27, %v5640_v3  ;;  %v4716_v3 = vor.u32 %v4894_v5, %v4713_v58  ;;  %v1428_v27 = vand.u32 15, %v1266_v62  ;;  %v2356_v5 = vunpack.c.h.bf16 %v5695_v34 }
 0x2a6   : > { %4640 = vmatmul.msk.bf16.gmra.mxu0 %vm2556_vm3, %v2255_v59  ;;  %v6229_v31 = vpop.f32.mrf.mxu2  ;;  %v3177_v61 = vpop.f32.mrf.mxu3  ;;  %vm1810_vm2 = vcmp.ne.s32.totalorder %v1428_v27, 15 }
 0x2a7   : > { %3495 = vmatpush.bf16.msra.mxu0 %v4716_v3  ;;  %v4463_v58 = vsel %vm1810_vm2, 1.0, %v7083_v26  ;;  %v2256_v3 = vpack.c.bf16 %v2235_v50, %v2234_v10  ;;  %v3931_v10 = vld [vmem:[%s7025_s9 + $0x30] sm:$0xff] }
 0x2a8   : > { %v2420_v55 = vmul.f32 %v4463_v58, %v2356_v5  ;;  %v1442_v5 = vand.u32 15, %v1268_v38  ;;  %4042 = vmatpush.msra.mxu3 %v3931_v10 }
 0x2a9   : > { %v3416_v41 = vpop.f32.mrf.mxu1 }
 0x2aa   : > { %v6234_v16 = vadd.f32 %v3416_v41, %v3006_v43  ;;  %v2355_v41 = vunpack.c.l.bf16 %v5695_v34  ;;  %vm1812_vm5 = vcmp.ne.s32.totalorder %v1442_v5, 15 }
 0x2ab   : > { %v3007_v8 = vpop.f32.mrf.mxu0  ;;  %4656 = vmatmul.msk.bf16.gmra.mxu2 %vm2556_vm3, %v2255_v59  ;;  %4672 = vmatmul.msk.bf16.gmra.mxu3 %vm2556_vm3, %v2255_v59  ;;  %v4464_v10 = vsel %vm1812_vm5, 1.0, %v7083_v26 }
 0x2ac   : > { %4754 = vmatmul.msk.bf16.gmra.mxu1 %vm2556_vm3, %v6236_v11  ;;  %v3008_v29 = vadd.f32 %v3007_v8, %v5662_v7  ;;  %v2419_v8 = vmul.f32 %v2355_v41, %v5914_v40  ;;  %v2173_v41 = vunpack.c.h.bf16 %v5687_v14 }
 0x2ae   : > { %v6251_v61 = vpop.f32.mrf.mxu2 }
 0x2b1   : > { %v3418_v59 = vpop.f32.mrf.mxu1 }
 0x2b2   : > { %v6255_v43 = vadd.f32 %v3418_v59, %v3008_v29  ;;  %v6269_v59 = vpack.c.bf16 %v2420_v55, %v2419_v8  ;;  %v2237_v55 = vmul.f32 %v5914_v40, %v2173_v41 }
 0x2b3   : > { %v3010_v62 = vpop.f32.mrf.mxu0 }
 0x2b4   : > { %v3011_v27 = vadd.f32 %v3010_v62, %v5679_v2  ;;  %v2172_v2 = vunpack.c.l.bf16 %v5687_v14  ;;  %v1269_v14 = vadd.s32 192, %v5878_v23 }
 0x2b6   : > { %4641 = vmatmul.msk.bf16.gmra.mxu0 %vm2556_vm3, %v2256_v3  ;;  %v6262_v7 = vpop.f32.mrf.mxu2  ;;  %v2236_v8 = vmul.f32 %v4448_v21, %v2172_v2  ;;  %v1449_v41 = vand.u32 15, %v1269_v14  ;;  %v1270_v21 = vadd.s32 200, %v5878_v23  ;;  %v2175_v14 = vunpack.c.h.bf16 %v5770_v36 }
 0x2b8   : > { %v2257_v4 = vpack.c.bf16 %v2237_v55, %v2236_v8  ;;  %vm1685_vm6 = vcmp.ne.s32.totalorder %v1449_v41, 0  ;;  %v4707_v8 = vld [vmem:[%s7022_s6 + $0xe0] sm:$0xf]  ;;  %v4893_v55 = vld [vmem:[%s7022_s6 + $0xe8] sm:$0xf0] }
 0x2b9   : > { %v3421_v29 = vpop.f32.mrf.mxu1 }
 0x2ba   : > { %v6267_v34 = vadd.f32 %v3421_v29, %v3011_v27  ;;  %v2357_v27 = vunpack.c.l.bf16 %v5757_v32  ;;  %v2358_v29 = vunpack.c.h.bf16 %v5757_v32 }
 0x2bb   : > { %v3012_v50 = vpop.f32.mrf.mxu0  ;;  %4657 = vmatmul.msk.bf16.gmra.mxu2 %vm2556_vm3, %v2256_v3  ;;  %4673 = vmatmul.msk.bf16.gmra.mxu3 %vm2556_vm3, %v2256_v3 }
 0x2bc   : > { %4755 = vmatmul.msk.bf16.gmra.mxu1 %vm2556_vm3, %v6269_v59  ;;  %v3013_v58 = vadd.f32 %v3012_v50, %v5699_v25  ;;  %v2421_v50 = vmul.f32 %v2357_v27, %v5914_v40  ;;  %v2422_v2 = vmul.f32 %v4464_v10, %v2358_v29  ;;  %v2174_v29 = vunpack.c.l.bf16 %v5770_v36 }
 0x2bd   : > { %v4449_v10 = vsel %vm1685_vm6, 1.0, %v7083_v26  ;;  %v1271_v36 = vadd.s32 208, %v5878_v23 }
 0x2be   : > { %v6281_v62 = vpop.f32.mrf.mxu2  ;;  %v2238_v41 = vmul.f32 %v4449_v10, %v2174_v29  ;;  %v1272_v10 = vadd.s32 216, %v5878_v23 }
 0x2c1   : > { %v3423_v3 = vpop.f32.mrf.mxu1 }
 0x2c2   : > { %v6285_v60 = vadd.f32 %v3423_v3, %v3013_v58  ;;  %v6299_v3 = vpack.c.bf16 %v2422_v2, %v2421_v50 }
 0x2c3   : > { %v3015_v38 = vpop.f32.mrf.mxu0 }
 0x2c4   : > { %v3016_v5 = vadd.f32 %v3015_v38, %v5723_v53  ;;  %v4708_v53 = vor.u32 %v4893_v55, %v4707_v8  ;;  %v1456_v38 = vand.u32 15, %v1270_v21  ;;  %v2359_v8 = vunpack.c.l.bf16 %v5816_v9 }
 0x2c5   : > { %v2360_v55 = vunpack.c.h.bf16 %v5816_v9 }
 0x2c6   : > { %4642 = vmatmul.msk.bf16.gmra.mxu0 %vm2556_vm3, %v2257_v4  ;;  %v6292_v25 = vpop.f32.mrf.mxu2  ;;  %3585 = vmatpush.bf16.msra.mxu2 %v4708_v53  ;;  %vm1814_vm7 = vcmp.ne.s32.totalorder %v1456_v38, 15 }
 0x2c7   : > { %v4465_v53 = vsel %vm1814_vm7, 1.0, %v7083_v26 }
 0x2c8   : > { %v2424_v29 = vmul.f32 %v4465_v53, %v2360_v55  ;;  %v1470_v55 = vand.u32 15, %v1272_v10 }
 0x2c9   : > { %v3426_v58 = vpop.f32.mrf.mxu1 }
 0x2ca   : > { %v6297_v32 = vadd.f32 %v3426_v58, %v3016_v5  ;;  %v2239_v5 = vmul.f32 %v5914_v40, %v2175_v14  ;;  %v1463_v14 = vand.u32 15, %v1271_v36  ;;  %v4891_v36 = vld [vmem:[%s7022_s6 + $0xdc] sm:$0xf]  ;;  %vm1816_vm9 = vcmp.ne.s32.totalorder %v1470_v55, 15 }
 0x2cb   : > { %v3017_v27 = vpop.f32.mrf.mxu0  ;;  %4658 = vmatmul.msk.bf16.gmra.mxu2 %vm2556_vm3, %v2257_v4  ;;  %4674 = vmatmul.msk.bf16.gmra.mxu3 %vm2556_vm3, %v2257_v4  ;;  %v7129_v55 = vld [vmem:[#allocation21_spill] sm:$0xff] }
 0x2cc   : > { %7122 = vst [vmem:[#allocation74_spill] sm:$0xff] %v6297_v32  ;;  %4756 = vmatmul.msk.bf16.gmra.mxu1 %vm2556_vm3, %v6299_v3  ;;  %v3018_v2 = vadd.f32 %v3017_v27, %v5733_v46  ;;  %v2258_v32 = vpack.c.bf16 %v2239_v5, %v2238_v41  ;;  %v2423_v27 = vmul.f32 %v2359_v8, %v5914_v40  ;;  %vm1687_vm8 = vcmp.ne.s32.totalorder %v1463_v14, 0  ;;  %v3930_v41 = vld [vmem:[%s7025_s9 + $0x28] sm:$0xff] }
 0x2cd   : > { %v2177_v8 = vunpack.c.h.bf16 %v5831_v28  ;;  %4043 = vmatpush.msra.mxu3 %v3930_v41  ;;  %v4450_v53 = vsel %vm1687_vm8, 1.0, %v7083_v26  ;;  %v2362_v41 = vunpack.c.h.bf16 %v5840_v18 }
 0x2ce   : > { %v6314_v50 = vpop.f32.mrf.mxu2 }
 0x2d1   : > { %v3428_v4 = vpop.f32.mrf.mxu1 }
 0x2d2   : > { %v6318_v58 = vadd.f32 %v3428_v4, %v3018_v2  ;;  %v6330_v2 = vpop.f32.mrf.mxu3 }
 0x2d3   : > { %v3020_v21 = vpop.f32.mrf.mxu0 }
 0x2d4   : > { %7123 = vst [vmem:[#allocation75_spill] sm:$0xff] %v6318_v58  ;;  %v3021_v38 = vadd.f32 %v3020_v21, %v5752_v24  ;;  %v6334_v58 = vpack.c.bf16 %v2424_v29, %v2423_v27  ;;  %v2176_v24 = vunpack.c.l.bf16 %v5831_v28  ;;  %v4701_v21 = vld [vmem:[%s7022_s6 + $0xe4] sm:$0xf0]  ;;  %v2241_v28 = vmul.f32 %v5914_v40, %v2177_v8 }
 0x2d6   : > { %4643 = vmatmul.msk.bf16.gmra.mxu0 %vm2556_vm3, %v2258_v32  ;;  %v6325_v46 = vpop.f32.mrf.mxu2  ;;  %7125 = vst [vmem:[#allocation77_spill] sm:$0xff] %v6334_v58  ;;  %v2240_v14 = vmul.f32 %v4450_v53, %v2176_v24 }
 0x2d9   : > { %v3431_v9 = vpop.f32.mrf.mxu1 }
 0x2da   : > { %v6332_v4 = vadd.f32 %v3431_v9, %v3021_v38  ;;  %v2361_v9 = vunpack.c.l.bf16 %v5840_v18  ;;  %v1274_v18 = vadd.s32 232, %v5878_v23 }
 0x2db   : > { %v3022_v5 = vpop.f32.mrf.mxu0  ;;  %4659 = vmatmul.msk.bf16.gmra.mxu2 %vm2556_vm3, %v2258_v32  ;;  %4675 = vmatmul.msk.bf16.gmra.mxu3 %vm2556_vm3, %v2258_v32  ;;  %v4704_v32 = vor.u32 %v4891_v36, %v4701_v21  ;;  %v4466_v21 = vsel %vm1816_vm9, 1.0, %v7083_v26 }
 0x2dc   : > { %7124 = vst [vmem:[#allocation76_spill] sm:$0xff] %v6332_v4  ;;  %4757 = vmatmul.msk.bf16.gmra.mxu1 %vm2556_vm3, %v6334_v58  ;;  %v3023_v29 = vadd.f32 %v3022_v5, %v5777_v1  ;;  %v1273_v4 = vadd.s32 224, %v5878_v23  ;;  %v6361_v58 = vpop.f32.mrf.mxu3  ;;  %v2425_v5 = vmul.f32 %v2361_v9, %v5914_v40  ;;  %v2426_v24 = vmul.f32 %v4466_v21, %v2362_v41 }
 0x2dd   : > { %3496 = vmatpush.bf16.msra.mxu0 %v4704_v32  ;;  %v2259_v32 = vpack.c.bf16 %v2241_v28, %v2240_v14  ;;  %v7132_v14 = vld [vmem:[#allocation24_spill] sm:$0xff]  ;;  %v1484_v9 = vand.u32 15, %v1274_v18  ;;  %v1275_v18 = vadd.s32 240, %v5878_v23 }
 0x2de   : > { %v6352_v27 = vpop.f32.mrf.mxu2  ;;  %v1477_v8 = vand.u32 15, %v1273_v4  ;;  %v2178_v4 = vunpack.c.l.bf16 %v7132_v14  ;;  %v2179_v28 = vunpack.c.h.bf16 %v7132_v14  ;;  %v2364_v14 = vunpack.c.h.bf16 %v5922_v19 }
 0x2df   : > { %7126 = vst [vmem:[#allocation78_spill] sm:$0xff] %v6352_v27  ;;  %vm1818_vm11 = vcmp.ne.s32.totalorder %v1484_v9, 15  ;;  %v1491_v9 = vand.u32 15, %v1275_v18  ;;  %v7138_v18 = vld [vmem:[#allocation31_spill] sm:$0xff] }
 0x2e0   : > { %vm1689_vm10 = vcmp.ne.s32.totalorder %v1477_v8, 0 }
 0x2e1   : > { %v3433_v38 = vpop.f32.mrf.mxu1  ;;  %vm1691_vm12 = vcmp.ne.s32.totalorder %v1491_v9, 0 }
 0x2e2   : > { %v6356_v10 = vadd.f32 %v3433_v38, %v3023_v29 }
 0x2e3   : > { %v3025_v36 = vpop.f32.mrf.mxu0 }
 0x2e4   : > { %7127 = vst [vmem:[#allocation79_spill] sm:$0xff] %v6356_v10  ;;  %v3026_v53 = vadd.f32 %v3025_v36, %v7129_v55  ;;  %v6372_v10 = vpack.c.bf16 %v2426_v24, %v2425_v5  ;;  %v6380_v41 = vpop.f32.mrf.mxu3  ;;  %v4451_v36 = vsel %vm1689_vm10, 1.0, %v7083_v26  ;;  %v7134_v5 = vld [vmem:[#allocation25_spill] sm:$0xff]  ;;  %v2243_v55 = vmul.f32 %v5914_v40, %v2179_v28 }
 0x2e5   : > { %v2242_v8 = vmul.f32 %v4451_v36, %v2178_v4 }
 0x2e6   : > { %4644 = vmatmul.msk.bf16.gmra.mxu0 %vm2556_vm3, %v2259_v32  ;;  %v6365_v1 = vpop.f32.mrf.mxu2  ;;  %7131 = vst [vmem:[#allocation81_spill] sm:$0xff] %v6372_v10 }
 0x2e7   : > { %7128 = vst [vmem:[#allocation80_spill] sm:$0xff] %v6365_v1  ;;  %v2260_v1 = vpack.c.bf16 %v2243_v55, %v2242_v8  ;;  %v3929_v8 = vld [vmem:[%s7025_s9 + $0x20] sm:$0xff] }
 0x2e8   : > { %4044 = vmatpush.msra.mxu3 %v3929_v8 }
 0x2e9   : > { %v3436_v29 = vpop.f32.mrf.mxu1 }
 0x2ea   : > { %v6370_v38 = vadd.f32 %v3436_v29, %v3026_v53  ;;  %v2363_v29 = vunpack.c.l.bf16 %v5922_v19  ;;  %v1276_v19 = vadd.s32 248, %v5878_v23  ;;  %v2180_v23 = vunpack.c.l.bf16 %v5930_v6 }
 0x2eb   : > { %v3027_v27 = vpop.f32.mrf.mxu0  ;;  %4660 = vmatmul.msk.bf16.gmra.mxu2 %vm2556_vm3, %v2259_v32  ;;  %4676 = vmatmul.msk.bf16.gmra.mxu3 %vm2556_vm3, %v2259_v32 }
 0x2ec   : > { %7130 = vst [vmem:[#allocation21_spill] sm:$0xff] %v6370_v38  ;;  %4758 = vmatmul.msk.bf16.gmra.mxu1 %vm2556_vm3, %v6372_v10  ;;  %v3028_v24 = vadd.f32 %v3027_v27, %v7134_v5  ;;  %v4467_v10 = vsel %vm1818_vm11, 1.0, %v7083_v26  ;;  %v2427_v4 = vmul.f32 %v2363_v29, %v5914_v40  ;;  %v6397_v36 = vpop.f32.mrf.mxu3  ;;  %v7136_v5 = vld [vmem:[#allocation28_spill] sm:$0xff]  ;;  %v4452_v29 = vsel %vm1691_vm12, 1.0, %v7083_v26 }
 0x2ed   : > { %v2428_v28 = vmul.f32 %v4467_v10, %v2364_v14  ;;  %v2181_v10 = vunpack.c.h.bf16 %v5930_v6  ;;  %v2366_v6 = vunpack.c.h.bf16 %v5932_v39 }
 0x2ee   : > { %v6383_v21 = vpop.f32.mrf.mxu2 }
 0x2ef   : > { %7133 = vst [vmem:[#allocation24_spill] sm:$0xff] %v6383_v21  ;;  %v6403_v21 = vpack.c.bf16 %v2428_v28, %v2427_v4  ;;  %v2244_v28 = vmul.f32 %v4452_v29, %v2180_v23  ;;  %v2245_v9 = vmul.f32 %v5914_v40, %v2181_v10 }
 0x2f1   : > { %v3438_v32 = vpop.f32.mrf.mxu1 }
 0x2f2   : > { %v6387_v53 = vadd.f32 %v3438_v32, %v3028_v24 }
 0x2f3   : > { %v3030_v38 = vpop.f32.mrf.mxu0 }
 0x2f4   : > { %7135 = vst [vmem:[#allocation25_spill] sm:$0xff] %v6387_v53  ;;  %v3031_v24 = vadd.f32 %v3030_v38, %v7136_v5  ;;  %v1498_v38 = vand.u32 15, %v1276_v19 }
 0x2f6   : > { %4645 = vmatmul.msk.bf16.gmra.mxu0 %vm2556_vm3, %v2260_v1  ;;  %v6394_v27 = vpop.f32.mrf.mxu2  ;;  %vm1820_vm13 = vcmp.ne.s32.totalorder %v1498_v38, 15 }
 0x2f7   : > { %v4468_v8 = vsel %vm1820_vm13, 1.0, %v7083_v26 }
 0x2f8   : > { %v2430_v10 = vmul.f32 %v4468_v8, %v2366_v6  ;;  %v3928_v8 = vld [vmem:[%s7025_s9 + $0x18] sm:$0xff] }
 0x2f9   : > { %v3441_v32 = vpop.f32.mrf.mxu1  ;;  %4045 = vmatpush.msra.mxu3 %v3928_v8 }
 0x2fa   : > { %v6401_v53 = vadd.f32 %v3441_v32, %v3031_v24  ;;  %v2365_v32 = vunpack.c.l.bf16 %v5932_v39 }
 0x2fb   : > { %v3032_v55 = vpop.f32.mrf.mxu0  ;;  %4661 = vmatmul.msk.bf16.gmra.mxu2 %vm2556_vm3, %v2260_v1  ;;  %4677 = vmatmul.msk.bf16.gmra.mxu3 %vm2556_vm3, %v2260_v1  ;;  %v6419_v1 = vpop.f32.mrf.mxu3 }
 0x2fc   : > { %7137 = vst [vmem:[#allocation28_spill] sm:$0xff] %v6401_v53  ;;  %4759 = vmatmul.msk.bf16.gmra.mxu1 %vm2556_vm3, %v6403_v21  ;;  %v3033_v4 = vadd.f32 %v3032_v55, %v7138_v18  ;;  %v2261_v53 = vpack.c.bf16 %v2245_v9, %v2244_v28  ;;  %v2429_v23 = vmul.f32 %v2365_v32, %v5914_v40 }
 0x2fe   : > { %v6415_v14 = vpop.f32.mrf.mxu2 }
 0x301   : > { %v3443_v5 = vpop.f32.mrf.mxu1 }
 0x302   : > { %v6421_v24 = vadd.f32 %v3443_v5, %v3033_v4  ;;  %v6433_v4 = vpack.c.bf16 %v2430_v10, %v2429_v23 }
 0x303   : > { %v3035_v19 = vpop.f32.mrf.mxu0  ;;  %v6435_v5 = vpop.f32.mrf.mxu3 }
 0x304   : > { %v3036_v38 = vadd.f32 %v3035_v19, %v5907_v47 }
 0x306   : > { %4646 = vmatmul.msk.bf16.gmra.mxu0 %vm2556_vm3, %v2261_v53  ;;  %v6427_v55 = vpop.f32.mrf.mxu2 }
 0x309   : > { %v3446_v29 = vpop.f32.mrf.mxu1 }
 0x30a   : > { %v6431_v18 = vadd.f32 %v3446_v29, %v3036_v38 }
 0x30b   : > { %v3037_v39 = vpop.f32.mrf.mxu0  ;;  %4662 = vmatmul.msk.bf16.gmra.mxu2 %vm2556_vm3, %v2261_v53  ;;  %4678 = vmatmul.msk.bf16.gmra.mxu3 %vm2556_vm3, %v2261_v53 }
 0x30c   : > { %4760 = vmatmul.msk.bf16.gmra.mxu1 %vm2556_vm3, %v6433_v4  ;;  %v3038_v40 = vadd.f32 %v3037_v39, %v5938_v44 }
 0x30e   : > { %v6441_v26 = vpop.f32.mrf.mxu2 }
 0x311   : > { %v3448_v47 = vpop.f32.mrf.mxu1 }
 0x312   : > { %v6444_v28 = vadd.f32 %v3448_v47, %v3038_v40 }
 0x313   : > { %v3040_v9 = vpop.f32.mrf.mxu0 }
 0x314   : > { %v3041_v6 = vadd.f32 %v3040_v9, %v5956_v42 }
 0x316   : > { %v6446_v32 = vpop.f32.mrf.mxu2  ;;  %4761 = vmatmul.msk.bf16.vlgmr.msra.gmra.mxu0 %vm2556_vm3, %v5947_v45 }
 0x319   : > { %v3451_v19 = vpop.f32.mrf.mxu1 }
 0x31a   : > { %v6451_v53 = vadd.f32 %v3451_v19, %v3041_v6 }
 0x31b   : > { %v3042_v23 = vpop.f32.mrf.mxu0  ;;  %4777 = vmatmul.msk.bf16.vlgmr.msra.gmra.mxu2 %vm2556_vm3, %v5947_v45 }
 0x31c   : > { %v3043_v10 = vadd.f32 %v3042_v23, %v5967_v57 }
 0x31e   : > { %v6458_v44 = vpop.f32.mrf.mxu2 }
 0x321   : > { %v3453_v38 = vpop.f32.mrf.mxu1 }
 0x322   : > { %v6461_v29 = vadd.f32 %v3453_v38, %v3043_v10 }
 0x323   : > { %v3045_v42 = vpop.f32.mrf.mxu0 }
 0x324   : > { %v3046_v40 = vadd.f32 %v3045_v42, %v5985_v12 }
 0x326   : > { %v6463_v39 = vpop.f32.mrf.mxu2  ;;  %4762 = vmatmul.msk.bf16.gmra.mxu0 %vm2556_vm3, %v5976_v54 }
 0x329   : > { %v3456_v47 = vpop.f32.mrf.mxu1 }
 0x32a   : > { %v6468_v9 = vadd.f32 %v3456_v47, %v3046_v40 }
 0x32b   : > { %v3047_v45 = vpop.f32.mrf.mxu0  ;;  %4778 = vmatmul.msk.bf16.gmra.mxu2 %vm2556_vm3, %v5976_v54  ;;  %v3927_v54 = vld [vmem:[%s7025_s9 + $0x10] sm:$0xff] }
 0x32c   : > { %v3048_v57 = vadd.f32 %v3047_v45, %v6002_v0  ;;  %4046 = vmatpush.msra.mxu3 %v3927_v54  ;;  %v6503_v54 = vpop.f32.mrf.mxu3 }
 0x32e   : > { %v6472_v6 = vpop.f32.mrf.mxu2 }
 0x331   : > { %v3458_v19 = vpop.f32.mrf.mxu1 }
 0x332   : > { %v6475_v8 = vadd.f32 %v3458_v19, %v3048_v57 }
 0x333   : > { %v3050_v23 = vpop.f32.mrf.mxu0 }
 0x334   : > { %7139 = vst [vmem:[#allocation31_spill] sm:$0xff] %v6475_v8  ;;  %v3051_v12 = vadd.f32 %v3050_v23, %v6020_v48 }
 0x336   : > { %v6477_v10 = vpop.f32.mrf.mxu2  ;;  %4763 = vmatmul.msk.bf16.gmra.mxu0 %vm2556_vm3, %v6011_v15 }
 0x339   : > { %v3461_v38 = vpop.f32.mrf.mxu1 }
 0x33a   : > { %v6482_v42 = vadd.f32 %v3461_v38, %v3051_v12 }
 0x33b   : > { %v3052_v40 = vpop.f32.mrf.mxu0  ;;  %4779 = vmatmul.msk.bf16.gmra.mxu2 %vm2556_vm3, %v6011_v15 }
 0x33c   : > { %7140 = vst [vmem:[#allocation82_spill] sm:$0xff] %v6482_v42  ;;  %v3053_v47 = vadd.f32 %v3052_v40, %v6037_v20 }
 0x33e   : > { %v6489_v0 = vpop.f32.mrf.mxu2 }
 0x341   : > { %v3463_v45 = vpop.f32.mrf.mxu1 }
 0x342   : > { %v6492_v57 = vadd.f32 %v3463_v45, %v3053_v47 }
 0x343   : > { %v3055_v48 = vpop.f32.mrf.mxu0 }
 0x344   : > { %7141 = vst [vmem:[#allocation83_spill] sm:$0xff] %v6492_v57  ;;  %v3056_v23 = vadd.f32 %v3055_v48, %v6055_v63  ;;  %v7147_v63 = vld [vmem:[#allocation54_spill] sm:$0xff]  ;;  %v6514_v48 = vpop.f32.mrf.mxu3 }
 0x346   : > { %v6494_v19 = vpop.f32.mrf.mxu2  ;;  %4764 = vmatmul.msk.bf16.gmra.mxu0 %vm2556_vm3, %v6046_v49 }
 0x347   : > { %7142 = vst [vmem:[#allocation84_spill] sm:$0xff] %v6494_v19  ;;  %v7168_v19 = vld [vmem:[#allocation2_spill] sm:$0xff] }
 0x349   : > { %v3466_v12 = vpop.f32.mrf.mxu1 }
 0x34a   : > { %v6499_v38 = vadd.f32 %v3466_v12, %v3056_v23  ;;  %v7148_v23 = vld [vmem:[#allocation55_spill] sm:$0xff] }
 0x34b   : > { %v3057_v15 = vpop.f32.mrf.mxu0  ;;  %4780 = vmatmul.msk.bf16.gmra.mxu2 %vm2556_vm3, %v6046_v49 }
 0x34c   : > { %7143 = vst [vmem:[#allocation85_spill] sm:$0xff] %v6499_v38  ;;  %v3058_v40 = vadd.f32 %v3057_v15, %v6066_v17  ;;  %v3926_v17 = vld [vmem:[%s7025_s9 + $0x8] sm:$0xff] }
 0x34d   : > { %4047 = vmatpush.msra.mxu3 %v3926_v17 }
 0x34e   : > { %v6505_v20 = vpop.f32.mrf.mxu2 }
 0x34f   : > { %7144 = vst [vmem:[#allocation86_spill] sm:$0xff] %v6505_v20 }
 0x351   : > { %v3468_v47 = vpop.f32.mrf.mxu1 }
 0x352   : > { %v6508_v45 = vadd.f32 %v3468_v47, %v3058_v40 }
 0x353   : > { %v3060_v57 = vpop.f32.mrf.mxu0 }
 0x354   : > { %7145 = vst [vmem:[#allocation87_spill] sm:$0xff] %v6508_v45  ;;  %v3061_v12 = vadd.f32 %v3060_v57, %v7148_v23 }
 0x356   : > { %v6510_v42 = vpop.f32.mrf.mxu2  ;;  %4765 = vmatmul.msk.bf16.gmra.mxu0 %vm2556_vm3, %v7147_v63 }
 0x357   : > { %7146 = vst [vmem:[#allocation88_spill] sm:$0xff] %v6510_v42  ;;  %v6527_v42 = vpop.f32.mrf.mxu3 }
 0x359   : > { %v3471_v49 = vpop.f32.mrf.mxu1 }
 0x35a   : > { %v6517_v38 = vadd.f32 %v3471_v49, %v3061_v12 }
 0x35b   : > { %v3062_v15 = vpop.f32.mrf.mxu0  ;;  %4781 = vmatmul.msk.bf16.gmra.mxu2 %vm2556_vm3, %v7147_v63 }
 0x35c   : > { %7149 = vst [vmem:[#allocation54_spill] sm:$0xff] %v6517_v38  ;;  %v3063_v47 = vadd.f32 %v3062_v15, %v6101_v30 }
 0x35e   : > { %v6524_v40 = vpop.f32.mrf.mxu2 }
 0x35f   : > { %7150 = vst [vmem:[#allocation55_spill] sm:$0xff] %v6524_v40  ;;  %v6540_v30 = vpop.f32.mrf.mxu3 }
 0x361   : > { %v3473_v45 = vpop.f32.mrf.mxu1 }
 0x362   : > { %v6529_v57 = vadd.f32 %v3473_v45, %v3063_v47 }
 0x363   : > { %v3065_v23 = vpop.f32.mrf.mxu0 }
 0x364   : > { %7151 = vst [vmem:[#allocation89_spill] sm:$0xff] %v6529_v57  ;;  %v3066_v49 = vadd.f32 %v3065_v23, %v6119_v22 }
 0x366   : > { %v6531_v12 = vpop.f32.mrf.mxu2  ;;  %4766 = vmatmul.msk.bf16.gmra.mxu0 %vm2556_vm3, %v6110_v51 }
 0x367   : > { %7152 = vst [vmem:[#allocation90_spill] sm:$0xff] %v6531_v12  ;;  %v6547_v40 = vpop.f32.mrf.mxu3 }
 0x369   : > { %v3476_v38 = vpop.f32.mrf.mxu1 }
 0x36a   : > { %v6536_v63 = vadd.f32 %v3476_v38, %v3066_v49  ;;  %v7157_v38 = vld [vmem:[#allocation64_spill] sm:$0xff] }
 0x36b   : > { %v3067_v17 = vpop.f32.mrf.mxu0  ;;  %4782 = vmatmul.msk.bf16.gmra.mxu2 %vm2556_vm3, %v6110_v51  ;;  %v3925_v51 = vld [vmem:[%s7025_s9] sm:$0xff] }
 0x36c   : > { %7153 = vst [vmem:[#allocation91_spill] sm:$0xff] %v6536_v63  ;;  %v3068_v45 = vadd.f32 %v3067_v17, %v6130_v37  ;;  %4048 = vmatpush.msra.mxu3 %v3925_v51 }
 0x36e   : > { %v6542_v15 = vpop.f32.mrf.mxu2 }
 0x36f   : > { %7154 = vst [vmem:[#allocation92_spill] sm:$0xff] %v6542_v15 }
 0x371   : > { %v3478_v47 = vpop.f32.mrf.mxu1 }
 0x372   : > { %v6545_v57 = vadd.f32 %v3478_v47, %v3068_v45  ;;  %v6563_v47 = vpop.f32.mrf.mxu3 }
 0x373   : > { %v3070_v12 = vpop.f32.mrf.mxu0 }
 0x374   : > { %7155 = vst [vmem:[#allocation93_spill] sm:$0xff] %v6545_v57  ;;  %v3071_v23 = vadd.f32 %v3070_v12, %v7157_v38  ;;  %v7160_v57 = vld [vmem:[#allocation67_spill] sm:$0xff]  ;;  %v7163_v12 = vld [vmem:[#allocation70_spill] sm:$0xff] }
 0x376   : > { %v6549_v22 = vpop.f32.mrf.mxu2  ;;  %4767 = vmatmul.msk.bf16.gmra.mxu0 %vm2556_vm3, %v6145_v33 }
 0x377   : > { %7156 = vst [vmem:[#allocation94_spill] sm:$0xff] %v6549_v22 }
 0x379   : > { %v3481_v49 = vpop.f32.mrf.mxu1 }
 0x37a   : > { %v6557_v37 = vadd.f32 %v3481_v49, %v3071_v23  ;;  %v6572_v38 = vpop.f32.mrf.mxu3 }
 0x37b   : > { %v3072_v17 = vpop.f32.mrf.mxu0  ;;  %4783 = vmatmul.msk.bf16.gmra.mxu2 %vm2556_vm3, %v6145_v33 }
 0x37c   : > { %7158 = vst [vmem:[#allocation64_spill] sm:$0xff] %v6557_v37  ;;  %v3073_v63 = vadd.f32 %v3072_v17, %v7160_v57 }
 0x37e   : > { %v6561_v45 = vpop.f32.mrf.mxu2 }
 0x37f   : > { %7159 = vst [vmem:[#allocation95_spill] sm:$0xff] %v6561_v45 }
 0x381   : > { %v3483_v22 = vpop.f32.mrf.mxu1 }
 0x382   : > { %v6566_v15 = vadd.f32 %v3483_v22, %v3073_v63  ;;  %v6578_v17 = vpop.f32.mrf.mxu3 }
 0x383   : > { %v3075_v20 = vpop.f32.mrf.mxu0 }
 0x384   : > { %7161 = vst [vmem:[#allocation67_spill] sm:$0xff] %v6566_v15 }
 0x386   : > { %v6568_v8 = vpop.f32.mrf.mxu2  ;;  %4768 = vmatmul.msk.bf16.gmra.mxu0 %vm2556_vm3, %v7163_v12 }
 0x387   : > { %7162 = vst [vmem:[#allocation96_spill] sm:$0xff] %v6568_v8  ;;  %v7167_v8 = vld [vmem:[#allocation7_spill] sm:$0xff] }
 0x388   : > { %v3095_v45 = vadd.f32 %v6262_v7, %v7167_v8  ;;  %v6607_v7 = vld [vmem:[%s7023_s7] ss:$0 sm:$0xff] }
 0x389   : > { %v3486_v51 = vpop.f32.mrf.mxu1 }
 0x38a   : > { %v6586_v22 = vpop.f32.mrf.mxu3 }
 0x38b   : > { %v3076_v23 = vpop.f32.mrf.mxu0  ;;  %4784 = vmatmul.msk.bf16.gmra.mxu2 %vm2556_vm3, %v7163_v12 }
 0x38c   : > { %v7166_v23 = vld [vmem:[#allocation5_spill] sm:$0xff] }
 0x38d   : > { %v3093_v12 = vadd.f32 %v6251_v61, %v7166_v23  ;;  %v3088_v61 = vadd.f32 %v6218_v35, %v7168_v19  ;;  %v7170_v35 = vld [vmem:[#allocation9_spill] sm:$0xff] }
 0x38e   : > { %v6576_v33 = vpop.f32.mrf.mxu2  ;;  %v3098_v19 = vadd.f32 %v6281_v62, %v7170_v35 }
 0x38f   : > { %7164 = vst [vmem:[#allocation70_spill] sm:$0xff] %v6576_v33 }
 0x391   : > { %v3487_v49 = vpop.f32.mrf.mxu1 }
 0x392   : > { %v6593_v33 = vpop.f32.mrf.mxu3 }
 0x393   : > { %v3498_v57 = vpop.f32.mrf.mxu0 }
 0x396   : > { %v6580_v63 = vpop.f32.mrf.mxu2  ;;  %4769 = vmatmul.msk.bf16.gmra.mxu0 %vm2556_vm3, %v6206_v13 }
 0x397   : > { %7165 = vst [vmem:[#allocation97_spill] sm:$0xff] %v6580_v63 }
 0x39b   : > { %v3500_v20 = vpop.f32.mrf.mxu0  ;;  %4785 = vmatmul.msk.bf16.gmra.mxu2 %vm2556_vm3, %v6206_v13 }
 0x39e   : > { %v3587_v51 = vpop.f32.mrf.mxu2 }
 0x3a3   : > { %v3503_v15 = vpop.f32.mrf.mxu0 }
 0x3a4   : > { %v3670_v49 = vadd.f32 %v3503_v15, %v3093_v12  ;;  %v7169_v15 = vld [vmem:[#allocation4_spill] sm:$0xff] }
 0x3a6   : > { %v3759_v37 = vadd.f32 %v3670_v49, %v6204_v56  ;;  %4770 = vmatmul.msk.bf16.gmra.mxu0 %vm2556_vm3, %v6236_v11  ;;  %v3588_v63 = vpop.f32.mrf.mxu2  ;;  %v3180_v56 = vadd.f32 %v6330_v2, %v7169_v15  ;;  %v6616_v2 = vpop.f32.mrf.mxu3 }
 0x3a7   : > { %v3666_v63 = vadd.f32 %v3498_v57, %v3088_v61  ;;  %v7172_v61 = vld [vmem:[#allocation6_spill] sm:$0xff] }
 0x3a8   : > { %v3182_v15 = vadd.f32 %v6361_v58, %v7172_v61 }
 0x3ab   : > { %v3505_v13 = vpop.f32.mrf.mxu0  ;;  %4786 = vmatmul.msk.bf16.gmra.mxu2 %vm2556_vm3, %v6236_v11  ;;  %v6612_v11 = vld [vmem:[%s7024_s8] ss:$0 sm:$0xff] }
 0x3ac   : > { %v3673_v51 = vadd.f32 %v3505_v13, %v3095_v45  ;;  %v7171_v13 = vld [vmem:[#allocation3_spill] sm:$0xff] }
 0x3ae   : > { %v3760_v23 = vadd.f32 %v3673_v51, %v6222_v52  ;;  %v3590_v12 = vpop.f32.mrf.mxu2  ;;  %v3090_v51 = vadd.f32 %v6229_v31, %v7171_v13 }
 0x3af   : > { %v3671_v49 = vadd.f32 %v3590_v12, %v3180_v56 }
 0x3b1   : > { %v3789_v8 = vadd.f32 %v3671_v49, %v3666_v63  ;;  %v3668_v63 = vadd.f32 %v3500_v20, %v3090_v51 }
 0x3b3   : > { %v3825_v52 = vmul.f32 %v6607_v7, %v3789_v8  ;;  %v3508_v45 = vpop.f32.mrf.mxu0 }
 0x3b4   : > { %v3676_v57 = vadd.f32 %v3508_v45, %v3098_v19  ;;  %v7173_v19 = vld [vmem:[#allocation11_spill] sm:$0xff] }
 0x3b5   : > { %v3861_v56 = vadd.f32 %v6612_v11, %v3825_v52  ;;  %v3100_v31 = vadd.f32 %v6292_v25, %v7173_v19 }
 0x3b6   : > { %v3761_v12 = vadd.f32 %v3676_v57, %v6234_v16  ;;  %4771 = vmatmul.msk.bf16.gmra.mxu0 %vm2556_vm3, %v6269_v59  ;;  %v3592_v62 = vpop.f32.mrf.mxu2  ;;  %v6633_v16 = vpop.f32.mrf.mxu3  ;;  %v7174_v57 = vld [vmem:[#allocation8_spill] sm:$0xff] }
 0x3b7   : > { %v3893_v49 = vmax.f32 %v3861_v56, 0.0  ;;  %v3674_v35 = vadd.f32 %v3592_v62, %v3182_v15  ;;  %v3185_v20 = vadd.f32 %v6380_v41, %v7174_v57  ;;  %v7175_v62 = vld [vmem:[#allocation13_spill] sm:$0xff] }
 0x3b9   : > { %v3790_v8 = vadd.f32 %v3674_v35, %v3668_v63  ;;  %4793 = vmatmul.msk.f32.vlgmr.msra.gmra.mxu3 %vm552_vm1, %v3893_v49  ;;  %v3103_v63 = vadd.f32 %v6314_v50, %v7175_v62 }
 0x3bb   : > { %v3826_v45 = vmul.f32 %v6607_v7, %v3790_v8  ;;  %v3510_v58 = vpop.f32.mrf.mxu0  ;;  %4787 = vmatmul.msk.bf16.gmra.mxu2 %vm2556_vm3, %v6269_v59  ;;  %v7176_v8 = vld [vmem:[#allocation10_spill] sm:$0xff] }
 0x3bc   : > { %v3679_v52 = vadd.f32 %v3510_v58, %v3100_v31  ;;  %v3187_v41 = vadd.f32 %v6397_v36, %v7176_v8 }
 0x3bd   : > { %v3862_v13 = vadd.f32 %v6612_v11, %v3826_v45 }
 0x3be   : > { %v3762_v51 = vadd.f32 %v3679_v52, %v6255_v43  ;;  %v3595_v61 = vpop.f32.mrf.mxu2  ;;  %v6646_v31 = vpop.f32.mrf.mxu3  ;;  %v7177_v52 = vld [vmem:[#allocation15_spill] sm:$0xff] }
 0x3bf   : > { %v3677_v15 = vadd.f32 %v3595_v61, %v3185_v20  ;;  %v3894_v56 = vmax.f32 %v3862_v13, 0.0  ;;  %v3105_v57 = vadd.f32 %v6325_v46, %v7177_v52 }
 0x3c1   : > { %v3791_v25 = vadd.f32 %v3759_v37, %v3677_v15  ;;  %4794 = vmatmul.msk.f32.gmra.mxu3 %vm552_vm1, %v3894_v56 }
 0x3c3   : > { %v3827_v59 = vmul.f32 %v6607_v7, %v3791_v25  ;;  %v3513_v49 = vpop.f32.mrf.mxu0 }
 0x3c4   : > { %v3682_v35 = vadd.f32 %v3513_v49, %v3103_v63  ;;  %v7180_v49 = vld [vmem:[#allocation78_spill] sm:$0xff] }
 0x3c5   : > { %v3863_v19 = vadd.f32 %v6612_v11, %v3827_v59  ;;  %v7179_v59 = vld [vmem:[#allocation17_spill] sm:$0xff] }
 0x3c6   : > { %v3763_v43 = vadd.f32 %v3682_v35, %v6267_v34  ;;  %4772 = vmatmul.msk.bf16.gmra.mxu0 %vm2556_vm3, %v6299_v3  ;;  %v3597_v37 = vpop.f32.mrf.mxu2  ;;  %v7178_v34 = vld [vmem:[#allocation12_spill] sm:$0xff]  ;;  %v6661_v63 = vpop.f32.mrf.mxu3  ;;  %v3108_v35 = vadd.f32 %v7180_v49, %v7179_v59 }
 0x3c7   : > { %v3895_v45 = vmax.f32 %v3863_v19, 0.0  ;;  %v3680_v58 = vadd.f32 %v3597_v37, %v3187_v41  ;;  %v3190_v61 = vadd.f32 %v6419_v1, %v7178_v34  ;;  %v7181_v1 = vld [vmem:[#allocation14_spill] sm:$0xff] }
 0x3c8   : > { %v3192_v19 = vadd.f32 %v6435_v5, %v7181_v1  ;;  %v7182_v37 = vld [vmem:[#allocation74_spill] sm:$0xff] }
 0x3c9   : > { %v3792_v50 = vadd.f32 %v3760_v23, %v3680_v58  ;;  %4795 = vmatmul.msk.f32.gmra.mxu3 %vm552_vm1, %v3895_v45  ;;  %v7183_v58 = vld [vmem:[#allocation77_spill] sm:$0xff] }
 0x3cb   : > { %v3828_v36 = vmul.f32 %v6607_v7, %v3792_v50  ;;  %v3515_v20 = vpop.f32.mrf.mxu0  ;;  %4788 = vmatmul.msk.bf16.gmra.mxu2 %vm2556_vm3, %v6299_v3 }
 0x3cc   : > { %v3685_v13 = vadd.f32 %v3515_v20, %v3105_v57  ;;  %v7185_v20 = vld [vmem:[#allocation80_spill] sm:$0xff] }
 0x3cd   : > { %v3864_v15 = vadd.f32 %v6612_v11, %v3828_v36  ;;  %v7184_v36 = vld [vmem:[#allocation19_spill] sm:$0xff] }
 0x3ce   : > { %v3764_v56 = vadd.f32 %v3685_v13, %v6285_v60  ;;  %v3600_v23 = vpop.f32.mrf.mxu2  ;;  %v3110_v13 = vadd.f32 %v7185_v20, %v7184_v36  ;;  %v6676_v34 = vpop.f32.mrf.mxu3  ;;  %v7192_v36 = vld [vmem:[#allocation81_spill] sm:$0xff] }
 0x3cf   : > { %v3683_v25 = vadd.f32 %v3600_v23, %v3190_v61  ;;  %v3896_v62 = vmax.f32 %v3864_v15, 0.0  ;;  %v7186_v23 = vld [vmem:[#allocation16_spill] sm:$0xff] }
 0x3d1   : > { %v3793_v46 = vadd.f32 %v3761_v12, %v3683_v25  ;;  %4796 = vmatmul.msk.f32.gmra.mxu3 %vm552_vm1, %v3896_v62  ;;  %v3195_v25 = vadd.f32 %v6503_v54, %v7186_v23  ;;  %v7190_v54 = vld [vmem:[#allocation18_spill] sm:$0xff] }
 0x3d3   : > { %v3829_v3 = vmul.f32 %v6607_v7, %v3793_v46  ;;  %v3518_v8 = vpop.f32.mrf.mxu0 }
 0x3d4   : > { %v3688_v41 = vadd.f32 %v3518_v8, %v3108_v35  ;;  %v7188_v8 = vld [vmem:[#allocation22_spill] sm:$0xff] }
 0x3d5   : > { %v3865_v60 = vadd.f32 %v6612_v11, %v3829_v3 }
 0x3d6   : > { %v3765_v45 = vadd.f32 %v3688_v41, %v7182_v37  ;;  %4773 = vmatmul.msk.bf16.gmra.mxu0 %vm2556_vm3, %v7183_v58  ;;  %v3602_v12 = vpop.f32.mrf.mxu2  ;;  %v7189_v41 = vld [vmem:[#allocation24_spill] sm:$0xff]  ;;  %v6689_v37 = vpop.f32.mrf.mxu3 }
 0x3d7   : > { %v3897_v50 = vmax.f32 %v3865_v60, 0.0  ;;  %v3686_v52 = vadd.f32 %v3602_v12, %v3192_v19  ;;  %v3113_v1 = vadd.f32 %v7189_v41, %v7188_v8  ;;  %v3197_v12 = vadd.f32 %v6514_v48, %v7190_v54 }
 0x3d9   : > { %v3794_v57 = vadd.f32 %v3762_v51, %v3686_v52  ;;  %4797 = vmatmul.msk.f32.gmra.mxu3 %vm552_vm1, %v3897_v50  ;;  %v7187_v51 = vld [vmem:[#allocation75_spill] sm:$0xff]  ;;  %v7191_v52 = vld [vmem:[#allocation76_spill] sm:$0xff] }
 0x3db   : > { %v3830_v5 = vmul.f32 %v6607_v7, %v3794_v57  ;;  %v3520_v61 = vpop.f32.mrf.mxu0  ;;  %4789 = vmatmul.msk.bf16.gmra.mxu2 %vm2556_vm3, %v7183_v58 }
 0x3dc   : > { %v3691_v15 = vadd.f32 %v3520_v61, %v3110_v13  ;;  %v7193_v61 = vld [vmem:[#allocation26_spill] sm:$0xff] }
 0x3dd   : > { %v3866_v62 = vadd.f32 %v6612_v11, %v3830_v5 }
 0x3de   : > { %v3766_v46 = vadd.f32 %v3691_v15, %v7187_v51  ;;  %v3605_v59 = vpop.f32.mrf.mxu2  ;;  %v3115_v15 = vadd.f32 %v6394_v27, %v7193_v61 }
 0x3df   : > { %v3689_v49 = vadd.f32 %v3605_v59, %v3195_v25  ;;  %v3898_v35 = vmax.f32 %v3866_v62, 0.0  ;;  %v7194_v62 = vld [vmem:[#allocation20_spill] sm:$0xff] }
 0x3e0   : > { %v3200_v51 = vadd.f32 %v6527_v42, %v7194_v62  ;;  %v7197_v42 = vld [vmem:[#allocation23_spill] sm:$0xff] }
 0x3e1   : > { %v3795_v3 = vadd.f32 %v3763_v43, %v3689_v49  ;;  %4798 = vmatmul.msk.f32.gmra.mxu3 %vm552_vm1, %v3898_v35  ;;  %v6706_v49 = vpop.f32.mrf.mxu3 }
 0x3e3   : > { %v3831_v19 = vmul.f32 %v6607_v7, %v3795_v3  ;;  %v3523_v60 = vpop.f32.mrf.mxu0 }
 0x3e4   : > { %v3694_v58 = vadd.f32 %v3523_v60, %v3113_v1  ;;  %v7196_v1 = vld [vmem:[#allocation29_spill] sm:$0xff] }
 0x3e5   : > { %v3867_v50 = vadd.f32 %v6612_v11, %v3831_v19  ;;  %v3118_v19 = vadd.f32 %v6415_v14, %v7196_v1 }
 0x3e6   : > { %v3767_v57 = vadd.f32 %v3694_v58, %v7191_v52  ;;  %4774 = vmatmul.msk.bf16.gmra.mxu0 %vm2556_vm3, %v7192_v36  ;;  %v3607_v43 = vpop.f32.mrf.mxu2  ;;  %v7198_v52 = vld [vmem:[#allocation21_spill] sm:$0xff] }
 0x3e7   : > { %v3899_v20 = vmax.f32 %v3867_v50, 0.0  ;;  %v3692_v13 = vadd.f32 %v3607_v43, %v3197_v12  ;;  %v3202_v12 = vadd.f32 %v6540_v30, %v7197_v42 }
 0x3e9   : > { %v3796_v5 = vadd.f32 %v3764_v56, %v3692_v13  ;;  %4799 = vmatmul.msk.f32.gmra.mxu3 %vm552_vm1, %v3899_v20  ;;  %v7195_v56 = vld [vmem:[#allocation79_spill] sm:$0xff]  ;;  %v6719_v13 = vpop.f32.mrf.mxu3 }
 0x3eb   : > { %v3832_v23 = vmul.f32 %v6607_v7, %v3796_v5  ;;  %v3525_v25 = vpop.f32.mrf.mxu0  ;;  %4790 = vmatmul.msk.bf16.gmra.mxu2 %vm2556_vm3, %v7192_v36  ;;  %v7199_v5 = vld [vmem:[#allocation32_spill] sm:$0xff] }
 0x3ec   : > { %v3697_v48 = vadd.f32 %v3525_v25, %v3115_v15  ;;  %v3120_v61 = vadd.f32 %v6427_v55, %v7199_v5  ;;  %v7200_v25 = vld [vmem:[#allocation27_spill] sm:$0xff]  ;;  %v7202_v55 = vld [vmem:[#allocation34_spill] sm:$0xff]  ;;  %v7206_v5 = vld [vmem:[#allocation33_spill] sm:$0xff] }
 0x3ed   : > { %v3868_v59 = vadd.f32 %v6612_v11, %v3832_v23 }
 0x3ee   : > { %v3768_v35 = vadd.f32 %v3697_v48, %v7195_v56  ;;  %v3610_v3 = vpop.f32.mrf.mxu2  ;;  %v3205_v48 = vadd.f32 %v6547_v40, %v7200_v25  ;;  %v7203_v40 = vld [vmem:[#allocation30_spill] sm:$0xff] }
 0x3ef   : > { %v3900_v8 = vmax.f32 %v3868_v59, 0.0  ;;  %v3695_v41 = vadd.f32 %v3610_v3, %v3200_v51  ;;  %v7201_v51 = vld [vmem:[#allocation25_spill] sm:$0xff] }
 0x3f1   : > { %v3797_v27 = vadd.f32 %v3765_v45, %v3695_v41  ;;  %4800 = vmatmul.msk.f32.gmra.mxu3 %vm552_vm1, %v3900_v8  ;;  %v3123_v41 = vadd.f32 %v6441_v26, %v7202_v55 }
 0x3f3   : > { %v3833_v60 = vmul.f32 %v6607_v7, %v3797_v27  ;;  %v3528_v58 = vpop.f32.mrf.mxu0  ;;  %v6734_v27 = vpop.f32.mrf.mxu3 }
 0x3f4   : > { %v3700_v54 = vadd.f32 %v3528_v58, %v3118_v19 }
 0x3f5   : > { %v3869_v50 = vadd.f32 %v6612_v11, %v3833_v60  ;;  %v3207_v60 = vadd.f32 %v6563_v47, %v7203_v40 }
 0x3f6   : > { %v3769_v36 = vadd.f32 %v3700_v54, %v7198_v52  ;;  %4775 = vmatmul.msk.bf16.gmra.mxu0 %vm2556_vm3, %v6403_v21  ;;  %v3612_v45 = vpop.f32.mrf.mxu2  ;;  %v7204_v54 = vld [vmem:[#allocation28_spill] sm:$0xff] }
 0x3f7   : > { %v3901_v43 = vmax.f32 %v3869_v50, 0.0  ;;  %v3698_v20 = vadd.f32 %v3612_v45, %v3202_v12  ;;  %v7205_v52 = vld [vmem:[#allocation36_spill] sm:$0xff] }
 0x3f8   : > { %v3125_v45 = vadd.f32 %v6446_v32, %v7205_v52 }
 0x3f9   : > { %v3798_v14 = vadd.f32 %v3766_v46, %v3698_v20  ;;  %4801 = vmatmul.msk.f32.gmra.mxu3 %vm552_vm1, %v3901_v43 }
 0x3fb   : > { %v3834_v30 = vmul.f32 %v6607_v7, %v3798_v14  ;;  %v3530_v15 = vpop.f32.mrf.mxu0  ;;  %4791 = vmatmul.msk.bf16.gmra.mxu2 %vm2556_vm3, %v6403_v21  ;;  %v6749_v47 = vpop.f32.mrf.mxu3 }
 0x3fc   : > { %v3703_v23 = vadd.f32 %v3530_v15, %v3120_v61  ;;  %v3210_v61 = vadd.f32 %v6572_v38, %v7206_v5 }
 0x3fd   : > { %v3870_v62 = vadd.f32 %v6612_v11, %v3834_v30 }
 0x3fe   : > { %v3770_v59 = vadd.f32 %v3703_v23, %v7201_v51  ;;  %v3615_v46 = vpop.f32.mrf.mxu2 }
 0x3ff   : > { %v3902_v56 = vmax.f32 %v3870_v62, 0.0  ;;  %v3701_v3 = vadd.f32 %v3615_v46, %v3205_v48  ;;  %v7207_v48 = vld [vmem:[#allocation38_spill] sm:$0xff] }
 0x400   : > { %v3128_v62 = vadd.f32 %v6458_v44, %v7207_v48  ;;  %v7209_v44 = vld [vmem:[#allocation40_spill] sm:$0xff] }
 0x401   : > { %v3799_v8 = vadd.f32 %v3767_v57, %v3701_v3  ;;  %4802 = vmatmul.msk.f32.gmra.mxu3 %vm552_vm1, %v3902_v56  ;;  %v7208_v56 = vld [vmem:[#allocation35_spill] sm:$0xff] }
 0x402   : > { %v3212_v38 = vadd.f32 %v6578_v17, %v7208_v56  ;;  %v7210_v17 = vld [vmem:[#allocation37_spill] sm:$0xff] }
 0x403   : > { %v3835_v21 = vmul.f32 %v6607_v7, %v3799_v8  ;;  %v3533_v1 = vpop.f32.mrf.mxu0  ;;  %v6762_v8 = vpop.f32.mrf.mxu3 }
 0x404   : > { %v3706_v19 = vadd.f32 %v3533_v1, %v3123_v41  ;;  %v3130_v1 = vadd.f32 %v6463_v39, %v7209_v44  ;;  %v7211_v39 = vld [vmem:[#allocation42_spill] sm:$0xff] }
 0x405   : > { %v3871_v58 = vadd.f32 %v6612_v11, %v3835_v21  ;;  %v3133_v52 = vadd.f32 %v6472_v6, %v7211_v39 }
 0x406   : > { %v3771_v42 = vadd.f32 %v3706_v19, %v7204_v54  ;;  %4776 = vmatmul.msk.bf16.gmra.mxu0 %vm2556_vm3, %v6433_v4  ;;  %v3617_v57 = vpop.f32.mrf.mxu2 }
 0x407   : > { %v3903_v12 = vmax.f32 %v3871_v58, 0.0  ;;  %v3704_v50 = vadd.f32 %v3617_v57, %v3207_v60  ;;  %v3215_v58 = vadd.f32 %v6586_v22, %v7210_v17  ;;  %v7212_v22 = vld [vmem:[#allocation39_spill] sm:$0xff]  ;;  %v7217_v17 = vld [vmem:[#allocation48_spill] sm:$0xff] }
 0x409   : > { %v3800_v26 = vadd.f32 %v3768_v35, %v3704_v50  ;;  %4803 = vmatmul.msk.f32.gmra.mxu3 %vm552_vm1, %v3903_v12 }
 0x40b   : > { %v3836_v43 = vmul.f32 %v6607_v7, %v3800_v26  ;;  %v3535_v20 = vpop.f32.mrf.mxu0  ;;  %4792 = vmatmul.msk.bf16.gmra.mxu2 %vm2556_vm3, %v6433_v4  ;;  %vm4146_vm3 = vcmask 64512  }
 0x40c   : > { %v3709_v14 = vadd.f32 %v3535_v20, %v3125_v45 }
 0x40d   : > { %v3872_v30 = vadd.f32 %v6612_v11, %v3836_v43 }
 0x40e   : > { %v3772_v35 = vadd.f32 %v3709_v14, %v6421_v24  ;;  %v3620_v15 = vpop.f32.mrf.mxu2  ;;  %v3217_v14 = vadd.f32 %v6593_v33, %v7212_v22  ;;  %v7214_v33 = vld [vmem:[#allocation41_spill] sm:$0xff] }
 0x40f   : > { %v3904_v23 = vmax.f32 %v3872_v30, 0.0  ;;  %v3707_v25 = vadd.f32 %v3620_v15, %v3210_v61 }
 0x411   : > { %v3801_v32 = vadd.f32 %v3769_v36, %v3707_v25  ;;  %4804 = vmatmul.msk.f32.gmra.mxu3 %vm552_vm1, %v3904_v23  ;;  %v7213_v23 = vld [vmem:[#allocation44_spill] sm:$0xff] }
 0x412   : > { %v3135_v6 = vadd.f32 %v6477_v10, %v7213_v23  ;;  %v7215_v10 = vld [vmem:[#allocation46_spill] sm:$0xff] }
 0x413   : > { %v3837_v4 = vmul.f32 %v6607_v7, %v3801_v32  ;;  %v3538_v51 = vpop.f32.mrf.mxu0 }
 0x414   : > { %v3712_v46 = vadd.f32 %v3538_v51, %v3128_v62 }
 0x415   : > { %v3873_v3 = vadd.f32 %v6612_v11, %v3837_v4  ;;  %v3220_v4 = vadd.f32 %v6616_v2, %v7214_v33  ;;  %v7224_v33 = vld [vmem:[#allocation82_spill] sm:$0xff] }
 0x416   : > { %v3773_v24 = vadd.f32 %v3712_v46, %v6431_v18  ;;  %v3622_v55 = vpop.f32.mrf.mxu2 }
 0x417   : > { %v3905_v36 = vmax.f32 %v3873_v3, 0.0  ;;  %v3710_v41 = vadd.f32 %v3622_v55, %v3212_v38  ;;  %v3138_v3 = vadd.f32 %v6489_v0, %v7215_v10  ;;  %v6808_v0 = vld [vmem:[%s7026_s10] ss:$0 sm:$0xff] }
 0x419   : > { %v3802_v21 = vadd.f32 %v3770_v59, %v3710_v41  ;;  %4805 = vmatmul.msk.f32.gmra.mxu3 %vm552_vm1, %v3905_v36  ;;  %v6773_v59 = vpop.f32.mrf.mxu3 }
 0x41b   : > { %v3838_v19 = vmul.f32 %v6607_v7, %v3802_v21  ;;  %v3540_v40 = vpop.f32.mrf.mxu0  ;;  %v7216_v21 = vld [vmem:[#allocation43_spill] sm:$0xff] }
 0x41c   : > { %v3715_v60 = vadd.f32 %v3540_v40, %v3130_v1  ;;  %v3222_v44 = vadd.f32 %v6633_v16, %v7216_v21 }
 0x41d   : > { %v3874_v54 = vadd.f32 %v6612_v11, %v3838_v19 }
 0x41e   : > { %v3774_v18 = vadd.f32 %v3715_v60, %v6444_v28  ;;  %v3625_v57 = vpop.f32.mrf.mxu2 }
 0x41f   : > { %v3906_v12 = vmax.f32 %v3874_v54, 0.0  ;;  %v3713_v50 = vadd.f32 %v3625_v57, %v3215_v58  ;;  %v7218_v58 = vld [vmem:[#allocation84_spill] sm:$0xff] }
 0x420   : > { %v3140_v54 = vadd.f32 %v7218_v58, %v7217_v17  ;;  %v7229_v58 = vld [vmem:[#allocation56_spill] sm:$0xff] }
 0x421   : > { %v3803_v26 = vadd.f32 %v3771_v42, %v3713_v50  ;;  %4806 = vmatmul.msk.f32.gmra.mxu3 %vm552_vm1, %v3906_v12  ;;  %v6786_v25 = vpop.f32.mrf.mxu3 }
 0x423   : > { %v3839_v45 = vmul.f32 %v6607_v7, %v3803_v26  ;;  %v3543_v43 = vpop.f32.mrf.mxu0 }
 0x424   : > { %v3718_v20 = vadd.f32 %v3543_v43, %v3133_v52  ;;  %v7220_v52 = vld [vmem:[#allocation31_spill] sm:$0xff] }
 0x425   : > { %v3875_v28 = vadd.f32 %v6612_v11, %v3839_v45 }
 0x426   : > { %v3775_v5 = vadd.f32 %v3718_v20, %v6451_v53  ;;  %v3627_v61 = vpop.f32.mrf.mxu2 }
 0x427   : > { %v3907_v30 = vmax.f32 %v3875_v28, 0.0  ;;  %v3716_v15 = vadd.f32 %v3627_v61, %v3217_v14  ;;  %v7221_v28 = vld [vmem:[#allocation50_spill] sm:$0xff] }
 0x428   : > { %v7222_v61 = vld [vmem:[#allocation86_spill] sm:$0xff] }
 0x429   : > { %v3804_v42 = vadd.f32 %v3772_v35, %v3716_v15  ;;  %4807 = vmatmul.msk.f32.gmra.mxu3 %vm552_vm1, %v3907_v30  ;;  %v6797_v41 = vpop.f32.mrf.mxu3  ;;  %v3143_v30 = vadd.f32 %v7222_v61, %v7221_v28  ;;  %v7233_v28 = vld [vmem:[#allocation58_spill] sm:$0xff] }
 0x42a   : > { %v7234_v61 = vld [vmem:[#allocation90_spill] sm:$0xff] }
 0x42b   : > { %v3840_v32 = vmul.f32 %v6607_v7, %v3804_v42  ;;  %v3545_v48 = vpop.f32.mrf.mxu0 }
 0x42c   : > { %v3721_v62 = vadd.f32 %v3545_v48, %v3135_v6  ;;  %v7223_v6 = vld [vmem:[#allocation47_spill] sm:$0xff] }
 0x42d   : > { %v3876_v53 = vadd.f32 %v6612_v11, %v3840_v32  ;;  %v3227_v32 = vadd.f32 %v6661_v63, %v7223_v6 }
 0x42e   : > { %v3776_v51 = vadd.f32 %v3721_v62, %v6461_v29  ;;  %v3630_v46 = vpop.f32.mrf.mxu2 }
 0x42f   : > { %v3908_v35 = vmax.f32 %v3876_v53, 0.0  ;;  %v3719_v56 = vadd.f32 %v3630_v46, %v3220_v4 }
 0x431   : > { %v3805_v38 = vadd.f32 %v3773_v24, %v3719_v56  ;;  %4808 = vmatmul.msk.f32.gmra.mxu3 %vm552_vm1, %v3908_v35  ;;  %v7225_v56 = vld [vmem:[#allocation52_spill] sm:$0xff] }
 0x433   : > { %v3841_v55 = vmul.f32 %v6607_v7, %v3805_v38  ;;  %v3548_v36 = vpop.f32.mrf.mxu0  ;;  %v7226_v38 = vld [vmem:[#allocation88_spill] sm:$0xff] }
 0x434   : > { %v3724_v2 = vadd.f32 %v3548_v36, %v3138_v3  ;;  %v3145_v10 = vadd.f32 %v7226_v38, %v7225_v56  ;;  %v7238_v56 = vld [vmem:[#allocation92_spill] sm:$0xff] }
 0x435   : > { %v3877_v29 = vadd.f32 %v6612_v11, %v3841_v55 }
 0x436   : > { %v3777_v1 = vadd.f32 %v3724_v2, %v6468_v9  ;;  %v3632_v19 = vpop.f32.mrf.mxu2  ;;  %v7227_v2 = vld [vmem:[#allocation49_spill] sm:$0xff] }
 0x437   : > { %v3909_v24 = vmax.f32 %v3877_v29, 0.0  ;;  %v3722_v40 = vadd.f32 %v3632_v19, %v3222_v44  ;;  %v3230_v21 = vadd.f32 %v6676_v34, %v7227_v2  ;;  %v7228_v19 = vld [vmem:[#allocation83_spill] sm:$0xff] }
 0x439   : > { %v3806_v60 = vadd.f32 %v3774_v18, %v3722_v40  ;;  %4809 = vmatmul.msk.f32.gmra.mxu3 %vm552_vm1, %v3909_v24  ;;  %v7219_v18 = vld [vmem:[#allocation45_spill] sm:$0xff] }
 0x43a   : > { %v3225_v50 = vadd.f32 %v6646_v31, %v7219_v18  ;;  %v7231_v18 = vld [vmem:[#allocation51_spill] sm:$0xff] }
 0x43b   : > { %v3842_v16 = vmul.f32 %v6607_v7, %v3806_v60  ;;  %v3550_v57 = vpop.f32.mrf.mxu0 }
 0x43c   : > { %v3727_v12 = vadd.f32 %v3550_v57, %v3140_v54  ;;  %v4050_v9 = vpop.f32.mrf.mxu3  ;;  %v7230_v54 = vld [vmem:[#allocation55_spill] sm:$0xff] }
 0x43d   : > { %v3878_v26 = vadd.f32 %v6612_v11, %v3842_v16  ;;  %v4051_v39 = vadd.f32 %v6808_v0, %v4050_v9  ;;  %v3148_v16 = vadd.f32 %v7230_v54, %v7229_v58 }
 0x43e   : > { %v3778_v45 = vadd.f32 %v3727_v12, %v7220_v52  ;;  %v3635_v43 = vpop.f32.mrf.mxu2  ;;  %v7232_v52 = vld [vmem:[#allocation85_spill] sm:$0xff] }
 0x43f   : > { %v3910_v20 = vmax.f32 %v3878_v26, 0.0  ;;  %4147 = vst.msk [vmem:[%s6816_s16] sm:$0xff] %vm4146_vm3, %v4051_v39  ;;  %v3725_v22 = vadd.f32 %v3635_v43, %v3225_v50  ;;  %v3232_v50 = vadd.f32 %v6689_v37, %v7231_v18 }
 0x441   : > { %v3807_v14 = vadd.f32 %v3775_v5, %v3725_v22  ;;  %4810 = vmatmul.msk.f32.gmra.mxu3 %vm552_vm1, %v3910_v20 }
 0x443   : > { %v3843_v31 = vmul.f32 %v6607_v7, %v3807_v14  ;;  %v3553_v15 = vpop.f32.mrf.mxu0 }
 0x444   : > { %v3730_v42 = vadd.f32 %v3553_v15, %v3143_v30  ;;  %v4053_v23 = vpop.f32.mrf.mxu3  ;;  %v3150_v30 = vadd.f32 %v7234_v61, %v7233_v28 }
 0x445   : > { %v3879_v48 = vadd.f32 %v6612_v11, %v3843_v31  ;;  %v4054_v62 = vadd.f32 %v6808_v0, %v4053_v23  ;;  %v7235_v23 = vld [vmem:[#allocation53_spill] sm:$0xff] }
 0x446   : > { %v3779_v4 = vadd.f32 %v3730_v42, %v7224_v33  ;;  %v3637_v5 = vpop.f32.mrf.mxu2  ;;  %v3235_v6 = vadd.f32 %v6706_v49, %v7235_v23  ;;  %v7248_v23 = vld [vmem:[#allocation91_spill] sm:$0xff] }
 0x447   : > { %v3911_v53 = vmax.f32 %v3879_v48, 0.0  ;;  %4148 = vst.msk [vmem:[%s6816_s16 + $0x8] sm:$0xff] %vm4146_vm3, %v4054_v62  ;;  %v3728_v46 = vadd.f32 %v3637_v5, %v3227_v32  ;;  %v7236_v62 = vld [vmem:[#allocation87_spill] sm:$0xff] }
 0x449   : > { %v3808_v35 = vadd.f32 %v3776_v51, %v3728_v46  ;;  %4811 = vmatmul.msk.f32.gmra.mxu3 %vm552_vm1, %v3911_v53 }
 0x44b   : > { %v3844_v63 = vmul.f32 %v6607_v7, %v3808_v35  ;;  %v3555_v3 = vpop.f32.mrf.mxu0  ;;  %v7237_v35 = vld [vmem:[#allocation60_spill] sm:$0xff] }
 0x44c   : > { %v3733_v55 = vadd.f32 %v3555_v3, %v3145_v10  ;;  %v4056_v36 = vpop.f32.mrf.mxu3  ;;  %v3153_v38 = vadd.f32 %v7238_v56, %v7237_v35 }
 0x44d   : > { %v3880_v44 = vadd.f32 %v6612_v11, %v3844_v63  ;;  %v4057_v29 = vadd.f32 %v6808_v0, %v4056_v36 }
 0x44e   : > { %v3780_v24 = vadd.f32 %v3733_v55, %v7228_v19  ;;  %v3640_v51 = vpop.f32.mrf.mxu2  ;;  %v7239_v55 = vld [vmem:[#allocation57_spill] sm:$0xff] }
 0x44f   : > { %v3912_v40 = vmax.f32 %v3880_v44, 0.0  ;;  %4149 = vst.msk [vmem:[%s6816_s16 + $0x10] sm:$0xff] %vm4146_vm3, %v4057_v29  ;;  %v3731_v60 = vadd.f32 %v3640_v51, %v3230_v21  ;;  %v3237_v36 = vadd.f32 %v6719_v13, %v7239_v55  ;;  %v7240_v44 = vld [vmem:[#allocation54_spill] sm:$0xff] }
 0x451   : > { %v3809_v17 = vadd.f32 %v3777_v1, %v3731_v60  ;;  %4812 = vmatmul.msk.f32.gmra.mxu3 %vm552_vm1, %v3912_v40  ;;  %v7241_v60 = vld [vmem:[#allocation62_spill] sm:$0xff] }
 0x453   : > { %v3845_v34 = vmul.f32 %v6607_v7, %v3809_v17  ;;  %v3558_v57 = vpop.f32.mrf.mxu0  ;;  %v7242_v17 = vld [vmem:[#allocation94_spill] sm:$0xff] }
 0x454   : > { %v3736_v12 = vadd.f32 %v3558_v57, %v3148_v16  ;;  %v4059_v9 = vpop.f32.mrf.mxu3  ;;  %v3155_v58 = vadd.f32 %v7242_v17, %v7241_v60  ;;  %v7243_v57 = vld [vmem:[#allocation59_spill] sm:$0xff]  ;;  %v7255_v17 = vld [vmem:[#allocation66_spill] sm:$0xff] }
 0x455   : > { %v3881_v26 = vadd.f32 %v6612_v11, %v3845_v34  ;;  %v4060_v39 = vadd.f32 %v6808_v0, %v4059_v9 }
 0x456   : > { %v3781_v43 = vadd.f32 %v3736_v12, %v7232_v52  ;;  %v3642_v1 = vpop.f32.mrf.mxu2  ;;  %v3240_v12 = vadd.f32 %v6734_v27, %v7243_v57 }
 0x457   : > { %v3913_v20 = vmax.f32 %v3881_v26, 0.0  ;;  %4150 = vst.msk [vmem:[%s6816_s16 + $0x18] sm:$0xff] %vm4146_vm3, %v4060_v39  ;;  %v3734_v22 = vadd.f32 %v3642_v1, %v3232_v50  ;;  %v7244_v50 = vld [vmem:[#allocation89_spill] sm:$0xff] }
 0x459   : > { %v3810_v14 = vadd.f32 %v3778_v45, %v3734_v22  ;;  %4813 = vmatmul.msk.f32.gmra.mxu3 %vm552_vm1, %v3913_v20  ;;  %v7245_v20 = vld [vmem:[#allocation65_spill] sm:$0xff]  ;;  %v7246_v22 = vld [vmem:[#allocation95_spill] sm:$0xff] }
 0x45b   : > { %v3846_v37 = vmul.f32 %v6607_v7, %v3810_v14  ;;  %v3560_v31 = vpop.f32.mrf.mxu0  ;;  %v3158_v14 = vadd.f32 %v7246_v22, %v7245_v20  ;;  %v7259_v20 = vld [vmem:[#allocation69_spill] sm:$0xff] }
 0x45c   : > { %v3739_v15 = vadd.f32 %v3560_v31, %v3150_v30  ;;  %v4062_v42 = vpop.f32.mrf.mxu3  ;;  %v3250_v22 = vadd.f32 %v6786_v25, %v7259_v20 }
 0x45d   : > { %v3882_v32 = vadd.f32 %v6612_v11, %v3846_v37  ;;  %v4063_v48 = vadd.f32 %v6808_v0, %v4062_v42  ;;  %v7247_v37 = vld [vmem:[#allocation61_spill] sm:$0xff] }
 0x45e   : > { %v3782_v33 = vadd.f32 %v3739_v15, %v7236_v62  ;;  %v3645_v45 = vpop.f32.mrf.mxu2  ;;  %v3242_v31 = vadd.f32 %v6749_v47, %v7247_v37 }
 0x45f   : > { %v3914_v5 = vmax.f32 %v3882_v32, 0.0  ;;  %4151 = vst.msk [vmem:[%s6816_s16 + $0x20] sm:$0xff] %vm4146_vm3, %v4063_v48  ;;  %v3737_v53 = vadd.f32 %v3645_v45, %v3235_v6  ;;  %v7249_v45 = vld [vmem:[#allocation68_spill] sm:$0xff] }
 0x461   : > { %v3811_v46 = vadd.f32 %v3779_v4, %v3737_v53  ;;  %4814 = vmatmul.msk.f32.gmra.mxu3 %vm552_vm1, %v3914_v5  ;;  %v7250_v5 = vld [vmem:[#allocation96_spill] sm:$0xff] }
 0x462   : > { %v3160_v53 = vadd.f32 %v7250_v5, %v7249_v45 }
 0x463   : > { %v3847_v49 = vmul.f32 %v6607_v7, %v3811_v46  ;;  %v3563_v10 = vpop.f32.mrf.mxu0 }
 0x464   : > { %v3742_v63 = vadd.f32 %v3563_v10, %v3153_v38  ;;  %v4065_v3 = vpop.f32.mrf.mxu3  ;;  %v7251_v38 = vld [vmem:[#allocation63_spill] sm:$0xff] }
 0x465   : > { %v3883_v2 = vadd.f32 %v6612_v11, %v3847_v49  ;;  %v4066_v21 = vadd.f32 %v6808_v0, %v4065_v3  ;;  %v3245_v49 = vadd.f32 %v6762_v8, %v7251_v38  ;;  %v7252_v3 = vld [vmem:[#allocation93_spill] sm:$0xff] }
 0x466   : > { %v3783_v29 = vadd.f32 %v3742_v63, %v7240_v44  ;;  %v3647_v4 = vpop.f32.mrf.mxu2  ;;  %v7253_v44 = vld [vmem:[#allocation71_spill] sm:$0xff] }
 0x467   : > { %v3915_v19 = vmax.f32 %v3883_v2, 0.0  ;;  %4152 = vst.msk [vmem:[%s6816_s16 + $0x28] sm:$0xff] %vm4146_vm3, %v4066_v21  ;;  %v3740_v51 = vadd.f32 %v3647_v4, %v3237_v36  ;;  %v7254_v4 = vld [vmem:[#allocation70_spill] sm:$0xff] }
 0x469   : > { %v3812_v40 = vadd.f32 %v3780_v24, %v3740_v51  ;;  %4815 = vmatmul.msk.f32.gmra.mxu3 %vm552_vm1, %v3915_v19  ;;  %v3163_v19 = vadd.f32 %v7254_v4, %v7253_v44 }
 0x46b   : > { %v3848_v13 = vmul.f32 %v6607_v7, %v3812_v40  ;;  %v3565_v54 = vpop.f32.mrf.mxu0 }
 0x46c   : > { %v3745_v16 = vadd.f32 %v3565_v54, %v3155_v58  ;;  %v4068_v34 = vpop.f32.mrf.mxu3  ;;  %v3247_v58 = vadd.f32 %v6773_v59, %v7255_v17 }
 0x46d   : > { %v3884_v9 = vadd.f32 %v6612_v11, %v3848_v13  ;;  %v4069_v18 = vadd.f32 %v6808_v0, %v4068_v34 }
 0x46e   : > { %v3784_v26 = vadd.f32 %v3745_v16, %v7244_v50  ;;  %v3650_v24 = vpop.f32.mrf.mxu2  ;;  %v7256_v16 = vld [vmem:[#allocation64_spill] sm:$0xff]  ;;  %v7258_v50 = vld [vmem:[#allocation97_spill] sm:$0xff] }
 0x46f   : > { %v3916_v39 = vmax.f32 %v3884_v9, 0.0  ;;  %4153 = vst.msk [vmem:[%s6816_s16 + $0x30] sm:$0xff] %vm4146_vm3, %v4069_v18  ;;  %v3743_v52 = vadd.f32 %v3650_v24, %v3240_v12  ;;  %v7257_v18 = vld [vmem:[#allocation73_spill] sm:$0xff] }
 0x470   : > { %v3165_v24 = vadd.f32 %v7258_v50, %v7257_v18 }
 0x471   : > { %v3813_v1 = vadd.f32 %v3781_v43, %v3743_v52  ;;  %4816 = vmatmul.msk.f32.gmra.mxu3 %vm552_vm1, %v3916_v39 }
 0x473   : > { %v3849_v27 = vmul.f32 %v6607_v7, %v3813_v1  ;;  %v3568_v28 = vpop.f32.mrf.mxu0 }
 0x474   : > { %v3748_v61 = vadd.f32 %v3568_v28, %v3158_v14  ;;  %v4071_v30 = vpop.f32.mrf.mxu3  ;;  %v7260_v28 = vld [vmem:[#allocation67_spill] sm:$0xff] }
 0x475   : > { %v3885_v15 = vadd.f32 %v6612_v11, %v3849_v27  ;;  %v4072_v42 = vadd.f32 %v6808_v0, %v4071_v30 }
 0x476   : > { %v3785_v6 = vadd.f32 %v3748_v61, %v7248_v23  ;;  %v3652_v43 = vpop.f32.mrf.mxu2  ;;  %v7261_v23 = vld [vmem:[#allocation72_spill] sm:$0xff] }
 0x477   : > { %v3917_v32 = vmax.f32 %v3885_v15, 0.0  ;;  %4154 = vst.msk [vmem:[%s6816_s16 + $0x38] sm:$0xff] %vm4146_vm3, %v4072_v42  ;;  %v3746_v48 = vadd.f32 %v3652_v43, %v3242_v31  ;;  %v3252_v25 = vadd.f32 %v6797_v41, %v7261_v23 }
 0x479   : > { %v3814_v62 = vadd.f32 %v3782_v33, %v3746_v48  ;;  %4817 = vmatmul.msk.f32.gmra.mxu3 %vm552_vm1, %v3917_v32 }
 0x47b   : > { %v3850_v47 = vmul.f32 %v6607_v7, %v3814_v62  ;;  %v3570_v46 = vpop.f32.mrf.mxu0 }
 0x47c   : > { %v3751_v35 = vadd.f32 %v3570_v46, %v3160_v53  ;;  %v4074_v56 = vpop.f32.mrf.mxu3 }
 0x47d   : > { %v3886_v10 = vadd.f32 %v6612_v11, %v3850_v47  ;;  %v4075_v63 = vadd.f32 %v6808_v0, %v4074_v56 }
 0x47e   : > { %v3786_v55 = vadd.f32 %v3751_v35, %v7252_v3  ;;  %v3655_v33 = vpop.f32.mrf.mxu2 }
 0x47f   : > { %v3918_v36 = vmax.f32 %v3886_v10, 0.0  ;;  %4155 = vst.msk [vmem:[%s6816_s16 + $0x40] sm:$0xff] %vm4146_vm3, %v4075_v63  ;;  %v3749_v2 = vadd.f32 %v3655_v33, %v3245_v49 }
 0x481   : > { %v3815_v21 = vadd.f32 %v3783_v29, %v3749_v2  ;;  %4818 = vmatmul.msk.f32.gmra.mxu3 %vm552_vm1, %v3918_v36 }
 0x483   : > { %v3851_v8 = vmul.f32 %v6607_v7, %v3815_v21  ;;  %v3573_v51 = vpop.f32.mrf.mxu0 }
 0x484   : > { %v3753_v40 = vadd.f32 %v3573_v51, %v3163_v19  ;;  %v4077_v60 = vpop.f32.mrf.mxu3 }
 0x485   : > { %v3887_v13 = vadd.f32 %v6612_v11, %v3851_v8  ;;  %v4078_v54 = vadd.f32 %v6808_v0, %v4077_v60 }
 0x486   : > { %v3787_v34 = vadd.f32 %v3753_v40, %v7256_v16  ;;  %v3657_v29 = vpop.f32.mrf.mxu2 }
 0x487   : > { %v3919_v57 = vmax.f32 %v3887_v13, 0.0  ;;  %4156 = vst.msk [vmem:[%s6816_s16 + $0x48] sm:$0xff] %vm4146_vm3, %v4078_v54  ;;  %v3752_v12 = vadd.f32 %v3657_v29, %v3247_v58 }
 0x488   : > { %v3855_v46 = vmul.f32 %v6607_v7, %v3787_v34 }
 0x489   : > { %v3816_v9 = vadd.f32 %v3784_v26, %v3752_v12  ;;  %4819 = vmatmul.msk.f32.gmra.mxu3 %vm552_vm1, %v3919_v57 }
 0x48a   : > { %v3891_v56 = vadd.f32 %v6612_v11, %v3855_v46 }
 0x48b   : > { %v3852_v59 = vmul.f32 %v6607_v7, %v3816_v9  ;;  %v3575_v39 = vpop.f32.mrf.mxu0 }
 0x48c   : > { %v3755_v52 = vadd.f32 %v3575_v39, %v3165_v24  ;;  %v4080_v1 = vpop.f32.mrf.mxu3  ;;  %v3923_v10 = vmax.f32 %v3891_v56, 0.0 }
 0x48d   : > { %v3888_v14 = vadd.f32 %v6612_v11, %v3852_v59  ;;  %v4081_v27 = vadd.f32 %v6808_v0, %v4080_v1 }
 0x48e   : > { %v3788_v26 = vadd.f32 %v3755_v52, %v7260_v28  ;;  %v3660_v61 = vpop.f32.mrf.mxu2 }
 0x48f   : > { %v3920_v30 = vmax.f32 %v3888_v14, 0.0  ;;  %4157 = vst.msk [vmem:[%s6816_s16 + $0x50] sm:$0xff] %vm4146_vm3, %v4081_v27  ;;  %v3754_v37 = vadd.f32 %v3660_v61, %v3250_v22 }
 0x490   : > { %v3856_v63 = vmul.f32 %v6607_v7, %v3788_v26 }
 0x491   : > { %v3817_v31 = vadd.f32 %v3785_v6, %v3754_v37  ;;  %4820 = vmatmul.msk.f32.gmra.mxu3 %vm552_vm1, %v3920_v30 }
 0x492   : > { %v3892_v3 = vadd.f32 %v6612_v11, %v3856_v63 }
 0x493   : > { %v3853_v15 = vmul.f32 %v6607_v7, %v3817_v31 }
 0x494   : > { %v4083_v42 = vpop.f32.mrf.mxu3  ;;  %v3924_v36 = vmax.f32 %v3892_v3, 0.0 }
 0x495   : > { %v3889_v43 = vadd.f32 %v6612_v11, %v3853_v15  ;;  %v4084_v32 = vadd.f32 %v6808_v0, %v4083_v42 }
 0x496   : > { %v3662_v48 = vpop.f32.mrf.mxu2 }
 0x497   : > { %v3921_v62 = vmax.f32 %v3889_v43, 0.0  ;;  %4158 = vst.msk [vmem:[%s6816_s16 + $0x58] sm:$0xff] %vm4146_vm3, %v4084_v32  ;;  %v3756_v45 = vadd.f32 %v3662_v48, %v3252_v25 }
 0x499   : > { %v3818_v6 = vadd.f32 %v3786_v55, %v3756_v45  ;;  %4821 = vmatmul.msk.f32.gmra.mxu3 %vm552_vm1, %v3921_v62 }
 0x49b   : > { %v3854_v5 = vmul.f32 %v6607_v7, %v3818_v6 }
 0x49c   : > { %v4086_v53 = vpop.f32.mrf.mxu3 }
 0x49d   : > { %v3890_v47 = vadd.f32 %v6612_v11, %v3854_v5  ;;  %v4087_v41 = vadd.f32 %v6808_v0, %v4086_v53 }
 0x49f   : > { %v3922_v35 = vmax.f32 %v3890_v47, 0.0  ;;  %4159 = vst.msk [vmem:[%s6816_s16 + $0x60] sm:$0xff] %vm4146_vm3, %v4087_v41 }
 0x4a1   : > { %4822 = vmatmul.msk.f32.gmra.mxu3 %vm552_vm1, %v3922_v35 }
 0x4a4   : > { %v4089_v38 = vpop.f32.mrf.mxu3 }
 0x4a5   : > { %v4090_v49 = vadd.f32 %v6808_v0, %v4089_v38 }
 0x4a7   : > { %4160 = vst.msk [vmem:[%s6816_s16 + $0x68] sm:$0xff] %vm4146_vm3, %v4090_v49 }
 0x4a9   : > { %4823 = vmatmul.msk.f32.gmra.mxu3 %vm552_vm1, %v3923_v10 }
 0x4ac   : > { %v4092_v55 = vpop.f32.mrf.mxu3 }
 0x4ad   : > { %v4093_v33 = vadd.f32 %v6808_v0, %v4092_v55 }
 0x4af   : > { %4161 = vst.msk [vmem:[%s6816_s16 + $0x70] sm:$0xff] %vm4146_vm3, %v4093_v33 }
 0x4b1   : > { %4824 = vmatmul.msk.f32.gmra.mxu3 %vm552_vm1, %v3924_v36 }
 0x4b4   : > { %v4095_v2 = vpop.f32.mrf.mxu3 }
 0x4b5   : > { %v4096_v7 = vadd.f32 %v6808_v0, %v4095_v2 }
 0x4b7   : > { %4162 = vst.msk [vmem:[%s6816_s16 + $0x78] sm:$0xff] %vm4146_vm3, %v4096_v7 }
 0x4bc   : > { %v4098_v21 = vpop.f32.mrf.mxu3 }
 0x4bd   : > { %v4099_v44 = vadd.f32 %v6808_v0, %v4098_v21 }
 0x4bf   : > { %4163 = vst.msk [vmem:[%s6816_s16 + $0x80] sm:$0xff] %vm4146_vm3, %v4099_v44 }
 0x4c4   : > { %v4101_v11 = vpop.f32.mrf.mxu3 }
 0x4c5   : > { %v4102_v4 = vadd.f32 %v6808_v0, %v4101_v11 }
 0x4c7   : > { %4164 = vst.msk [vmem:[%s6816_s16 + $0x88] sm:$0xff] %vm4146_vm3, %v4102_v4 }
 0x4cc   : > { %v4104_v19 = vpop.f32.mrf.mxu3 }
 0x4cd   : > { %v4105_v8 = vadd.f32 %v6808_v0, %v4104_v19 }
 0x4cf   : > { %4165 = vst.msk [vmem:[%s6816_s16 + $0x90] sm:$0xff] %vm4146_vm3, %v4105_v8 }
 0x4d4   : > { %v4107_v51 = vpop.f32.mrf.mxu3 }
 0x4d5   : > { %v4108_v40 = vadd.f32 %v6808_v0, %v4107_v51 }
 0x4d7   : > { %4166 = vst.msk [vmem:[%s6816_s16 + $0x98] sm:$0xff] %vm4146_vm3, %v4108_v40 }
 0x4dc   : > { %v4110_v60 = vpop.f32.mrf.mxu3 }
 0x4dd   : > { %v4111_v17 = vadd.f32 %v6808_v0, %v4110_v60 }
 0x4df   : > { %4167 = vst.msk [vmem:[%s6816_s16 + $0xa0] sm:$0xff] %vm4146_vm3, %v4111_v17 }
 0x4e4   : > { %v4113_v58 = vpop.f32.mrf.mxu3 }
 0x4e5   : > { %v4114_v13 = vadd.f32 %v6808_v0, %v4113_v58 }
 0x4e7   : > { %4168 = vst.msk [vmem:[%s6816_s16 + $0xa8] sm:$0xff] %vm4146_vm3, %v4114_v13 }
 0x4ec   : > { %v4116_v54 = vpop.f32.mrf.mxu3 }
 0x4ed   : > { %v4117_v16 = vadd.f32 %v6808_v0, %v4116_v54 }
 0x4ef   : > { %4169 = vst.msk [vmem:[%s6816_s16 + $0xb0] sm:$0xff] %vm4146_vm3, %v4117_v16 }
 0x4f4   : > { %v4119_v34 = vpop.f32.mrf.mxu3 }
 0x4f5   : > { %v4120_v29 = vadd.f32 %v6808_v0, %v4119_v34 }
 0x4f7   : > { %4170 = vst.msk [vmem:[%s6816_s16 + $0xb8] sm:$0xff] %vm4146_vm3, %v4120_v29 }
 0x4fc   : > { %v4122_v57 = vpop.f32.mrf.mxu3 }
 0x4fd   : > { %v4123_v12 = vadd.f32 %v6808_v0, %v4122_v57 }
 0x4ff   : > { %4171 = vst.msk [vmem:[%s6816_s16 + $0xc0] sm:$0xff] %vm4146_vm3, %v4123_v12 }
 0x504   : > { %v4125_v9 = vpop.f32.mrf.mxu3 }
 0x505   : > { %v4126_v18 = vadd.f32 %v6808_v0, %v4125_v9 }
 0x507   : > { %4172 = vst.msk [vmem:[%s6816_s16 + $0xc8] sm:$0xff] %vm4146_vm3, %v4126_v18 }
 0x50c   : > { %v4128_v50 = vpop.f32.mrf.mxu3 }
 0x50d   : > { %v4129_v24 = vadd.f32 %v6808_v0, %v4128_v50 }
 0x50f   : > { %4173 = vst.msk [vmem:[%s6816_s16 + $0xd0] sm:$0xff] %vm4146_vm3, %v4129_v24 }
 0x514   : > { %v4131_v59 = vpop.f32.mrf.mxu3 }
 0x515   : > { %v4132_v39 = vadd.f32 %v6808_v0, %v4131_v59 }
 0x517   : > { %4174 = vst.msk [vmem:[%s6816_s16 + $0xd8] sm:$0xff] %vm4146_vm3, %v4132_v39 }
 0x51c   : > { %v4134_v52 = vpop.f32.mrf.mxu3 }
 0x51d   : > { %v4135_v1 = vadd.f32 %v6808_v0, %v4134_v52 }
 0x51f   : > { %4175 = vst.msk [vmem:[%s6816_s16 + $0xe0] sm:$0xff] %vm4146_vm3, %v4135_v1 }
 0x524   : > { %v4137_v20 = vpop.f32.mrf.mxu3 }
 0x525   : > { %v4138_v22 = vadd.f32 %v6808_v0, %v4137_v20 }
 0x527   : > { %4176 = vst.msk [vmem:[%s6816_s16 + $0xe8] sm:$0xff] %vm4146_vm3, %v4138_v22 }
 0x52c   : > { %v4140_v14 = vpop.f32.mrf.mxu3 }
 0x52d   : > { %v4141_v27 = vadd.f32 %v6808_v0, %v4140_v14 }
 0x52f   : > { %4177 = vst.msk [vmem:[%s6816_s16 + $0xf0] sm:$0xff] %vm4146_vm3, %v4141_v27 }
 0x534   : > { %v4143_v28 = vpop.f32.mrf.mxu3 }
 0x535   : > { %v4144_v26 = vadd.f32 %v6808_v0, %v4143_v28 }
 0x537   : > { %4178 = vst.msk [vmem:[%s6816_s16 + $0xf8] sm:$0xff] %vm4146_vm3, %v4144_v26 }
 0x538 PF: > { %s21_s17 = sadd.s32 1, %s5005_s17  }
 0x539   : > { %p18_p4 = scmp.ge.s32.totalorder %s21_s17, 4  }
 0x53b   :  { %20 = sbr.rel (!%p18_p4) target bundleno = 1 (0x1), region = 99 }

</bundles_post_ra>
